<compile_context>
chip_gen: v7x
topology: tpu7x:2x2x1
jax: 0.10.0
libtpu: 0.0.40
codegen_flags: <defaults>
</compile_context>

<pallas_src>
import numpy as np
import jax
import jax.numpy as jnp
from jax import lax
from jax.experimental import pallas as pl
from jax.experimental.pallas import tpu as pltpu

ROWS_PER_IMG = 32      # input images are 32x32; one 32-row block per image
LANE = 128


# ------------------------------ fused kernel --------------------------------

def _lenet_kernel(x_ref, g1_ref, b1_ref, g2_ref, b2_ref, m_ref, fb1_ref,
                  w3_ref, fb3_ref, o_ref, p2_ref):
    tb = o_ref.shape[0]                    # images in this batch tile

    def shift_up(a, k):
        # result[r] = a[r + k]; bottom k rows become zero (only invalid rows see them)
        if k == 0:
            return a
        z = jnp.zeros((k, a.shape[1]), a.dtype)
        return jnp.concatenate([a[k:, :], z], axis=0)

    x = x_ref[...]                                                # (TB*32, 32)

    # ---- conv1 (5x5, 1->6) + bias + ReLU + 2x2 max-pool -------------------
    c1 = jnp.dot(x, g1_ref[0], preferred_element_type=jnp.float32)
    for ky in range(1, 5):
        c1 += jnp.dot(shift_up(x, ky), g1_ref[ky],
                      preferred_element_type=jnp.float32)         # (TB*32, 256)
    r1 = jnp.maximum(c1 + b1_ref[...], 0.0)
    h1 = jnp.maximum(r1[:, :LANE], r1[:, LANE:])                  # pool over x (even/odd lane halves)
    p1 = jnp.maximum(h1, shift_up(h1, 1))                         # pool over y; valid rows r = 2*py

    # ---- conv2 (5x5, 6->16) + bias + ReLU + 2x2 max-pool -------------------
    c2 = jnp.dot(p1, g2_ref[0], preferred_element_type=jnp.float32)
    for ky in range(1, 5):
        c2 += jnp.dot(shift_up(p1, 2 * ky), g2_ref[ky],
                      preferred_element_type=jnp.float32)         # (TB*32, 256)
    r2 = jnp.maximum(c2 + b2_ref[...], 0.0)
    h2 = jnp.maximum(r2[:, :LANE], r2[:, LANE:])                  # pool over x
    p2 = jnp.maximum(h2, shift_up(h2, 2))                         # pool over y; valid rows r = 4*py2
    p2_ref[...] = p2                                              # stage for strided row gather

    # ---- fc1 (400->150) + ReLU, fc3 (150->50) ------------------------------
    hid = jnp.zeros((tb, 256), jnp.float32)
    for py2 in range(5):
        # row 4*py2 of every image's 32-row block -> (TB, 128)
        rows = p2_ref[pl.ds(4 * py2, tb, stride=ROWS_PER_IMG), :]
        hid += jnp.dot(rows, m_ref[py2], preferred_element_type=jnp.float32)
    hid = jnp.maximum(hid + fb1_ref[...], 0.0)
    o_ref[...] = (jnp.dot(hid, w3_ref[...], preferred_element_type=jnp.float32)
                  + fb3_ref[...])


# -------------------------------- wrapper ------------------------------------

def _batch_tile(batch):
    # multiple of 8; capped so per-step VMEM stays small on every TPU generation
    return max(8, min(32, ((batch + 7) // 8) * 8))


@jax.jit
def net_forward(x, kp):
    """x: (B, 1, 32, 32) float32 NCHW -> (B, 50) logits."""
    B = x.shape[0]
    TB = _batch_tile(B)
    G = pl.cdiv(B, TB)
    Bp = G * TB

    x2 = x.reshape(B * ROWS_PER_IMG, 32).astype(jnp.float32)      # rows = (image, y), lanes = x
    if Bp != B:
        x2 = jnp.pad(x2, ((0, (Bp - B) * ROWS_PER_IMG), (0, 0)))

    out = pl.pallas_call(
        _lenet_kernel,
        out_shape=jax.ShapeDtypeStruct((Bp, LANE), jnp.float32),
        grid=(G,),
        in_specs=[
            pl.BlockSpec((TB * ROWS_PER_IMG, 32), lambda i: (i, 0)),   # activations: tiled over batch
            pl.BlockSpec((5, 32, 256), lambda i: (0, 0, 0)),           # conv1 banded weights (resident)
            pl.BlockSpec((1, 256), lambda i: (0, 0)),
            pl.BlockSpec((5, 128, 256), lambda i: (0, 0, 0)),          # conv2 banded weights (resident)
            pl.BlockSpec((1, 256), lambda i: (0, 0)),
            pl.BlockSpec((5, 128, 256), lambda i: (0, 0, 0)),          # fc1 per-row weights (resident)
            pl.BlockSpec((1, 256), lambda i: (0, 0)),
            pl.BlockSpec((256, 128), lambda i: (0, 0)),                # fc3 weights (resident)
            pl.BlockSpec((1, 128), lambda i: (0, 0)),
        ],
        out_specs=pl.BlockSpec((TB, LANE), lambda i: (i, 0)),
        scratch_shapes=[pltpu.VMEM((TB * ROWS_PER_IMG, LANE), jnp.float32)],
        compiler_params=pltpu.CompilerParams(
            dimension_semantics=("parallel",),
            vmem_limit_bytes=32 * 1024 * 1024),
    )(x2, kp["g1"], kp["b1v"], kp["g2"], kp["b2v"], kp["m1"], kp["fb1"],
      kp["w3"], kp["fb3"])

    return out[:B, :50]


# ---------------------- one-time parameter preparation -----------------------

def prepare_params(p):
    """Turn PyTorch-layout params into banded, lane-padded constant matrices (run once)."""
    w1 = np.asarray(p["conv1_w"], np.float32)       # (6, 1, 5, 5)  OIHW
    b1 = np.asarray(p["conv1_b"], np.float32)
    w2 = np.asarray(p["conv2_w"], np.float32)       # (16, 6, 5, 5)
    b2 = np.asarray(p["conv2_b"], np.float32)
    f1w = np.asarray(p["fc1_w"], np.float32)        # (150, 400)
    f1b = np.asarray(p["fc1_b"], np.float32)
    f3w = np.asarray(p["fc3_w"], np.float32)        # (50, 150)
    f3b = np.asarray(p["fc3_b"], np.float32)

    # conv1: G1[ky] maps 32 input lanes (width) -> 256 lanes; lane = dx*128 + px*6 + o, x = 2*px+dx
    g1 = np.zeros((5, 32, 256), np.float32)
    b1v = np.zeros((1, 256), np.float32)
    for dx in range(2):
        for px in range(14):
            x = 2 * px + dx
            base = dx * 128 + px * 6
            b1v[0, base:base + 6] = b1
            for o in range(6):
                for ky in range(5):
                    g1[ky, x:x + 5, base + o] = w1[o, 0, ky, :]

    # conv2: G2[ky] maps input lane px*6+c -> output lane dx*128 + qx*16 + o, x2 = 2*qx+dx
    g2 = np.zeros((5, 128, 256), np.float32)
    b2v = np.zeros((1, 256), np.float32)
    for dx in range(2):
        for qx in range(5):
            x2 = 2 * qx + dx
            base = dx * 128 + qx * 16
            b2v[0, base:base + 16] = b2
            for o in range(16):
                for ky in range(5):
                    for kx in range(5):
                        px = x2 + kx
                        g2[ky, px * 6:px * 6 + 6, base + o] = w2[o, :, ky, kx]

    # fc1: per-pooled-row matrices; input lane qx*16+o matches torch flatten order (c, h, w)
    m1 = np.zeros((5, 128, 256), np.float32)
    for py2 in range(5):
        for qx in range(5):
            for o in range(16):
                m1[py2, qx * 16 + o, :150] = f1w[:, o * 25 + py2 * 5 + qx]
    fb1 = np.zeros((1, 256), np.float32)
    fb1[0, :150] = f1b

    w3 = np.zeros((256, 128), np.float32)
    w3[:150, :50] = f3w.T
    fb3 = np.zeros((1, 128), np.float32)
    fb3[0, :50] = f3b

    mats = dict(g1=g1, b1v=b1v, g2=g2, b2v=b2v, m1=m1, fb1=fb1, w3=w3, fb3=fb3)
    return {k: jnp.asarray(v) for k, v in mats.items()}


# ------------------------------ init & reference -----------------------------

def init_params(key):
    # Deterministic synthetic init (PyTorch-default-style uniform).  fc2/dropout are
    # defined in the torch module but unused in forward(); omitted here.
    ks = jax.random.split(key, 8)

    def init(k, shape, fan_in):
        bound = 1.0 / jnp.sqrt(jnp.float32(fan_in))
        return jax.random.uniform(k, shape, jnp.float32, -bound, bound)

    return {
        "conv1_w": init(ks[0], (6, 1, 5, 5), 1 * 25),
        "conv1_b": init(ks[1], (6,), 1 * 25),
        "conv2_w": init(ks[2], (16, 6, 5, 5), 6 * 25),
        "conv2_b": init(ks[3], (16,), 6 * 25),
        "fc1_w": init(ks[4], (150, 400), 400),
        "fc1_b": init(ks[5], (150,), 400),
        "fc3_w": init(ks[6], (50, 150), 150),
        "fc3_b": init(ks[7], (50,), 150),
    }


def reference_forward(x, p):
    def conv(x, w, b):
        y = lax.conv_general_dilated(x, w, (1, 1), "VALID",
                                     dimension_numbers=("NCHW", "OIHW", "NCHW"))
        return y + b.reshape(1, -1, 1, 1)

    def pool(x):
        return lax.reduce_window(x, -jnp.inf, lax.max, (1, 1, 2, 2), (1, 1, 2, 2), "VALID")

    h = pool(jax.nn.relu(conv(x, p["conv1_w"], p["conv1_b"])))
    h = pool(jax.nn.relu(conv(h, p["conv2_w"], p["conv2_b"])))
    h = h.reshape(h.shape[0], -1)
    h = jax.nn.relu(h @ p["fc1_w"].T + p["fc1_b"])
    return h @ p["fc3_w"].T + p["fc3_b"]


if __name__ == "__main__":
    key = jax.random.PRNGKey(0)
    pkey, xkey = jax.random.split(key)
    params = init_params(pkey)
    kparams = prepare_params(params)                 # one-time, kernel-ready layout
    x = jax.random.normal(xkey, (2, 1, 32, 32), jnp.float32)

    out = jax.block_until_ready(net_forward(x, kparams))
    assert out.shape == (2, 50), out.shape

    ref = reference_forward(x, params)
    err = float(jnp.max(jnp.abs(out - ref)))
    assert jnp.allclose(out, ref, atol=1e-3, rtol=1e-3), f"max abs err {err}"

    print("KERNEL_OK")
</pallas_src>

<mosaic_0001>
module attributes {stable_mosaic.version = 11 : i64} {
  func.func @_lenet_kernel(%arg0: i32, %arg1: memref<256x32xf32, #tpu.memory_space<vmem>>, %arg2: memref<5x32x256xf32, #tpu.memory_space<vmem>>, %arg3: memref<1x256xf32, #tpu.memory_space<vmem>>, %arg4: memref<5x128x256xf32, #tpu.memory_space<vmem>>, %arg5: memref<1x256xf32, #tpu.memory_space<vmem>>, %arg6: memref<5x128x256xf32, #tpu.memory_space<vmem>>, %arg7: memref<1x256xf32, #tpu.memory_space<vmem>>, %arg8: memref<256x128xf32, #tpu.memory_space<vmem>>, %arg9: memref<1x128xf32, #tpu.memory_space<vmem>>, %arg10: memref<8x128xf32, #tpu.memory_space<vmem>>, %arg11: memref<256x128xf32, #tpu.memory_space<vmem>>) attributes {dimension_semantics = [#tpu.dimension_semantics<parallel>], iteration_bounds = array<i64: 1>, scalar_prefetch = 0 : i64, scratch_operands = 1 : i64, tpu.core_type = #tpu.core_type<tc>, window_params = [{transform_indices = @transform_0, window_bounds = array<i64: 256, 32>}, {pipeline_mode = #tpu.pipeline_mode<synchronous>, transform_indices = @transform_1, window_bounds = array<i64: 5, 32, 256>}, {pipeline_mode = #tpu.pipeline_mode<synchronous>, transform_indices = @transform_2, window_bounds = array<i64: 1, 256>}, {pipeline_mode = #tpu.pipeline_mode<synchronous>, transform_indices = @transform_3, window_bounds = array<i64: 5, 128, 256>}, {pipeline_mode = #tpu.pipeline_mode<synchronous>, transform_indices = @transform_4, window_bounds = array<i64: 1, 256>}, {pipeline_mode = #tpu.pipeline_mode<synchronous>, transform_indices = @transform_5, window_bounds = array<i64: 5, 128, 256>}, {pipeline_mode = #tpu.pipeline_mode<synchronous>, transform_indices = @transform_6, window_bounds = array<i64: 1, 256>}, {pipeline_mode = #tpu.pipeline_mode<synchronous>, transform_indices = @transform_7, window_bounds = array<i64: 256, 128>}, {pipeline_mode = #tpu.pipeline_mode<synchronous>, transform_indices = @transform_8, window_bounds = array<i64: 1, 128>}, {transform_indices = @transform_9, window_bounds = array<i64: 8, 128>}]} {
    %c0 = arith.constant 0 : index
    %c0_0 = arith.constant 0 : index
    %0 = vector.load %arg1[%c0, %c0_0] : memref<256x32xf32, #tpu.memory_space<vmem>>, vector<256x32xf32>
    %c0_1 = arith.constant 0 : index
    %c0_2 = arith.constant 0 : index
    %c0_3 = arith.constant 0 : index
    %1 = vector.load %arg2[%c0_1, %c0_2, %c0_3] : memref<5x32x256xf32, #tpu.memory_space<vmem>>, vector<1x32x256xf32>
    %2 = vector.shape_cast %1 : vector<1x32x256xf32> to vector<32x256xf32>
    %cst = arith.constant dense<0.000000e+00> : vector<256x256xf32>
    %3 = tpu.matmul %0, %2, %cst {dimension_numbers = #tpu.dot_dimension_numbers<[1], [0], [0], [1], [0, 0, 1, 1], [], []>} : vector<256x32xf32>, vector<32x256xf32>, vector<256x256xf32> -> vector<256x256xf32>
    %cst_4 = arith.constant 0.000000e+00 : f32
    %4 = vector.broadcast %cst_4 : f32 to vector<1x32xf32>
    %5 = vector.extract_strided_slice %0 {offsets = [1, 0], sizes = [255, 32], strides = [1, 1]} : vector<256x32xf32> to vector<255x32xf32>
    %6 = tpu.concatenate %5, %4 in 0 : vector<255x32xf32>, vector<1x32xf32> -> vector<256x32xf32>
    %c1 = arith.constant 1 : index
    %c0_5 = arith.constant 0 : index
    %c0_6 = arith.constant 0 : index
    %7 = vector.load %arg2[%c1, %c0_5, %c0_6] : memref<5x32x256xf32, #tpu.memory_space<vmem>>, vector<1x32x256xf32>
    %8 = vector.shape_cast %7 : vector<1x32x256xf32> to vector<32x256xf32>
    %cst_7 = arith.constant dense<0.000000e+00> : vector<256x256xf32>
    %9 = tpu.matmul %6, %8, %cst_7 {dimension_numbers = #tpu.dot_dimension_numbers<[1], [0], [0], [1], [0, 0, 1, 1], [], []>} : vector<256x32xf32>, vector<32x256xf32>, vector<256x256xf32> -> vector<256x256xf32>
    %10 = arith.addf %3, %9 : vector<256x256xf32>
    %cst_8 = arith.constant 0.000000e+00 : f32
    %11 = vector.broadcast %cst_8 : f32 to vector<2x32xf32>
    %12 = vector.extract_strided_slice %0 {offsets = [2, 0], sizes = [254, 32], strides = [1, 1]} : vector<256x32xf32> to vector<254x32xf32>
    %13 = tpu.concatenate %12, %11 in 0 : vector<254x32xf32>, vector<2x32xf32> -> vector<256x32xf32>
    %c2 = arith.constant 2 : index
    %c0_9 = arith.constant 0 : index
    %c0_10 = arith.constant 0 : index
    %14 = vector.load %arg2[%c2, %c0_9, %c0_10] : memref<5x32x256xf32, #tpu.memory_space<vmem>>, vector<1x32x256xf32>
    %15 = vector.shape_cast %14 : vector<1x32x256xf32> to vector<32x256xf32>
    %cst_11 = arith.constant dense<0.000000e+00> : vector<256x256xf32>
    %16 = tpu.matmul %13, %15, %cst_11 {dimension_numbers = #tpu.dot_dimension_numbers<[1], [0], [0], [1], [0, 0, 1, 1], [], []>} : vector<256x32xf32>, vector<32x256xf32>, vector<256x256xf32> -> vector<256x256xf32>
    %17 = arith.addf %10, %16 : vector<256x256xf32>
    %cst_12 = arith.constant 0.000000e+00 : f32
    %18 = vector.broadcast %cst_12 : f32 to vector<3x32xf32>
    %19 = vector.extract_strided_slice %0 {offsets = [3, 0], sizes = [253, 32], strides = [1, 1]} : vector<256x32xf32> to vector<253x32xf32>
    %20 = tpu.concatenate %19, %18 in 0 : vector<253x32xf32>, vector<3x32xf32> -> vector<256x32xf32>
    %c3 = arith.constant 3 : index
    %c0_13 = arith.constant 0 : index
    %c0_14 = arith.constant 0 : index
    %21 = vector.load %arg2[%c3, %c0_13, %c0_14] : memref<5x32x256xf32, #tpu.memory_space<vmem>>, vector<1x32x256xf32>
    %22 = vector.shape_cast %21 : vector<1x32x256xf32> to vector<32x256xf32>
    %cst_15 = arith.constant dense<0.000000e+00> : vector<256x256xf32>
    %23 = tpu.matmul %20, %22, %cst_15 {dimension_numbers = #tpu.dot_dimension_numbers<[1], [0], [0], [1], [0, 0, 1, 1], [], []>} : vector<256x32xf32>, vector<32x256xf32>, vector<256x256xf32> -> vector<256x256xf32>
    %24 = arith.addf %17, %23 : vector<256x256xf32>
    %cst_16 = arith.constant 0.000000e+00 : f32
    %25 = vector.broadcast %cst_16 : f32 to vector<4x32xf32>
    %26 = vector.extract_strided_slice %0 {offsets = [4, 0], sizes = [252, 32], strides = [1, 1]} : vector<256x32xf32> to vector<252x32xf32>
    %27 = tpu.concatenate %26, %25 in 0 : vector<252x32xf32>, vector<4x32xf32> -> vector<256x32xf32>
    %c4 = arith.constant 4 : index
    %c0_17 = arith.constant 0 : index
    %c0_18 = arith.constant 0 : index
    %28 = vector.load %arg2[%c4, %c0_17, %c0_18] : memref<5x32x256xf32, #tpu.memory_space<vmem>>, vector<1x32x256xf32>
    %29 = vector.shape_cast %28 : vector<1x32x256xf32> to vector<32x256xf32>
    %cst_19 = arith.constant dense<0.000000e+00> : vector<256x256xf32>
    %30 = tpu.matmul %27, %29, %cst_19 {dimension_numbers = #tpu.dot_dimension_numbers<[1], [0], [0], [1], [0, 0, 1, 1], [], []>} : vector<256x32xf32>, vector<32x256xf32>, vector<256x256xf32> -> vector<256x256xf32>
    %31 = arith.addf %24, %30 : vector<256x256xf32>
    %c0_20 = arith.constant 0 : index
    %c0_21 = arith.constant 0 : index
    %32 = vector.load %arg3[%c0_20, %c0_21] : memref<1x256xf32, #tpu.memory_space<vmem>>, vector<1x256xf32>
    %33 = vector.broadcast %32 : vector<1x256xf32> to vector<256x256xf32>
    %34 = arith.addf %31, %33 : vector<256x256xf32>
    %cst_22 = arith.constant 0.000000e+00 : f32
    %35 = vector.broadcast %cst_22 : f32 to vector<256x256xf32>
    %36 = arith.maximumf %34, %35 : vector<256x256xf32>
    %37 = vector.extract_strided_slice %36 {offsets = [0, 0], sizes = [256, 128], strides = [1, 1]} : vector<256x256xf32> to vector<256x128xf32>
    %38 = vector.extract_strided_slice %36 {offsets = [0, 128], sizes = [256, 128], strides = [1, 1]} : vector<256x256xf32> to vector<256x128xf32>
    %39 = arith.maximumf %37, %38 : vector<256x128xf32>
    %cst_23 = arith.constant 0.000000e+00 : f32
    %40 = vector.broadcast %cst_23 : f32 to vector<1x128xf32>
    %41 = vector.extract_strided_slice %39 {offsets = [1, 0], sizes = [255, 128], strides = [1, 1]} : vector<256x128xf32> to vector<255x128xf32>
    %42 = tpu.concatenate %41, %40 in 0 : vector<255x128xf32>, vector<1x128xf32> -> vector<256x128xf32>
    %43 = arith.maximumf %39, %42 : vector<256x128xf32>
    %c0_24 = arith.constant 0 : index
    %c0_25 = arith.constant 0 : index
    %c0_26 = arith.constant 0 : index
    %44 = vector.load %arg4[%c0_24, %c0_25, %c0_26] : memref<5x128x256xf32, #tpu.memory_space<vmem>>, vector<1x128x256xf32>
    %45 = vector.shape_cast %44 : vector<1x128x256xf32> to vector<128x256xf32>
    %cst_27 = arith.constant dense<0.000000e+00> : vector<256x256xf32>
    %46 = tpu.matmul %43, %45, %cst_27 {dimension_numbers = #tpu.dot_dimension_numbers<[1], [0], [0], [1], [0, 0, 1, 1], [], []>} : vector<256x128xf32>, vector<128x256xf32>, vector<256x256xf32> -> vector<256x256xf32>
    %cst_28 = arith.constant 0.000000e+00 : f32
    %47 = vector.broadcast %cst_28 : f32 to vector<2x128xf32>
    %48 = vector.extract_strided_slice %43 {offsets = [2, 0], sizes = [254, 128], strides = [1, 1]} : vector<256x128xf32> to vector<254x128xf32>
    %49 = tpu.concatenate %48, %47 in 0 : vector<254x128xf32>, vector<2x128xf32> -> vector<256x128xf32>
    %c1_29 = arith.constant 1 : index
    %c0_30 = arith.constant 0 : index
    %c0_31 = arith.constant 0 : index
    %50 = vector.load %arg4[%c1_29, %c0_30, %c0_31] : memref<5x128x256xf32, #tpu.memory_space<vmem>>, vector<1x128x256xf32>
    %51 = vector.shape_cast %50 : vector<1x128x256xf32> to vector<128x256xf32>
    %cst_32 = arith.constant dense<0.000000e+00> : vector<256x256xf32>
    %52 = tpu.matmul %49, %51, %cst_32 {dimension_numbers = #tpu.dot_dimension_numbers<[1], [0], [0], [1], [0, 0, 1, 1], [], []>} : vector<256x128xf32>, vector<128x256xf32>, vector<256x256xf32> -> vector<256x256xf32>
    %53 = arith.addf %46, %52 : vector<256x256xf32>
    %cst_33 = arith.constant 0.000000e+00 : f32
    %54 = vector.broadcast %cst_33 : f32 to vector<4x128xf32>
    %55 = vector.extract_strided_slice %43 {offsets = [4, 0], sizes = [252, 128], strides = [1, 1]} : vector<256x128xf32> to vector<252x128xf32>
    %56 = tpu.concatenate %55, %54 in 0 : vector<252x128xf32>, vector<4x128xf32> -> vector<256x128xf32>
    %c2_34 = arith.constant 2 : index
    %c0_35 = arith.constant 0 : index
    %c0_36 = arith.constant 0 : index
    %57 = vector.load %arg4[%c2_34, %c0_35, %c0_36] : memref<5x128x256xf32, #tpu.memory_space<vmem>>, vector<1x128x256xf32>
    %58 = vector.shape_cast %57 : vector<1x128x256xf32> to vector<128x256xf32>
    %cst_37 = arith.constant dense<0.000000e+00> : vector<256x256xf32>
    %59 = tpu.matmul %56, %58, %cst_37 {dimension_numbers = #tpu.dot_dimension_numbers<[1], [0], [0], [1], [0, 0, 1, 1], [], []>} : vector<256x128xf32>, vector<128x256xf32>, vector<256x256xf32> -> vector<256x256xf32>
    %60 = arith.addf %53, %59 : vector<256x256xf32>
    %cst_38 = arith.constant 0.000000e+00 : f32
    %61 = vector.broadcast %cst_38 : f32 to vector<6x128xf32>
    %62 = vector.extract_strided_slice %43 {offsets = [6, 0], sizes = [250, 128], strides = [1, 1]} : vector<256x128xf32> to vector<250x128xf32>
    %63 = tpu.concatenate %62, %61 in 0 : vector<250x128xf32>, vector<6x128xf32> -> vector<256x128xf32>
    %c3_39 = arith.constant 3 : index
    %c0_40 = arith.constant 0 : index
    %c0_41 = arith.constant 0 : index
    %64 = vector.load %arg4[%c3_39, %c0_40, %c0_41] : memref<5x128x256xf32, #tpu.memory_space<vmem>>, vector<1x128x256xf32>
    %65 = vector.shape_cast %64 : vector<1x128x256xf32> to vector<128x256xf32>
    %cst_42 = arith.constant dense<0.000000e+00> : vector<256x256xf32>
    %66 = tpu.matmul %63, %65, %cst_42 {dimension_numbers = #tpu.dot_dimension_numbers<[1], [0], [0], [1], [0, 0, 1, 1], [], []>} : vector<256x128xf32>, vector<128x256xf32>, vector<256x256xf32> -> vector<256x256xf32>
    %67 = arith.addf %60, %66 : vector<256x256xf32>
    %cst_43 = arith.constant 0.000000e+00 : f32
    %68 = vector.broadcast %cst_43 : f32 to vector<8x128xf32>
    %69 = vector.extract_strided_slice %43 {offsets = [8, 0], sizes = [248, 128], strides = [1, 1]} : vector<256x128xf32> to vector<248x128xf32>
    %70 = tpu.concatenate %69, %68 in 0 : vector<248x128xf32>, vector<8x128xf32> -> vector<256x128xf32>
    %c4_44 = arith.constant 4 : index
    %c0_45 = arith.constant 0 : index
    %c0_46 = arith.constant 0 : index
    %71 = vector.load %arg4[%c4_44, %c0_45, %c0_46] : memref<5x128x256xf32, #tpu.memory_space<vmem>>, vector<1x128x256xf32>
    %72 = vector.shape_cast %71 : vector<1x128x256xf32> to vector<128x256xf32>
    %cst_47 = arith.constant dense<0.000000e+00> : vector<256x256xf32>
    %73 = tpu.matmul %70, %72, %cst_47 {dimension_numbers = #tpu.dot_dimension_numbers<[1], [0], [0], [1], [0, 0, 1, 1], [], []>} : vector<256x128xf32>, vector<128x256xf32>, vector<256x256xf32> -> vector<256x256xf32>
    %74 = arith.addf %67, %73 : vector<256x256xf32>
    %c0_48 = arith.constant 0 : index
    %c0_49 = arith.constant 0 : index
    %75 = vector.load %arg5[%c0_48, %c0_49] : memref<1x256xf32, #tpu.memory_space<vmem>>, vector<1x256xf32>
    %76 = vector.broadcast %75 : vector<1x256xf32> to vector<256x256xf32>
    %77 = arith.addf %74, %76 : vector<256x256xf32>
    %cst_50 = arith.constant 0.000000e+00 : f32
    %78 = vector.broadcast %cst_50 : f32 to vector<256x256xf32>
    %79 = arith.maximumf %77, %78 : vector<256x256xf32>
    %80 = vector.extract_strided_slice %79 {offsets = [0, 0], sizes = [256, 128], strides = [1, 1]} : vector<256x256xf32> to vector<256x128xf32>
    %81 = vector.extract_strided_slice %79 {offsets = [0, 128], sizes = [256, 128], strides = [1, 1]} : vector<256x256xf32> to vector<256x128xf32>
    %82 = arith.maximumf %80, %81 : vector<256x128xf32>
    %cst_51 = arith.constant 0.000000e+00 : f32
    %83 = vector.broadcast %cst_51 : f32 to vector<2x128xf32>
    %84 = vector.extract_strided_slice %82 {offsets = [2, 0], sizes = [254, 128], strides = [1, 1]} : vector<256x128xf32> to vector<254x128xf32>
    %85 = tpu.concatenate %84, %83 in 0 : vector<254x128xf32>, vector<2x128xf32> -> vector<256x128xf32>
    %86 = arith.maximumf %82, %85 : vector<256x128xf32>
    %c0_52 = arith.constant 0 : index
    %c0_53 = arith.constant 0 : index
    %87 = vector.load %arg11[%c0_52, %c0_53] : memref<256x128xf32, #tpu.memory_space<vmem>>, vector<256x128xf32>
    tpu.vector_store %arg11[%c0_52, %c0_53], %86 {strides = array<i32>} : memref<256x128xf32, #tpu.memory_space<vmem>>, vector<256x128xf32>,
    %cst_54 = arith.constant 0.000000e+00 : f32
    %88 = vector.broadcast %cst_54 : f32 to vector<8x256xf32>
    %c0_55 = arith.constant 0 : index
    %c0_56 = arith.constant 0 : index
    %89 = tpu.strided_load %arg11[%c0_55, %c0_56] {strides = array<i32: 32, 1>} : memref<256x128xf32, #tpu.memory_space<vmem>>, vector<8x128xf32>
    %c0_57 = arith.constant 0 : index
    %c0_58 = arith.constant 0 : index
    %c0_59 = arith.constant 0 : index
    %90 = vector.load %arg6[%c0_57, %c0_58, %c0_59] : memref<5x128x256xf32, #tpu.memory_space<vmem>>, vector<1x128x256xf32>
    %91 = vector.shape_cast %90 : vector<1x128x256xf32> to vector<128x256xf32>
    %cst_60 = arith.constant dense<0.000000e+00> : vector<8x256xf32>
    %92 = tpu.matmul %89, %91, %cst_60 {dimension_numbers = #tpu.dot_dimension_numbers<[1], [0], [0], [1], [0, 0, 1, 1], [], []>} : vector<8x128xf32>, vector<128x256xf32>, vector<8x256xf32> -> vector<8x256xf32>
    %93 = arith.addf %88, %92 : vector<8x256xf32>
    %c4_61 = arith.constant 4 : index
    %c0_62 = arith.constant 0 : index
    %94 = tpu.strided_load %arg11[%c4_61, %c0_62] {strides = array<i32: 32, 1>} : memref<256x128xf32, #tpu.memory_space<vmem>>, vector<8x128xf32>
    %c1_63 = arith.constant 1 : index
    %c0_64 = arith.constant 0 : index
    %c0_65 = arith.constant 0 : index
    %95 = vector.load %arg6[%c1_63, %c0_64, %c0_65] : memref<5x128x256xf32, #tpu.memory_space<vmem>>, vector<1x128x256xf32>
    %96 = vector.shape_cast %95 : vector<1x128x256xf32> to vector<128x256xf32>
    %cst_66 = arith.constant dense<0.000000e+00> : vector<8x256xf32>
    %97 = tpu.matmul %94, %96, %cst_66 {dimension_numbers = #tpu.dot_dimension_numbers<[1], [0], [0], [1], [0, 0, 1, 1], [], []>} : vector<8x128xf32>, vector<128x256xf32>, vector<8x256xf32> -> vector<8x256xf32>
    %98 = arith.addf %93, %97 : vector<8x256xf32>
    %c8 = arith.constant 8 : index
    %c0_67 = arith.constant 0 : index
    %99 = tpu.strided_load %arg11[%c8, %c0_67] {strides = array<i32: 32, 1>} : memref<256x128xf32, #tpu.memory_space<vmem>>, vector<8x128xf32>
    %c2_68 = arith.constant 2 : index
    %c0_69 = arith.constant 0 : index
    %c0_70 = arith.constant 0 : index
    %100 = vector.load %arg6[%c2_68, %c0_69, %c0_70] : memref<5x128x256xf32, #tpu.memory_space<vmem>>, vector<1x128x256xf32>
    %101 = vector.shape_cast %100 : vector<1x128x256xf32> to vector<128x256xf32>
    %cst_71 = arith.constant dense<0.000000e+00> : vector<8x256xf32>
    %102 = tpu.matmul %99, %101, %cst_71 {dimension_numbers = #tpu.dot_dimension_numbers<[1], [0], [0], [1], [0, 0, 1, 1], [], []>} : vector<8x128xf32>, vector<128x256xf32>, vector<8x256xf32> -> vector<8x256xf32>
    %103 = arith.addf %98, %102 : vector<8x256xf32>
    %c12 = arith.constant 12 : index
    %c0_72 = arith.constant 0 : index
    %104 = tpu.strided_load %arg11[%c12, %c0_72] {strides = array<i32: 32, 1>} : memref<256x128xf32, #tpu.memory_space<vmem>>, vector<8x128xf32>
    %c3_73 = arith.constant 3 : index
    %c0_74 = arith.constant 0 : index
    %c0_75 = arith.constant 0 : index
    %105 = vector.load %arg6[%c3_73, %c0_74, %c0_75] : memref<5x128x256xf32, #tpu.memory_space<vmem>>, vector<1x128x256xf32>
    %106 = vector.shape_cast %105 : vector<1x128x256xf32> to vector<128x256xf32>
    %cst_76 = arith.constant dense<0.000000e+00> : vector<8x256xf32>
    %107 = tpu.matmul %104, %106, %cst_76 {dimension_numbers = #tpu.dot_dimension_numbers<[1], [0], [0], [1], [0, 0, 1, 1], [], []>} : vector<8x128xf32>, vector<128x256xf32>, vector<8x256xf32> -> vector<8x256xf32>
    %108 = arith.addf %103, %107 : vector<8x256xf32>
    %c16 = arith.constant 16 : index
    %c0_77 = arith.constant 0 : index
    %109 = tpu.strided_load %arg11[%c16, %c0_77] {strides = array<i32: 32, 1>} : memref<256x128xf32, #tpu.memory_space<vmem>>, vector<8x128xf32>
    %c4_78 = arith.constant 4 : index
    %c0_79 = arith.constant 0 : index
    %c0_80 = arith.constant 0 : index
    %110 = vector.load %arg6[%c4_78, %c0_79, %c0_80] : memref<5x128x256xf32, #tpu.memory_space<vmem>>, vector<1x128x256xf32>
    %111 = vector.shape_cast %110 : vector<1x128x256xf32> to vector<128x256xf32>
    %cst_81 = arith.constant dense<0.000000e+00> : vector<8x256xf32>
    %112 = tpu.matmul %109, %111, %cst_81 {dimension_numbers = #tpu.dot_dimension_numbers<[1], [0], [0], [1], [0, 0, 1, 1], [], []>} : vector<8x128xf32>, vector<128x256xf32>, vector<8x256xf32> -> vector<8x256xf32>
    %113 = arith.addf %108, %112 : vector<8x256xf32>
    %c0_82 = arith.constant 0 : index
    %c0_83 = arith.constant 0 : index
    %114 = vector.load %arg7[%c0_82, %c0_83] : memref<1x256xf32, #tpu.memory_space<vmem>>, vector<1x256xf32>
    %115 = vector.broadcast %114 : vector<1x256xf32> to vector<8x256xf32>
    %116 = arith.addf %113, %115 : vector<8x256xf32>
    %cst_84 = arith.constant 0.000000e+00 : f32
    %117 = vector.broadcast %cst_84 : f32 to vector<8x256xf32>
    %118 = arith.maximumf %116, %117 : vector<8x256xf32>
    %c0_85 = arith.constant 0 : index
    %c0_86 = arith.constant 0 : index
    %119 = vector.load %arg8[%c0_85, %c0_86] : memref<256x128xf32, #tpu.memory_space<vmem>>, vector<256x128xf32>
    %cst_87 = arith.constant dense<0.000000e+00> : vector<8x128xf32>
    %120 = tpu.matmul %118, %119, %cst_87 {dimension_numbers = #tpu.dot_dimension_numbers<[1], [0], [0], [1], [0, 0, 1, 1], [], []>} : vector<8x256xf32>, vector<256x128xf32>, vector<8x128xf32> -> vector<8x128xf32>
    %c0_88 = arith.constant 0 : index
    %c0_89 = arith.constant 0 : index
    %121 = vector.load %arg9[%c0_88, %c0_89] : memref<1x128xf32, #tpu.memory_space<vmem>>, vector<1x128xf32>
    %122 = vector.broadcast %121 : vector<1x128xf32> to vector<8x128xf32>
    %123 = arith.addf %120, %122 : vector<8x128xf32>
    %c0_90 = arith.constant 0 : index
    %c0_91 = arith.constant 0 : index
    %124 = vector.load %arg10[%c0_90, %c0_91] : memref<8x128xf32, #tpu.memory_space<vmem>>, vector<8x128xf32>
    tpu.vector_store %arg10[%c0_90, %c0_91], %123 {strides = array<i32>} : memref<8x128xf32, #tpu.memory_space<vmem>>, vector<8x128xf32>,
    return
  }
  func.func @transform_0(%arg0: i32) -> (i32, i32) {
    %c0_i32 = arith.constant 0 : i32
    %c0_i32_0 = arith.constant 0 : i32
    return %arg0, %c0_i32 : i32, i32
  }
  func.func @transform_1(%arg0: i32) -> (i32, i32, i32) {
    %c0_i32 = arith.constant 0 : i32
    %c0_i32_0 = arith.constant 0 : i32
    %c0_i32_1 = arith.constant 0 : i32
    %c0_i32_2 = arith.constant 0 : i32
    return %c0_i32, %c0_i32_0, %c0_i32_1 : i32, i32, i32
  }
  func.func @transform_2(%arg0: i32) -> (i32, i32) {
    %c0_i32 = arith.constant 0 : i32
    %c0_i32_0 = arith.constant 0 : i32
    %c0_i32_1 = arith.constant 0 : i32
    return %c0_i32, %c0_i32_0 : i32, i32
  }
  func.func @transform_3(%arg0: i32) -> (i32, i32, i32) {
    %c0_i32 = arith.constant 0 : i32
    %c0_i32_0 = arith.constant 0 : i32
    %c0_i32_1 = arith.constant 0 : i32
    %c0_i32_2 = arith.constant 0 : i32
    return %c0_i32, %c0_i32_0, %c0_i32_1 : i32, i32, i32
  }
  func.func @transform_4(%arg0: i32) -> (i32, i32) {
    %c0_i32 = arith.constant 0 : i32
    %c0_i32_0 = arith.constant 0 : i32
    %c0_i32_1 = arith.constant 0 : i32
    return %c0_i32, %c0_i32_0 : i32, i32
  }
  func.func @transform_5(%arg0: i32) -> (i32, i32, i32) {
    %c0_i32 = arith.constant 0 : i32
    %c0_i32_0 = arith.constant 0 : i32
    %c0_i32_1 = arith.constant 0 : i32
    %c0_i32_2 = arith.constant 0 : i32
    return %c0_i32, %c0_i32_0, %c0_i32_1 : i32, i32, i32
  }
  func.func @transform_6(%arg0: i32) -> (i32, i32) {
    %c0_i32 = arith.constant 0 : i32
    %c0_i32_0 = arith.constant 0 : i32
    %c0_i32_1 = arith.constant 0 : i32
    return %c0_i32, %c0_i32_0 : i32, i32
  }
  func.func @transform_7(%arg0: i32) -> (i32, i32) {
    %c0_i32 = arith.constant 0 : i32
    %c0_i32_0 = arith.constant 0 : i32
    %c0_i32_1 = arith.constant 0 : i32
    return %c0_i32, %c0_i32_0 : i32, i32
  }
  func.func @transform_8(%arg0: i32) -> (i32, i32) {
    %c0_i32 = arith.constant 0 : i32
    %c0_i32_0 = arith.constant 0 : i32
    %c0_i32_1 = arith.constant 0 : i32
    return %c0_i32, %c0_i32_0 : i32, i32
  }
  func.func @transform_9(%arg0: i32) -> (i32, i32) {
    %c0_i32 = arith.constant 0 : i32
    %c0_i32_0 = arith.constant 0 : i32
    return %arg0, %c0_i32 : i32, i32
  }
}

</mosaic_0001>

<bundles_post_ra>
// kernel: net_forward.1
= control target key start
LH: loop header
LB: loop body
LE: loop exit
PB: predicated region body
PF: predicated region fallthrough
CT: control target
= control target key end

     0   :  { %14 = vsyncpa [#allocation4], 0  ;;  %s8726_s0 = inlined_call_operand.vmem [shape: f32[256,32], index: 0, kind: input, shape index: {}]   ;;  %s8727_s1 = inlined_call_operand.vmem [shape: f32[5,32,256], index: 1, kind: input, shape index: {}]   ;;  %s8728_s2 = inlined_call_operand.vmem [shape: f32[1,256], index: 2, kind: input, shape index: {}]   ;;  %s8729_s3 = inlined_call_operand.hbm [shape: f32[5,128,256], index: 3, kind: input, shape index: {}]   ;;  %s8730_s4 = inlined_call_operand.vmem [shape: f32[1,256], index: 4, kind: input, shape index: {}]   ;;  %s8731_s5 = inlined_call_operand.hbm [shape: f32[5,128,256], index: 5, kind: input, shape index: {}]   ;;  %s8732_s6 = inlined_call_operand.vmem [shape: f32[1,256], index: 6, kind: input, shape index: {}]   ;;  %s8733_s7 = inlined_call_operand.hbm [shape: f32[256,128], index: 7, kind: input, shape index: {}]   ;;  %s8734_s8 = inlined_call_operand.vmem [shape: f32[1,128], index: 8, kind: input, shape index: {}]   ;;  %s8735_s9 = inlined_call_operand.vmem [shape: f32[8,128], index: 9, kind: output, shape index: {}]  }
   0x1   :  { %15 = vsyncpa [#allocation6], 0  ;;  %s6889_s30 = smov [#allocation5]   ;;  %s6890_s11 = smov [#allocation3]  }
   0x2   :  { %s41_s10 = sshll.u32 %s6889_s30, 4  ;;  %s27_s12 = sshll.u32 %s6890_s11, 4  ;;  %s42_s10 = int_to_ptr.vmem [resolvable:$true] %s41_s10  ;;  %s6947_s12 = int_to_ptr.vmem [resolvable:$true] %s27_s12 }
   0x3   :  { %s6819_s15 = scalar_lea.hbm %s8731_s5, 20480 }
   0x4   :  { %p6820_p0 = scmp.ne.s32.totalorder %s8731_s5, %s6819_s15  ;;  %p6823_p1 = scmp.lt.u32.totalorder %s6819_s15, %s8731_s5 }
   0x6   :  { %p6825_p2 = pnand %p6823_p1, %p6820_p0 }
   0x8   :  { %6828 = shalt.err (!%p6825_p2)
}
   0x9   :  { %s6829_s20 = scalar_lea.vmem %s42_s10, 20480  ;;  %p6834_p4 = scmp.lt.s32.totalorder %s42_s10, %s42_s10 }
   0xa   :  { %p6830_p3 = scmp.ne.s32.totalorder %s42_s10, %s6829_s20  ;;  %p6835_p5 = scmp.lt.s32.totalorder %s6829_s20, %s6829_s20 }
   0xc   :  { %p6836_p6 = por %p6835_p5, %p6834_p4 }
   0xe   :  { %p6837_p7 = pnand %p6836_p6, %p6830_p3 }
  0x10   :  { %6840 = shalt.err (!%p6837_p7)
}
  0x11   :  { %s6891_s21 = smov 256   ;;  %s6892_s22 = smov 16  }
  0x12   :  { %47 = dma.hbm_to_vmem [thread:$0]  %s8731_s5, 20480, %s42_s10, [#allocation6], %s6891_s21, %s6891_s21, %s6892_s22  }
  0x13   :  { %s6841_s27 = scalar_lea.hbm %s8729_s3, 20480 }
  0x14   :  { %p6842_p8 = scmp.ne.s32.totalorder %s8729_s3, %s6841_s27  ;;  %p6845_p9 = scmp.lt.u32.totalorder %s6841_s27, %s8729_s3 }
  0x16   :  { %p6847_p10 = pnand %p6845_p9, %p6842_p8 }
  0x18   :  { %6850 = shalt.err (!%p6847_p10)
}
  0x19   :  { %s6851_s13 = scalar_lea.vmem %s6947_s12, 20480  ;;  %p6856_p12 = scmp.lt.s32.totalorder %s6947_s12, %s6947_s12 }
  0x1a   :  { %p6852_p11 = scmp.ne.s32.totalorder %s6947_s12, %s6851_s13  ;;  %p6857_p13 = scmp.lt.s32.totalorder %s6851_s13, %s6851_s13 }
  0x1c   :  { %p6858_p0 = por %p6857_p13, %p6856_p12 }
  0x1e   :  { %p6859_p1 = pnand %p6858_p0, %p6852_p11 }
  0x20   :  { %6862 = shalt.err (!%p6859_p1)
}
  0x21   :  { %33 = dma.hbm_to_vmem [thread:$0]  %s8729_s3, 20480, %s6947_s12, [#allocation4], %s6891_s21, %s6891_s21, %s6892_s22  }
  0x22   :  { %s6893_s14 = smov [#allocation7]   ;;  %s6863_s18 = scalar_lea.hbm %s8733_s7, 4096 }
  0x23   :  { %s55_s15 = sshll.u32 %s6893_s14, 4  ;;  %p6864_p2 = scmp.ne.s32.totalorder %s8733_s7, %s6863_s18  ;;  %s56_s15 = int_to_ptr.vmem [resolvable:$true] %s55_s15 }
  0x24   :  { %p6867_p3 = scmp.lt.u32.totalorder %s6863_s18, %s8733_s7 }
  0x26   :  { %p6869_p4 = pnand %p6867_p3, %p6864_p2 }
  0x28   :  { %6872 = shalt.err (!%p6869_p4)
}
  0x29   :  { %s6873_s25 = scalar_lea.vmem %s56_s15, 4096  ;;  %p6878_p6 = scmp.lt.s32.totalorder %s56_s15, %s56_s15 }
  0x2a   :  { %p6874_p5 = scmp.ne.s32.totalorder %s56_s15, %s6873_s25  ;;  %p6879_p7 = scmp.lt.s32.totalorder %s6873_s25, %s6873_s25 }
  0x2c   :  { %p6880_p8 = por %p6879_p7, %p6878_p6 }
  0x2e   :  { %p6881_p9 = pnand %p6880_p8, %p6874_p5 }
  0x30   :  { %6884 = shalt.err (!%p6881_p9)
}
  0x31   :  { %s6894_s3 = smov 128   ;;  %s6895_s12 = smov 8  }
  0x32   :  { %61 = dma.hbm_to_vmem [thread:$0]  %s8733_s7, 4096, %s56_s15, [#allocation6], %s6894_s3, %s6894_s3, %s6895_s12  }
  0x33   :  { %6885 = dma.done.wait [#allocation4], 20480  }
  0x34   :  { %6886 = vsyncadd [#allocation4], 4294946816 }
  0x35   :  { %6887 = dma.done.wait [#allocation6], 24576  }
  0x36   :  { %6888 = vsyncadd [#allocation6], 4294942720  ;;  %v8736_v0 = vmov 0.0   ;;  %v5642_v1 = vld [vmem:[%s8727_s1 + $0x48] sm:$0xff]  ;;  %v5644_v2 = vld [vmem:[%s8727_s1 + $0x58] sm:$0xff]  ;;  %vm145_vm0 = vcmask 1046528  }
  0x37   :  { %350 = vmatprep.mubr.f32.mxu0 %v8736_v0  ;;  %446 = vmatprep.mubr.f32.mxu1 %v8736_v0  ;;  %v5641_v3 = vld [vmem:[%s8727_s1 + $0x40] sm:$0xff]  ;;  %v5872_v4 = vpack.c.bf16 %v5644_v2, %v5642_v1  ;;  %v5643_v5 = vld [vmem:[%s8727_s1 + $0x50] sm:$0xff]  ;;  %v5646_v6 = vld [vmem:[%s8727_s1 + $0x68] sm:$0xff]  ;;  %vm220_vm1 = vcmask 261120   ;;  %vm864_vm2 = vcmask 1045504   ;;  %vm1325_vm3 = vcmask 1044480  }
  0x38   :  { %v5648_v7 = vld [vmem:[%s8727_s1 + $0x78] sm:$0xff]  ;;  %v5874_v8 = vpack.c.bf16 %v5643_v5, %v5641_v3  ;;  %v5645_v10 = vld [vmem:[%s8727_s1 + $0x60] sm:$0xff]  ;;  %v5647_v11 = vld [vmem:[%s8727_s1 + $0x70] sm:$0xff]  ;;  %vm1786_vm4 = vcmask 1043456   ;;  %vm3736_vm5 = vcmask 1041408  }
  0x39   :  { %v5876_v9 = vpack.c.bf16 %v5648_v7, %v5646_v6  ;;  %v7019_v12 = vld [vmem:[%s8726_s0] sm:$0xff]  ;;  %5873 = vmatprep.subr.bf16.mxu0 %v5872_v4  ;;  %v7024_v13 = vld [vmem:[%s8726_s0 + $0x8] sm:$0xff]  ;;  %v108_v15 = vld [vmem:[%s8727_s1 + $0x18] sm:$0xff]  ;;  %6264 = vmatprep.subr.bf16.mxu1 %v5872_v4  ;;  %v5878_v16 = vpack.c.bf16 %v5647_v11, %v5645_v10 }
  0x3a   :  { %v106_v14 = vld [vmem:[%s8727_s1 + $0x8] sm:$0xff]  ;;  %5875 = vmatpush1.bf16.msra.mxu0 %v5874_v8  ;;  %v146_v17 = vrot.slane %v7019_v12, 1  ;;  %v147_v18 = vrot.slane %v7024_v13, 1  ;;  %6266 = vmatpush1.bf16.msra.mxu1 %v5874_v8  ;;  %v105_v20 = vld [vmem:[%s8727_s1] sm:$0xff]  ;;  %v107_v21 = vld [vmem:[%s8727_s1 + $0x10] sm:$0xff] }
  0x3b   :  { %5877 = vmatprep.subr.bf16.mxu0 %v5876_v9  ;;  %v5880_v19 = vpack.c.bf16 %v108_v15, %v106_v14  ;;  %v7043_v22 = vld [vmem:[%s8726_s0 + $0x10] sm:$0xff]  ;;  %6265 = vmatprep.subr.bf16.mxu1 %v5876_v9  ;;  %v110_v23 = vld [vmem:[%s8727_s1 + $0x28] sm:$0xff]  ;;  %v112_v24 = vld [vmem:[%s8727_s1 + $0x38] sm:$0xff]  ;;  %v5882_v26 = vpack.c.bf16 %v107_v21, %v105_v20 }
  0x3c   :  { %v148_v25 = vsel %vm145_vm0, %v146_v17, %v147_v18  ;;  %v149_v27 = vrot.slane %v7043_v22, 1  ;;  %v7056_v28 = vld [vmem:[%s8726_s0 + $0x18] sm:$0xff]  ;;  %v5884_v29 = vpack.c.bf16 %v112_v24, %v110_v23  ;;  %v109_v30 = vld [vmem:[%s8727_s1 + $0x20] sm:$0xff]  ;;  %v111_v31 = vld [vmem:[%s8727_s1 + $0x30] sm:$0xff] }
  0x3d   :  { %v5714_v32 = vld [vmem:[%s8727_s1 + $0x88] sm:$0xff]  ;;  %v5716_v33 = vld [vmem:[%s8727_s1 + $0x98] sm:$0xff]  ;;  %v151_v35 = vrot.slane %v7056_v28, 1  ;;  %v5886_v36 = vpack.c.bf16 %v111_v31, %v109_v30  ;;  %v7077_v37 = vld [vmem:[%s8726_s0 + $0x20] sm:$0xff] }
  0x3e   :  { %5879 = vmatpush1.bf16.msra.mxu0 %v5878_v16  ;;  %6267 = vmatpush1.bf16.msra.mxu1 %v5878_v16  ;;  %v150_v34 = vsel %vm145_vm0, %v147_v18, %v149_v27  ;;  %v5888_v38 = vpack.c.bf16 %v5716_v33, %v5714_v32  ;;  %v153_v40 = vrot.slane %v7077_v37, 1  ;;  %v7086_v41 = vld [vmem:[%s8726_s0 + $0x28] sm:$0xff]  ;;  %v7095_v44 = vld [vmem:[%s8726_s0 + $0x30] sm:$0xff]  ;;  %v7104_v47 = vld [vmem:[%s8726_s0 + $0x38] sm:$0xff] }
  0x3f   :  { %5881 = vmatprep.subr.bf16.mxu0 %v5880_v19  ;;  %v152_v39 = vsel %vm145_vm0, %v149_v27, %v151_v35  ;;  %v155_v43 = vrot.slane %v7086_v41, 1  ;;  %v157_v46 = vrot.slane %v7095_v44, 1  ;;  %v159_v49 = vrot.slane %v7104_v47, 1  ;;  %v7113_v50 = vld [vmem:[%s8726_s0 + $0x40] sm:$0xff]  ;;  %v7122_v53 = vld [vmem:[%s8726_s0 + $0x48] sm:$0xff]  ;;  %v7131_v56 = vld [vmem:[%s8726_s0 + $0x50] sm:$0xff] }
  0x40   :  { %v154_v42 = vsel %vm145_vm0, %v151_v35, %v153_v40  ;;  %v161_v52 = vrot.slane %v7113_v50, 1  ;;  %v163_v55 = vrot.slane %v7122_v53, 1  ;;  %v165_v58 = vrot.slane %v7131_v56, 1  ;;  %v7140_v59 = vld [vmem:[%s8726_s0 + $0x58] sm:$0xff]  ;;  %v7149_v62 = vld [vmem:[%s8726_s0 + $0x60] sm:$0xff]  ;;  %v7158_v2 = vld [vmem:[%s8726_s0 + $0x68] sm:$0xff] }
  0x41   :  { %5649 = vmatmul.mubr.msk.f32.vlgmr.msra.gmra.mrb[0].mxu0 %vm220_vm1, %v148_v25  ;;  %v156_v45 = vsel %vm145_vm0, %v153_v40, %v155_v43  ;;  %v158_v48 = vsel %vm145_vm0, %v155_v43, %v157_v46  ;;  %v160_v51 = vsel %vm145_vm0, %v157_v46, %v159_v49  ;;  %v167_v61 = vrot.slane %v7140_v59, 1  ;;  %v7167_v5 = vld [vmem:[%s8726_s0 + $0x70] sm:$0xff]  ;;  %v7176_v8 = vld [vmem:[%s8726_s0 + $0x78] sm:$0xff]  ;;  %v7185_v11 = vld [vmem:[%s8726_s0 + $0x80] sm:$0xff] }
  0x42   :  { %5883 = vmatpush1.bf16.msra.mxu0 %v5882_v26  ;;  %356 = vmatprep.mubr.f32.mxu0 %v8736_v0  ;;  %v162_v54 = vsel %vm145_vm0, %v159_v49, %v161_v52  ;;  %v164_v57 = vsel %vm145_vm0, %v161_v52, %v163_v55  ;;  %v166_v60 = vsel %vm145_vm0, %v163_v55, %v165_v58  ;;  %v169_v1 = vrot.slane %v7149_v62, 1  ;;  %v5713_v17 = vld [vmem:[%s8727_s1 + $0x80] sm:$0xff]  ;;  %v5715_v18 = vld [vmem:[%s8727_s1 + $0x90] sm:$0xff]  ;;  %v5718_v19 = vld [vmem:[%s8727_s1 + $0xa8] sm:$0xff] }
  0x43   :  { %5885 = vmatprep.subr.bf16.mxu0 %v5884_v29  ;;  %v168_v63 = vsel %vm145_vm0, %v165_v58, %v167_v61  ;;  %v171_v4 = vrot.slane %v7158_v2, 1  ;;  %v173_v7 = vrot.slane %v7167_v5, 1  ;;  %v175_v10 = vrot.slane %v7176_v8, 1  ;;  %v5720_v20 = vld [vmem:[%s8727_s1 + $0xb8] sm:$0xff]  ;;  %v5717_v24 = vld [vmem:[%s8727_s1 + $0xa0] sm:$0xff]  ;;  %v5719_v25 = vld [vmem:[%s8727_s1 + $0xb0] sm:$0xff] }
  0x44   :  { %v170_v3 = vsel %vm145_vm0, %v167_v61, %v169_v1  ;;  %v177_v15 = vrot.slane %v7185_v11, 1  ;;  %v5890_v21 = vpack.c.bf16 %v5715_v18, %v5713_v17  ;;  %v5892_v23 = vpack.c.bf16 %v5720_v20, %v5718_v19  ;;  %v5754_v26 = vld [vmem:[%s8727_s1 + $0xc8] sm:$0xff]  ;;  %v5756_v27 = vld [vmem:[%s8727_s1 + $0xd8] sm:$0xff]  ;;  %v7284_v32 = vld [vmem:[%s8726_s0 + $0x90] sm:$0xff] }
  0x45   :  { %5650 = vmatmul.mubr.msk.f32.gmra.mrb[2].mxu0 %vm220_vm1, %v150_v34  ;;  %v172_v6 = vsel %vm145_vm0, %v169_v1, %v171_v4  ;;  %v174_v9 = vsel %vm145_vm0, %v171_v4, %v173_v7  ;;  %v176_v14 = vsel %vm145_vm0, %v173_v7, %v175_v10  ;;  %v5894_v29 = vpack.c.bf16 %v5719_v25, %v5717_v24  ;;  %v7276_v31 = vld [vmem:[%s8726_s0 + $0x88] sm:$0xff]  ;;  %v7292_v33 = vld [vmem:[%s8726_s0 + $0x98] sm:$0xff]  ;;  %v7300_v34 = vld [vmem:[%s8726_s0 + $0xa0] sm:$0xff] }
  0x46   :  { %362 = vmatprep.mubr.f32.mxu0 %v8736_v0  ;;  %5887 = vmatpush1.bf16.msra.mxu0 %v5886_v36  ;;  %v178_v16 = vsel %vm145_vm0, %v175_v10, %v177_v15  ;;  %v5896_v30 = vpack.c.bf16 %v5756_v27, %v5754_v26  ;;  %v7308_v35 = vld [vmem:[%s8726_s0 + $0xa8] sm:$0xff]  ;;  %v7316_v36 = vld [vmem:[%s8726_s0 + $0xb0] sm:$0xff]  ;;  %v7356_v43 = vld [vmem:[%s8726_s0 + $0xd8] sm:$0xff]  ;;  %v866_v52 = vrot.slane %v7024_v13, 2  ;;  %v870_v10 = vrot.slane %v7056_v28, 2 }
  0x47   :  { %5889 = vmatprep.subr.bf16.mxu0 %v5888_v38  ;;  %v7324_v38 = vld [vmem:[%s8726_s0 + $0xb8] sm:$0xff]  ;;  %v7340_v40 = vld [vmem:[%s8726_s0 + $0xc8] sm:$0xff]  ;;  %v5755_v55 = vld [vmem:[%s8727_s1 + $0xd0] sm:$0xff]  ;;  %v872_v18 = vrot.slane %v7077_v37, 2  ;;  %v874_v20 = vrot.slane %v7086_v41, 2  ;;  %v878_v25 = vrot.slane %v7104_v47, 2 }
  0x48   :  { %v7372_v46 = vld [vmem:[%s8726_s0 + $0xe8] sm:$0xff]  ;;  %v7388_v49 = vld [vmem:[%s8726_s0 + $0xf8] sm:$0xff]  ;;  %v5759_v4 = vld [vmem:[%s8727_s1 + $0xf0] sm:$0xff]  ;;  %v880_v27 = vrot.slane %v7113_v50, 2 }
  0x49   :  { %5651 = vmatmul.mubr.msk.f32.gmra.mrb[4].mxu0 %vm220_vm1, %v152_v39  ;;  %v7332_v39 = vld [vmem:[%s8726_s0 + $0xc0] sm:$0xff]  ;;  %v5760_v58 = vld [vmem:[%s8727_s1 + $0xf8] sm:$0xff]  ;;  %v873_v19 = vsel %vm864_vm2, %v870_v10, %v872_v18 }
  0x4a   :  { %368 = vmatprep.mubr.f32.mxu0 %v8736_v0  ;;  %v5796_v7 = vld [vmem:[%s8727_s1 + $0x118] sm:$0xff] }
  0x4d   :  { %5652 = vmatmul.mubr.msk.f32.gmra.mrb[6].mxu0 %vm220_vm1, %v154_v42  ;;  %v7348_v42 = vld [vmem:[%s8726_s0 + $0xd0] sm:$0xff] }
  0x4e   :  { %374 = vmatprep.mubr.f32.mxu0 %v8736_v0 }
  0x51   :  { %5653 = vmatmul.mubr.msk.f32.gmra.mrb[8].mxu0 %vm220_vm1, %v156_v45  ;;  %v7364_v45 = vld [vmem:[%s8726_s0 + $0xe0] sm:$0xff] }
  0x52   :  { %380 = vmatprep.mubr.f32.mxu0 %v8736_v0 }
  0x55   :  { %5654 = vmatmul.mubr.msk.f32.gmra.mrb[10].mxu0 %vm220_vm1, %v158_v48  ;;  %v7380_v48 = vld [vmem:[%s8726_s0 + $0xf0] sm:$0xff] }
  0x56   :  { %386 = vmatprep.mubr.f32.mxu0 %v8736_v0 }
  0x59   :  { %5655 = vmatmul.mubr.msk.f32.gmra.mrb[12].mxu0 %vm220_vm1, %v160_v51  ;;  %v865_v51 = vrot.slane %v7019_v12, 2 }
  0x5a   :  { %392 = vmatprep.mubr.f32.mxu0 %v8736_v0 }
  0x5d   :  { %5656 = vmatmul.mubr.msk.f32.gmra.mrb[14].mxu0 %vm220_vm1, %v162_v54  ;;  %v5753_v54 = vld [vmem:[%s8727_s1 + $0xc0] sm:$0xff] }
  0x5e   :  { %398 = vmatprep.mubr.f32.mxu0 %v8736_v0  ;;  %v5898_v61 = vpack.c.bf16 %v5755_v55, %v5753_v54  ;;  %v886_v55 = vrot.slane %v7140_v59, 2 }
  0x61   :  { %5657 = vmatmul.mubr.msk.f32.gmra.mrb[16].mxu0 %vm220_vm1, %v164_v57  ;;  %v5758_v57 = vld [vmem:[%s8727_s1 + $0xe8] sm:$0xff] }
  0x62   :  { %404 = vmatprep.mubr.f32.mxu0 %v8736_v0  ;;  %v5900_v1 = vpack.c.bf16 %v5760_v58, %v5758_v57  ;;  %v888_v58 = vrot.slane %v7149_v62, 2 }
  0x65   :  { %5658 = vmatmul.mubr.msk.f32.gmra.mrb[18].mxu0 %vm220_vm1, %v166_v60  ;;  %v867_v60 = vsel %vm864_vm2, %v865_v51, %v866_v52 }
  0x66   :  { %410 = vmatprep.mubr.f32.mxu0 %v8736_v0 }
  0x69   :  { %5659 = vmatmul.mubr.msk.f32.gmra.mrb[20].mxu0 %vm220_vm1, %v168_v63  ;;  %v868_v63 = vrot.slane %v7043_v22, 2 }
  0x6a   :  { %416 = vmatprep.mubr.f32.mxu0 %v8736_v0 }
  0x6b   :  { %v871_v17 = vsel %vm864_vm2, %v868_v63, %v870_v10  ;;  %v898_v10 = vrot.slane %v7276_v31, 2 }
  0x6d   :  { %5660 = vmatmul.mubr.msk.f32.gmra.mrb[22].mxu0 %vm220_vm1, %v170_v3  ;;  %v5757_v3 = vld [vmem:[%s8727_s1 + $0xe0] sm:$0xff] }
  0x6e   :  { %422 = vmatprep.mubr.f32.mxu0 %v8736_v0 }
  0x71   :  { %5661 = vmatmul.mubr.msk.f32.gmra.mrb[24].mxu0 %vm220_vm1, %v172_v6  ;;  %v5794_v6 = vld [vmem:[%s8727_s1 + $0x108] sm:$0xff] }
  0x72   :  { %428 = vmatprep.mubr.f32.mxu0 %v8736_v0 }
  0x75   :  { %5662 = vmatmul.mubr.msk.f32.gmra.mrb[26].mxu0 %vm220_vm1, %v174_v9  ;;  %v869_v9 = vsel %vm864_vm2, %v866_v52, %v868_v63  ;;  %v884_v52 = vrot.slane %v7131_v56, 2 }
  0x76   :  { %434 = vmatprep.mubr.f32.mxu0 %v8736_v0 }
  0x77   :  { %v887_v57 = vsel %vm864_vm2, %v884_v52, %v886_v55 }
  0x79   :  { %5663 = vmatmul.mubr.msk.f32.gmra.mrb[28].mxu0 %vm220_vm1, %v176_v14  ;;  %v5902_v14 = vpack.c.bf16 %v5759_v4, %v5757_v3  ;;  %v894_v4 = vrot.slane %v7176_v8, 2 }
  0x7a   :  { %440 = vmatprep.mubr.f32.mxu0 %v8736_v0 }
  0x7d   :  { %5664 = vmatmul.mubr.msk.f32.gmra.mrb[30].mxu0 %vm220_vm1, %v178_v16  ;;  %v5904_v16 = vpack.c.bf16 %v5796_v7, %v5794_v6  ;;  %v896_v7 = vrot.slane %v7185_v11, 2 }
  0x7e   :  { %671 = vmatprep.mubr.f32.mxu0 %v8736_v0 }
  0x81   :  { %5681 = vmatmul.mubr.msk.f32.vlgmr.msra.gmra.mrb[0].mxu0 %vm220_vm1, %v7019_v12 }
  0x82   :  { %5891 = vmatpush1.bf16.msra.mxu0 %v5890_v21  ;;  %677 = vmatprep.mubr.f32.mxu0 %v8736_v0  ;;  %v875_v21 = vsel %vm864_vm2, %v872_v18, %v874_v20  ;;  %v902_v18 = vrot.slane %v7292_v33, 2 }
  0x83   :  { %5893 = vmatprep.subr.bf16.mxu0 %v5892_v23  ;;  %v876_v23 = vrot.slane %v7095_v44, 2 }
  0x85   :  { %5682 = vmatmul.mubr.msk.f32.gmra.mrb[2].mxu0 %vm220_vm1, %v7024_v13  ;;  %v877_v24 = vsel %vm864_vm2, %v874_v20, %v876_v23  ;;  %v879_v26 = vsel %vm864_vm2, %v876_v23, %v878_v25  ;;  %v904_v20 = vrot.slane %v7300_v34, 2  ;;  %v906_v23 = vrot.slane %v7308_v35, 2 }
  0x86   :  { %683 = vmatprep.mubr.f32.mxu0 %v8736_v0  ;;  %5895 = vmatpush1.bf16.msra.mxu0 %v5894_v29  ;;  %v881_v29 = vsel %vm864_vm2, %v878_v25, %v880_v27  ;;  %v908_v25 = vrot.slane %v7316_v36, 2 }
  0x87   :  { %5897 = vmatprep.subr.bf16.mxu0 %v5896_v30  ;;  %v882_v30 = vrot.slane %v7122_v53, 2 }
  0x89   :  { %5683 = vmatmul.mubr.msk.f32.gmra.mrb[4].mxu0 %vm220_vm1, %v7043_v22  ;;  %v883_v51 = vsel %vm864_vm2, %v880_v27, %v882_v30  ;;  %v885_v54 = vsel %vm864_vm2, %v882_v30, %v884_v52  ;;  %v910_v27 = vrot.slane %v7324_v38, 2  ;;  %v912_v30 = vrot.slane %v7332_v39, 2 }
  0x8a   :  { %689 = vmatprep.mubr.f32.mxu0 %v8736_v0  ;;  %v914_v52 = vrot.slane %v7340_v40, 2 }
  0x8d   :  { %5684 = vmatmul.mubr.msk.f32.gmra.mrb[6].mxu0 %vm220_vm1, %v7056_v28 }
  0x8e   :  { %695 = vmatprep.mubr.f32.mxu0 %v8736_v0 }
  0x91   :  { %5685 = vmatmul.mubr.msk.f32.gmra.mrb[8].mxu0 %vm220_vm1, %v7077_v37 }
  0x92   :  { %701 = vmatprep.mubr.f32.mxu0 %v8736_v0 }
  0x95   :  { %5686 = vmatmul.mubr.msk.f32.gmra.mrb[10].mxu0 %vm220_vm1, %v7086_v41 }
  0x96   :  { %707 = vmatprep.mubr.f32.mxu0 %v8736_v0 }
  0x99   :  { %5687 = vmatmul.mubr.msk.f32.gmra.mrb[12].mxu0 %vm220_vm1, %v7095_v44 }
  0x9a   :  { %713 = vmatprep.mubr.f32.mxu0 %v8736_v0 }
  0x9d   :  { %5688 = vmatmul.mubr.msk.f32.gmra.mrb[14].mxu0 %vm220_vm1, %v7104_v47 }
  0x9e   :  { %719 = vmatprep.mubr.f32.mxu0 %v8736_v0 }
  0xa1   :  { %5689 = vmatmul.mubr.msk.f32.gmra.mrb[16].mxu0 %vm220_vm1, %v7113_v50 }
  0xa2   :  { %725 = vmatprep.mubr.f32.mxu0 %v8736_v0 }
  0xa5   :  { %5690 = vmatmul.mubr.msk.f32.gmra.mrb[18].mxu0 %vm220_vm1, %v7122_v53 }
  0xa6   :  { %731 = vmatprep.mubr.f32.mxu0 %v8736_v0 }
  0xa9   :  { %5691 = vmatmul.mubr.msk.f32.gmra.mrb[20].mxu0 %vm220_vm1, %v7131_v56 }
  0xaa   :  { %737 = vmatprep.mubr.f32.mxu0 %v8736_v0 }
  0xad   :  { %5692 = vmatmul.mubr.msk.f32.gmra.mrb[22].mxu0 %vm220_vm1, %v7140_v59 }
  0xae   :  { %743 = vmatprep.mubr.f32.mxu0 %v8736_v0 }
  0xb1   :  { %5693 = vmatmul.mubr.msk.f32.gmra.mrb[24].mxu0 %vm220_vm1, %v7149_v62 }
  0xb2   :  { %749 = vmatprep.mubr.f32.mxu0 %v8736_v0 }
  0xb5   :  { %5694 = vmatmul.mubr.msk.f32.gmra.mrb[26].mxu0 %vm220_vm1, %v7158_v2 }
  0xb6   :  { %755 = vmatprep.mubr.f32.mxu0 %v8736_v0 }
  0xb9   :  { %5695 = vmatmul.mubr.msk.f32.gmra.mrb[28].mxu0 %vm220_vm1, %v7167_v5 }
  0xba   :  { %761 = vmatprep.mubr.f32.mxu0 %v8736_v0 }
  0xbd   :  { %5696 = vmatmul.mubr.msk.f32.gmra.mrb[30].mxu0 %vm220_vm1, %v7176_v8 }
  0xbe   :  { %767 = vmatprep.mubr.f32.mxu0 %v8736_v0 }
  0xc1   :  { %5697 = vmatmul.mubr.msk.f32.gmra.mrb[32].mxu0 %vm220_vm1, %v7185_v11 }
  0xc2   :  { %773 = vmatprep.mubr.f32.mxu0 %v8736_v0 }
  0xc5   :  { %5698 = vmatmul.mubr.msk.f32.gmra.mrb[34].mxu0 %vm220_vm1, %v7276_v31 }
  0xc6   :  { %779 = vmatprep.mubr.f32.mxu0 %v8736_v0 }
  0xc9   :  { %5699 = vmatmul.mubr.msk.f32.gmra.mrb[36].mxu0 %vm220_vm1, %v7284_v32 }
  0xca   :  { %785 = vmatprep.mubr.f32.mxu0 %v8736_v0 }
  0xcd   :  { %5700 = vmatmul.mubr.msk.f32.gmra.mrb[38].mxu0 %vm220_vm1, %v7292_v33 }
  0xce   :  { %791 = vmatprep.mubr.f32.mxu0 %v8736_v0 }
  0xd1   :  { %5701 = vmatmul.mubr.msk.f32.gmra.mrb[40].mxu0 %vm220_vm1, %v7300_v34 }
  0xd2   :  { %797 = vmatprep.mubr.f32.mxu0 %v8736_v0 }
  0xd5   :  { %5702 = vmatmul.mubr.msk.f32.gmra.mrb[42].mxu0 %vm220_vm1, %v7308_v35 }
  0xd6   :  { %803 = vmatprep.mubr.f32.mxu0 %v8736_v0 }
  0xd9   :  { %5703 = vmatmul.mubr.msk.f32.gmra.mrb[44].mxu0 %vm220_vm1, %v7316_v36 }
  0xda   :  { %809 = vmatprep.mubr.f32.mxu0 %v8736_v0 }
  0xdd   :  { %5704 = vmatmul.mubr.msk.f32.gmra.mrb[46].mxu0 %vm220_vm1, %v7324_v38 }
  0xde   :  { %815 = vmatprep.mubr.f32.mxu0 %v8736_v0 }
  0xe1   :  { %5705 = vmatmul.mubr.msk.f32.gmra.mrb[48].mxu0 %vm220_vm1, %v7332_v39 }
  0xe2   :  { %821 = vmatprep.mubr.f32.mxu0 %v8736_v0 }
  0xe5   :  { %5706 = vmatmul.mubr.msk.f32.gmra.mrb[50].mxu0 %vm220_vm1, %v7340_v40 }
  0xe6   :  { %827 = vmatprep.mubr.f32.mxu0 %v8736_v0 }
  0xe9   :  { %5707 = vmatmul.mubr.msk.f32.gmra.mrb[52].mxu0 %vm220_vm1, %v7348_v42 }
  0xea   :  { %833 = vmatprep.mubr.f32.mxu0 %v8736_v0 }
  0xed   :  { %5708 = vmatmul.mubr.msk.f32.gmra.mrb[54].mxu0 %vm220_vm1, %v7356_v43 }
  0xee   :  { %839 = vmatprep.mubr.f32.mxu0 %v8736_v0 }
  0xf1   :  { %5709 = vmatmul.mubr.msk.f32.gmra.mrb[56].mxu0 %vm220_vm1, %v7364_v45 }
  0xf2   :  { %845 = vmatprep.mubr.f32.mxu0 %v8736_v0 }
  0xf5   :  { %5710 = vmatmul.mubr.msk.f32.gmra.mrb[58].mxu0 %vm220_vm1, %v7372_v46 }
  0xf6   :  { %851 = vmatprep.mubr.f32.mxu0 %v8736_v0 }
  0xf9   :  { %5711 = vmatmul.mubr.msk.f32.gmra.mrb[60].mxu0 %vm220_vm1, %v7380_v48 }
  0xfa   :  { %857 = vmatprep.mubr.f32.mxu0 %v8736_v0 }
  0xfd   :  { %5712 = vmatmul.mubr.msk.f32.gmra.mrb[62].mxu0 %vm220_vm1, %v7388_v49 }
  0xfe   :  { %1068 = vmatprep.mubr.f32.mxu0 %v8736_v0 }
 0x101   :  { %5721 = vmatmul.mubr.msk.f32.vlgmr.msra.gmra.mrb[0].mxu0 %vm220_vm1, %v867_v60  ;;  %v889_v60 = vsel %vm864_vm2, %v886_v55, %v888_v58  ;;  %v916_v55 = vrot.slane %v7348_v42, 2 }
 0x102   :  { %5899 = vmatpush1.bf16.msra.mxu0 %v5898_v61  ;;  %1074 = vmatprep.mubr.f32.mxu0 %v8736_v0  ;;  %v890_v61 = vrot.slane %v7158_v2, 2 }
 0x103   :  { %5901 = vmatprep.subr.bf16.mxu0 %v5900_v1  ;;  %v892_v1 = vrot.slane %v7167_v5, 2 }
 0x104   :  { %v891_v63 = vsel %vm864_vm2, %v888_v58, %v890_v61  ;;  %v918_v58 = vrot.slane %v7356_v43, 2 }
 0x105   :  { %5722 = vmatmul.mubr.msk.f32.gmra.mrb[2].mxu0 %vm220_vm1, %v869_v9  ;;  %v893_v3 = vsel %vm864_vm2, %v890_v61, %v892_v1  ;;  %v895_v6 = vsel %vm864_vm2, %v892_v1, %v894_v4  ;;  %v897_v9 = vsel %vm864_vm2, %v894_v4, %v896_v7  ;;  %v920_v61 = vrot.slane %v7364_v45, 2 }
 0x106   :  { %1080 = vmatprep.mubr.f32.mxu0 %v8736_v0  ;;  %5903 = vmatpush1.bf16.msra.mxu0 %v5902_v14  ;;  %v899_v14 = vsel %vm864_vm2, %v896_v7, %v898_v10  ;;  %v922_v1 = vrot.slane %v7372_v46, 2  ;;  %v924_v4 = vrot.slane %v7380_v48, 2  ;;  %v926_v7 = vrot.slane %v7388_v49, 2 }
 0x107   :  { %5905 = vmatprep.subr.bf16.mxu0 %v5904_v16  ;;  %v900_v16 = vrot.slane %v7284_v32, 2 }
 0x109   :  { %5723 = vmatmul.mubr.msk.f32.gmra.mrb[4].mxu0 %vm220_vm1, %v871_v17  ;;  %v901_v17 = vsel %vm864_vm2, %v898_v10, %v900_v16  ;;  %v929_v10 = vsel %vm864_vm2, %v926_v7, 0.0 }
 0x10a   :  { %1086 = vmatprep.mubr.f32.mxu0 %v8736_v0 }
 0x10d   :  { %5724 = vmatmul.mubr.msk.f32.gmra.mrb[6].mxu0 %vm220_vm1, %v873_v19  ;;  %v903_v19 = vsel %vm864_vm2, %v900_v16, %v902_v18  ;;  %v1327_v16 = vrot.slane %v7024_v13, 3 }
 0x10e   :  { %1092 = vmatprep.mubr.f32.mxu0 %v8736_v0 }
 0x111   :  { %5725 = vmatmul.mubr.msk.f32.gmra.mrb[8].mxu0 %vm220_vm1, %v875_v21  ;;  %v905_v21 = vsel %vm864_vm2, %v902_v18, %v904_v20  ;;  %v5795_v18 = vld [vmem:[%s8727_s1 + $0x110] sm:$0xff] }
 0x112   :  { %1098 = vmatprep.mubr.f32.mxu0 %v8736_v0 }
 0x115   :  { %5726 = vmatmul.mubr.msk.f32.gmra.mrb[10].mxu0 %vm220_vm1, %v877_v24  ;;  %v907_v24 = vsel %vm864_vm2, %v904_v20, %v906_v23  ;;  %v5800_v20 = vld [vmem:[%s8727_s1 + $0x138] sm:$0xff] }
 0x116   :  { %1104 = vmatprep.mubr.f32.mxu0 %v8736_v0 }
 0x119   :  { %5727 = vmatmul.mubr.msk.f32.gmra.mrb[12].mxu0 %vm220_vm1, %v879_v26  ;;  %v909_v26 = vsel %vm864_vm2, %v906_v23, %v908_v25 }
 0x11a   :  { %1110 = vmatprep.mubr.f32.mxu0 %v8736_v0 }
 0x11d   :  { %5728 = vmatmul.mubr.msk.f32.gmra.mrb[14].mxu0 %vm220_vm1, %v881_v29  ;;  %v911_v29 = vsel %vm864_vm2, %v908_v25, %v910_v27  ;;  %v5799_v25 = vld [vmem:[%s8727_s1 + $0x130] sm:$0xff] }
 0x11e   :  { %1116 = vmatprep.mubr.f32.mxu0 %v8736_v0 }
 0x121   :  { %5729 = vmatmul.mubr.msk.f32.gmra.mrb[16].mxu0 %vm220_vm1, %v883_v51  ;;  %v913_v51 = vsel %vm864_vm2, %v910_v27, %v912_v30  ;;  %v1331_v27 = vrot.slane %v7056_v28, 3 }
 0x122   :  { %1122 = vmatprep.mubr.f32.mxu0 %v8736_v0 }
 0x125   :  { %5730 = vmatmul.mubr.msk.f32.gmra.mrb[18].mxu0 %vm220_vm1, %v885_v54  ;;  %v915_v54 = vsel %vm864_vm2, %v912_v30, %v914_v52  ;;  %v1333_v30 = vrot.slane %v7077_v37, 3 }
 0x126   :  { %1128 = vmatprep.mubr.f32.mxu0 %v8736_v0 }
 0x129   :  { %5731 = vmatmul.mubr.msk.f32.gmra.mrb[20].mxu0 %vm220_vm1, %v887_v57  ;;  %v917_v57 = vsel %vm864_vm2, %v914_v52, %v916_v55  ;;  %v1335_v52 = vrot.slane %v7086_v41, 3 }
 0x12a   :  { %1134 = vmatprep.mubr.f32.mxu0 %v8736_v0 }
 0x12b   :  { %v1336_v28 = vsel %vm1325_vm3, %v1333_v30, %v1335_v52 }
 0x12d   :  { %5732 = vmatmul.mubr.msk.f32.gmra.mrb[22].mxu0 %vm220_vm1, %v889_v60  ;;  %v919_v60 = vsel %vm864_vm2, %v916_v55, %v918_v58  ;;  %v1339_v55 = vrot.slane %v7104_v47, 3 }
 0x12e   :  { %1140 = vmatprep.mubr.f32.mxu0 %v8736_v0 }
 0x131   :  { %5733 = vmatmul.mubr.msk.f32.gmra.mrb[24].mxu0 %vm220_vm1, %v891_v63  ;;  %v921_v63 = vsel %vm864_vm2, %v918_v58, %v920_v61  ;;  %v1343_v58 = vrot.slane %v7122_v53, 3 }
 0x132   :  { %1146 = vmatprep.mubr.f32.mxu0 %v8736_v0 }
 0x135   :  { %5734 = vmatmul.mubr.msk.f32.gmra.mrb[26].mxu0 %vm220_vm1, %v893_v3  ;;  %v923_v3 = vsel %vm864_vm2, %v920_v61, %v922_v1  ;;  %v1347_v61 = vrot.slane %v7140_v59, 3 }
 0x136   :  { %1152 = vmatprep.mubr.f32.mxu0 %v8736_v0 }
 0x139   :  { %5735 = vmatmul.mubr.msk.f32.gmra.mrb[28].mxu0 %vm220_vm1, %v895_v6  ;;  %v925_v6 = vsel %vm864_vm2, %v922_v1, %v924_v4  ;;  %v1351_v1 = vrot.slane %v7158_v2, 3 }
 0x13a   :  { %1158 = vmatprep.mubr.f32.mxu0 %v8736_v0 }
 0x13d   :  { %5736 = vmatmul.mubr.msk.f32.gmra.mrb[30].mxu0 %vm220_vm1, %v897_v9  ;;  %v927_v9 = vsel %vm864_vm2, %v924_v4, %v926_v7  ;;  %v1355_v4 = vrot.slane %v7176_v8, 3  ;;  %v1359_v7 = vrot.slane %v7276_v31, 3  ;;  %v179_v8 = vrot.slane %v7276_v31, 1 }
 0x13e   :  { %1164 = vmatprep.mubr.f32.mxu0 %v8736_v0 }
 0x141   :  { %5737 = vmatmul.mubr.msk.f32.gmra.mrb[32].mxu0 %vm220_vm1, %v899_v14  ;;  %v1326_v14 = vrot.slane %v7019_v12, 3 }
 0x142   :  { %1170 = vmatprep.mubr.f32.mxu0 %v8736_v0 }
 0x143   :  { %v1328_v12 = vsel %vm1325_vm3, %v1326_v14, %v1327_v16  ;;  %v180_v14 = vsel %vm145_vm0, %v177_v15, %v179_v8 }
 0x144   :  { %5665 = vmatmul.mubr.msk.f32.vlgmr.msra.gmra.mrb[0].mxu1 %vm220_vm1, %v180_v14 }
 0x145   :  { %5738 = vmatmul.mubr.msk.f32.gmra.mrb[34].mxu0 %vm220_vm1, %v901_v17  ;;  %v5793_v17 = vld [vmem:[%s8727_s1 + $0x100] sm:$0xff]  ;;  %452 = vmatprep.mubr.f32.mxu1 %v8736_v0 }
 0x146   :  { %1176 = vmatprep.mubr.f32.mxu0 %v8736_v0  ;;  %v5906_v13 = vpack.c.bf16 %v5795_v18, %v5793_v17  ;;  %v1363_v18 = vrot.slane %v7292_v33, 3 }
 0x149   :  { %5739 = vmatmul.mubr.msk.f32.gmra.mrb[36].mxu0 %vm220_vm1, %v903_v19  ;;  %v5798_v19 = vld [vmem:[%s8727_s1 + $0x128] sm:$0xff] }
 0x14a   :  { %1182 = vmatprep.mubr.f32.mxu0 %v8736_v0  ;;  %v5908_v23 = vpack.c.bf16 %v5800_v20, %v5798_v19  ;;  %v1365_v20 = vrot.slane %v7300_v34, 3 }
 0x14d   :  { %5740 = vmatmul.mubr.msk.f32.gmra.mrb[38].mxu0 %vm220_vm1, %v905_v21  ;;  %v1329_v21 = vrot.slane %v7043_v22, 3 }
 0x14e   :  { %1188 = vmatprep.mubr.f32.mxu0 %v8736_v0 }
 0x14f   :  { %v1332_v22 = vsel %vm1325_vm3, %v1329_v21, %v1331_v27 }
 0x151   :  { %5741 = vmatmul.mubr.msk.f32.gmra.mrb[40].mxu0 %vm220_vm1, %v907_v24  ;;  %v5797_v24 = vld [vmem:[%s8727_s1 + $0x120] sm:$0xff] }
 0x152   :  { %1194 = vmatprep.mubr.f32.mxu0 %v8736_v0 }
 0x155   :  { %5742 = vmatmul.mubr.msk.f32.gmra.mrb[42].mxu0 %vm220_vm1, %v909_v26  ;;  %v1330_v26 = vsel %vm1325_vm3, %v1327_v16, %v1329_v21  ;;  %v181_v16 = vrot.slane %v7284_v32, 1  ;;  %v1366_v21 = vsel %vm1325_vm3, %v1363_v18, %v1365_v20 }
 0x156   :  { %1200 = vmatprep.mubr.f32.mxu0 %v8736_v0 }
 0x157   :  { %v182_v19 = vsel %vm145_vm0, %v179_v8, %v181_v16 }
 0x158   :  { %5666 = vmatmul.mubr.msk.f32.gmra.mrb[2].mxu1 %vm220_vm1, %v182_v19 }
 0x159   :  { %5743 = vmatmul.mubr.msk.f32.gmra.mrb[44].mxu0 %vm220_vm1, %v911_v29  ;;  %v5910_v29 = vpack.c.bf16 %v5799_v25, %v5797_v24  ;;  %458 = vmatprep.mubr.f32.mxu1 %v8736_v0  ;;  %v187_v25 = vrot.slane %v7308_v35, 1 }
 0x15a   :  { %1206 = vmatprep.mubr.f32.mxu0 %v8736_v0 }
 0x15d   :  { %5744 = vmatmul.mubr.msk.f32.gmra.mrb[46].mxu0 %vm220_vm1, %v913_v51  ;;  %v1334_v51 = vsel %vm1325_vm3, %v1331_v27, %v1333_v30  ;;  %v1369_v27 = vrot.slane %v7316_v36, 3 }
 0x15e   :  { %1212 = vmatprep.mubr.f32.mxu0 %v8736_v0 }
 0x161   :  { %5745 = vmatmul.mubr.msk.f32.gmra.mrb[48].mxu0 %vm220_vm1, %v915_v54  ;;  %v1337_v54 = vrot.slane %v7095_v44, 3 }
 0x162   :  { %1218 = vmatprep.mubr.f32.mxu0 %v8736_v0 }
 0x163   :  { %v1338_v37 = vsel %vm1325_vm3, %v1335_v52, %v1337_v54  ;;  %v1340_v41 = vsel %vm1325_vm3, %v1337_v54, %v1339_v55 }
 0x165   :  { %5746 = vmatmul.mubr.msk.f32.gmra.mrb[50].mxu0 %vm220_vm1, %v917_v57  ;;  %v1341_v57 = vrot.slane %v7113_v50, 3 }
 0x166   :  { %1224 = vmatprep.mubr.f32.mxu0 %v8736_v0 }
 0x167   :  { %v1342_v44 = vsel %vm1325_vm3, %v1339_v55, %v1341_v57  ;;  %v1344_v47 = vsel %vm1325_vm3, %v1341_v57, %v1343_v58 }
 0x169   :  { %5747 = vmatmul.mubr.msk.f32.gmra.mrb[52].mxu0 %vm220_vm1, %v919_v60  ;;  %v1345_v60 = vrot.slane %v7131_v56, 3 }
 0x16a   :  { %1230 = vmatprep.mubr.f32.mxu0 %v8736_v0 }
 0x16b   :  { %v1346_v50 = vsel %vm1325_vm3, %v1343_v58, %v1345_v60  ;;  %v1348_v53 = vsel %vm1325_vm3, %v1345_v60, %v1347_v61 }
 0x16d   :  { %5748 = vmatmul.mubr.msk.f32.gmra.mrb[54].mxu0 %vm220_vm1, %v921_v63  ;;  %v1349_v63 = vrot.slane %v7149_v62, 3 }
 0x16e   :  { %1236 = vmatprep.mubr.f32.mxu0 %v8736_v0 }
 0x16f   :  { %v1350_v56 = vsel %vm1325_vm3, %v1347_v61, %v1349_v63  ;;  %v1352_v59 = vsel %vm1325_vm3, %v1349_v63, %v1351_v1 }
 0x171   :  { %5749 = vmatmul.mubr.msk.f32.gmra.mrb[56].mxu0 %vm220_vm1, %v923_v3  ;;  %v1353_v3 = vrot.slane %v7167_v5, 3 }
 0x172   :  { %1242 = vmatprep.mubr.f32.mxu0 %v8736_v0 }
 0x173   :  { %v1354_v62 = vsel %vm1325_vm3, %v1351_v1, %v1353_v3  ;;  %v1356_v2 = vsel %vm1325_vm3, %v1353_v3, %v1355_v4  ;;  %v1381_v3 = vrot.slane %v7364_v45, 3 }
 0x175   :  { %5750 = vmatmul.mubr.msk.f32.gmra.mrb[58].mxu0 %vm220_vm1, %v925_v6  ;;  %v1357_v6 = vrot.slane %v7185_v11, 3  ;;  %v183_v11 = vrot.slane %v7292_v33, 1 }
 0x176   :  { %1248 = vmatprep.mubr.f32.mxu0 %v8736_v0 }
 0x177   :  { %v1358_v5 = vsel %vm1325_vm3, %v1355_v4, %v1357_v6  ;;  %v201_v4 = vrot.slane %v7364_v45, 1 }
 0x179   :  { %5751 = vmatmul.mubr.msk.f32.gmra.mrb[60].mxu0 %vm220_vm1, %v927_v9  ;;  %v1360_v9 = vsel %vm1325_vm3, %v1357_v6, %v1359_v7 }
 0x17a   :  { %1254 = vmatprep.mubr.f32.mxu0 %v8736_v0 }
 0x17d   :  { %5752 = vmatmul.mubr.msk.f32.gmra.mrb[62].mxu0 %vm220_vm1, %v929_v10  ;;  %v1361_v10 = vrot.slane %v7284_v32, 3 }
 0x17e   :  { %1529 = vmatprep.mubr.f32.mxu0 %v8736_v0 }
 0x17f   :  { %v1362_v17 = vsel %vm1325_vm3, %v1359_v7, %v1361_v10  ;;  %v1364_v15 = vsel %vm1325_vm3, %v1361_v10, %v1363_v18  ;;  %v1385_v7 = vrot.slane %v7380_v48, 3  ;;  %v1387_v10 = vrot.slane %v7388_v49, 3 }
 0x181   :  { %5761 = vmatmul.mubr.msk.f32.vlgmr.msra.gmra.mrb[0].mxu0 %vm220_vm1, %v1328_v12  ;;  %v184_v12 = vsel %vm145_vm0, %v181_v16, %v183_v11  ;;  %v207_v16 = vrot.slane %v7388_v49, 1  ;;  %v1390_v18 = vsel %vm1325_vm3, %v1387_v10, 0.0  ;;  %v6796_v49 = vld [vmem:[%s8726_s0] sm:$0xff] }
 0x182   :  { %5907 = vmatpush1.bf16.msra.mxu0 %v5906_v13  ;;  %1535 = vmatprep.mubr.f32.mxu0 %v8736_v0  ;;  %v185_v13 = vrot.slane %v7300_v34, 1  ;;  %v1787_v19 = vrot.slane %v6796_v49, 4  ;;  %v6804_v49 = vld [vmem:[%s8726_s0 + $0x40] sm:$0xff] }
 0x183   :  { %5909 = vmatprep.subr.bf16.mxu0 %v5908_v23  ;;  %5667 = vmatmul.mubr.msk.f32.gmra.mrb[4].mxu1 %vm220_vm1, %v184_v12  ;;  %v1367_v23 = vrot.slane %v7308_v35, 3  ;;  %v2741_v12 = vld [vmem:[#allocation3 + $0x108] sm:$0xff] }
 0x184   :  { %464 = vmatprep.mubr.f32.mxu1 %v8736_v0  ;;  %v186_v24 = vsel %vm145_vm0, %v183_v11, %v185_v13  ;;  %v6797_v11 = vld [vmem:[%s8726_s0 + $0x8] sm:$0xff] }
 0x185   :  { %5762 = vmatmul.mubr.msk.f32.gmra.mrb[2].mxu0 %vm220_vm1, %v1330_v26  ;;  %v1368_v26 = vsel %vm1325_vm3, %v1365_v20, %v1367_v23  ;;  %v1370_v30 = vsel %vm1325_vm3, %v1367_v23, %v1369_v27  ;;  %v210_v20 = vsel %vm145_vm0, %v207_v16, 0.0 }
 0x186   :  { %1541 = vmatprep.mubr.f32.mxu0 %v8736_v0  ;;  %5911 = vmatpush1.bf16.msra.mxu0 %v5910_v29  ;;  %v188_v29 = vsel %vm145_vm0, %v185_v13, %v187_v25  ;;  %v2743_v13 = vld [vmem:[#allocation3 + $0x118] sm:$0xff] }
 0x187   :  { %5668 = vmatmul.mubr.msk.f32.gmra.mrb[6].mxu1 %vm220_vm1, %v186_v24  ;;  %v6798_v24 = vld [vmem:[%s8726_s0 + $0x10] sm:$0xff] }
 0x188   :  { %470 = vmatprep.mubr.f32.mxu1 %v8736_v0 }
 0x189   :  { %5763 = vmatmul.mubr.msk.f32.gmra.mrb[4].mxu0 %vm220_vm1, %v1332_v22  ;;  %v189_v22 = vrot.slane %v7316_v36, 1 }
 0x18a   :  { %1547 = vmatprep.mubr.f32.mxu0 %v8736_v0 }
 0x18b   :  { %5669 = vmatmul.mubr.msk.f32.gmra.mrb[8].mxu1 %vm220_vm1, %v188_v29  ;;  %v190_v52 = vsel %vm145_vm0, %v187_v25, %v189_v22  ;;  %v1790_v25 = vrot.slane %v6798_v24, 4  ;;  %v2745_v29 = vld [vmem:[#allocation3 + $0x128] sm:$0xff]  ;;  %v6807_v24 = vld [vmem:[%s8726_s0 + $0x58] sm:$0xff] }
 0x18c   :  { %476 = vmatprep.mubr.f32.mxu1 %v8736_v0 }
 0x18d   :  { %5764 = vmatmul.mubr.msk.f32.gmra.mrb[6].mxu0 %vm220_vm1, %v1334_v51  ;;  %v1371_v51 = vrot.slane %v7324_v38, 3 }
 0x18e   :  { %1553 = vmatprep.mubr.f32.mxu0 %v8736_v0 }
 0x18f   :  { %5670 = vmatmul.mubr.msk.f32.gmra.mrb[10].mxu1 %vm220_vm1, %v190_v52  ;;  %v1372_v54 = vsel %vm1325_vm3, %v1369_v27, %v1371_v51  ;;  %v2742_v27 = vld [vmem:[#allocation3 + $0x110] sm:$0xff]  ;;  %v2744_v52 = vld [vmem:[#allocation3 + $0x120] sm:$0xff] }
 0x190   :  { %482 = vmatprep.mubr.f32.mxu1 %v8736_v0 }
 0x191   :  { %5765 = vmatmul.mubr.msk.f32.gmra.mrb[8].mxu0 %vm220_vm1, %v1336_v28  ;;  %v191_v28 = vrot.slane %v7324_v38, 1 }
 0x192   :  { %1559 = vmatprep.mubr.f32.mxu0 %v8736_v0 }
 0x193   :  { %v192_v55 = vsel %vm145_vm0, %v189_v22, %v191_v28  ;;  %v2747_v22 = vld [vmem:[#allocation3 + $0x138] sm:$0xff] }
 0x194   :  { %5671 = vmatmul.mubr.msk.f32.gmra.mrb[12].mxu1 %vm220_vm1, %v192_v55 }
 0x195   :  { %5766 = vmatmul.mubr.msk.f32.gmra.mrb[10].mxu0 %vm220_vm1, %v1338_v37  ;;  %v1373_v37 = vrot.slane %v7332_v39, 3  ;;  %488 = vmatprep.mubr.f32.mxu1 %v8736_v0 }
 0x196   :  { %1565 = vmatprep.mubr.f32.mxu0 %v8736_v0 }
 0x197   :  { %v1374_v57 = vsel %vm1325_vm3, %v1371_v51, %v1373_v37  ;;  %v5916_v51 = vpack.c.bf16 %v2747_v22, %v2745_v29 }
 0x199   :  { %5767 = vmatmul.mubr.msk.f32.gmra.mrb[12].mxu0 %vm220_vm1, %v1340_v41  ;;  %v193_v41 = vrot.slane %v7332_v39, 1 }
 0x19a   :  { %1571 = vmatprep.mubr.f32.mxu0 %v8736_v0 }
 0x19b   :  { %v194_v58 = vsel %vm145_vm0, %v191_v28, %v193_v41  ;;  %v2746_v28 = vld [vmem:[#allocation3 + $0x130] sm:$0xff] }
 0x19c   :  { %5672 = vmatmul.mubr.msk.f32.gmra.mrb[14].mxu1 %vm220_vm1, %v194_v58  ;;  %v5918_v55 = vpack.c.bf16 %v2746_v28, %v2744_v52  ;;  %v6810_v28 = vld [vmem:[%s8726_s0 + $0x70] sm:$0xff] }
 0x19d   :  { %5768 = vmatmul.mubr.msk.f32.gmra.mrb[14].mxu0 %vm220_vm1, %v1342_v44  ;;  %v1375_v44 = vrot.slane %v7340_v40, 3  ;;  %494 = vmatprep.mubr.f32.mxu1 %v8736_v0 }
 0x19e   :  { %1577 = vmatprep.mubr.f32.mxu0 %v8736_v0 }
 0x19f   :  { %v1376_v60 = vsel %vm1325_vm3, %v1373_v37, %v1375_v44  ;;  %v2751_v37 = vld [vmem:[#allocation3 + $0x158] sm:$0xff] }
 0x1a1   :  { %5769 = vmatmul.mubr.msk.f32.gmra.mrb[16].mxu0 %vm220_vm1, %v1344_v47  ;;  %v195_v47 = vrot.slane %v7340_v40, 1 }
 0x1a2   :  { %1583 = vmatprep.mubr.f32.mxu0 %v8736_v0 }
 0x1a3   :  { %v196_v61 = vsel %vm145_vm0, %v193_v41, %v195_v47 }
 0x1a4   :  { %5673 = vmatmul.mubr.msk.f32.gmra.mrb[16].mxu1 %vm220_vm1, %v196_v61  ;;  %v2755_v61 = vld [vmem:[#allocation3 + $0x178] sm:$0xff] }
 0x1a5   :  { %5770 = vmatmul.mubr.msk.f32.gmra.mrb[18].mxu0 %vm220_vm1, %v1346_v50  ;;  %v1377_v50 = vrot.slane %v7348_v42, 3  ;;  %500 = vmatprep.mubr.f32.mxu1 %v8736_v0 }
 0x1a6   :  { %1589 = vmatprep.mubr.f32.mxu0 %v8736_v0 }
 0x1a7   :  { %v1378_v63 = vsel %vm1325_vm3, %v1375_v44, %v1377_v50 }
 0x1a9   :  { %5771 = vmatmul.mubr.msk.f32.gmra.mrb[20].mxu0 %vm220_vm1, %v1348_v53  ;;  %v197_v53 = vrot.slane %v7348_v42, 1 }
 0x1aa   :  { %1595 = vmatprep.mubr.f32.mxu0 %v8736_v0 }
 0x1ab   :  { %v198_v1 = vsel %vm145_vm0, %v195_v47, %v197_v53  ;;  %v2748_v47 = vld [vmem:[#allocation3 + $0x140] sm:$0xff] }
 0x1ac   :  { %5674 = vmatmul.mubr.msk.f32.gmra.mrb[18].mxu1 %vm220_vm1, %v198_v1 }
 0x1ad   :  { %5772 = vmatmul.mubr.msk.f32.gmra.mrb[22].mxu0 %vm220_vm1, %v1350_v56  ;;  %v1379_v56 = vrot.slane %v7356_v43, 3  ;;  %506 = vmatprep.mubr.f32.mxu1 %v8736_v0 }
 0x1ae   :  { %1601 = vmatprep.mubr.f32.mxu0 %v8736_v0 }
 0x1af   :  { %v1380_v42 = vsel %vm1325_vm3, %v1377_v50, %v1379_v56  ;;  %v2753_v50 = vld [vmem:[#allocation3 + $0x168] sm:$0xff] }
 0x1b1   :  { %5773 = vmatmul.mubr.msk.f32.gmra.mrb[24].mxu0 %vm220_vm1, %v1352_v59  ;;  %v199_v59 = vrot.slane %v7356_v43, 1  ;;  %v1382_v43 = vsel %vm1325_vm3, %v1379_v56, %v1381_v3  ;;  %v6800_v56 = vld [vmem:[%s8726_s0 + $0x20] sm:$0xff] }
 0x1b2   :  { %1607 = vmatprep.mubr.f32.mxu0 %v8736_v0  ;;  %v1794_v1 = vrot.slane %v6800_v56, 4  ;;  %v1826_v56 = vrot.slane %v7300_v34, 4 }
 0x1b3   :  { %v202_v6 = vsel %vm145_vm0, %v199_v59, %v201_v4 }
 0x1b5   :  { %5774 = vmatmul.mubr.msk.f32.gmra.mrb[26].mxu0 %vm220_vm1, %v1354_v62  ;;  %v200_v62 = vsel %vm145_vm0, %v197_v53, %v199_v59  ;;  %v5924_v59 = vpack.c.bf16 %v2755_v61, %v2753_v50  ;;  %v1822_v61 = vrot.slane %v7284_v32, 4 }
 0x1b6   :  { %1613 = vmatprep.mubr.f32.mxu0 %v8736_v0  ;;  %5675 = vmatmul.mubr.msk.f32.gmra.mrb[20].mxu1 %vm220_vm1, %v200_v62  ;;  %v2757_v62 = vld [vmem:[#allocation3 + $0x188] sm:$0xff] }
 0x1b7   :  { %512 = vmatprep.mubr.f32.mxu1 %v8736_v0 }
 0x1b9   :  { %5775 = vmatmul.mubr.msk.f32.gmra.mrb[28].mxu0 %vm220_vm1, %v1356_v2  ;;  %v1383_v2 = vrot.slane %v7372_v46, 3 }
 0x1ba   :  { %1619 = vmatprep.mubr.f32.mxu0 %v8736_v0  ;;  %5676 = vmatmul.mubr.msk.f32.gmra.mrb[22].mxu1 %vm220_vm1, %v202_v6  ;;  %v6801_v6 = vld [vmem:[%s8726_s0 + $0x28] sm:$0xff] }
 0x1bb   :  { %518 = vmatprep.mubr.f32.mxu1 %v8736_v0  ;;  %v1384_v45 = vsel %vm1325_vm3, %v1381_v3, %v1383_v2  ;;  %v2754_v3 = vld [vmem:[#allocation3 + $0x170] sm:$0xff] }
 0x1bd   :  { %5776 = vmatmul.mubr.msk.f32.gmra.mrb[30].mxu0 %vm220_vm1, %v1358_v5  ;;  %v203_v5 = vrot.slane %v7372_v46, 1  ;;  %v1386_v46 = vsel %vm1325_vm3, %v1383_v2, %v1385_v7 }
 0x1be   :  { %1625 = vmatprep.mubr.f32.mxu0 %v8736_v0 }
 0x1bf   :  { %v204_v8 = vsel %vm145_vm0, %v201_v4, %v203_v5  ;;  %v2759_v4 = vld [vmem:[#allocation3 + $0x198] sm:$0xff] }
 0x1c0   :  { %5677 = vmatmul.mubr.msk.f32.gmra.mrb[24].mxu1 %vm220_vm1, %v204_v8  ;;  %v2758_v8 = vld [vmem:[#allocation3 + $0x190] sm:$0xff] }
 0x1c1   :  { %5777 = vmatmul.mubr.msk.f32.gmra.mrb[32].mxu0 %vm220_vm1, %v1360_v9  ;;  %524 = vmatprep.mubr.f32.mxu1 %v8736_v0  ;;  %v205_v9 = vrot.slane %v7380_v48, 1  ;;  %v1388_v48 = vsel %vm1325_vm3, %v1385_v7, %v1387_v10  ;;  %v2756_v7 = vld [vmem:[#allocation3 + $0x180] sm:$0xff]  ;;  %v6802_v10 = vld [vmem:[%s8726_s0 + $0x30] sm:$0xff] }
 0x1c2   :  { %1631 = vmatprep.mubr.f32.mxu0 %v8736_v0 }
 0x1c3   :  { %v206_v14 = vsel %vm145_vm0, %v203_v5, %v205_v9  ;;  %v1796_v5 = vrot.slane %v6801_v6, 4  ;;  %v2762_v6 = vld [vmem:[#allocation3 + $0x1b0] sm:$0xff] }
 0x1c4   :  { %5678 = vmatmul.mubr.msk.f32.gmra.mrb[26].mxu1 %vm220_vm1, %v206_v14  ;;  %v1798_v14 = vrot.slane %v6802_v10, 4 }
 0x1c5   :  { %5778 = vmatmul.mubr.msk.f32.gmra.mrb[34].mxu0 %vm220_vm1, %v1362_v17  ;;  %530 = vmatprep.mubr.f32.mxu1 %v8736_v0  ;;  %v208_v17 = vsel %vm145_vm0, %v205_v9, %v207_v16  ;;  %v5930_v9 = vpack.c.bf16 %v2758_v8, %v2756_v7  ;;  %v2767_v8 = vld [vmem:[#allocation3 + $0x1d8] sm:$0xff] }
 0x1c6   :  { %1637 = vmatprep.mubr.f32.mxu0 %v8736_v0  ;;  %v1799_v16 = vsel %vm1786_vm4, %v1796_v5, %v1798_v14 }
 0x1c8   :  { %5679 = vmatmul.mubr.msk.f32.gmra.mrb[28].mxu1 %vm220_vm1, %v208_v17 }
 0x1c9   :  { %5779 = vmatmul.mubr.msk.f32.gmra.mrb[36].mxu0 %vm220_vm1, %v1364_v15  ;;  %536 = vmatprep.mubr.f32.mxu1 %v8736_v0  ;;  %v1788_v15 = vrot.slane %v6797_v11, 4 }
 0x1ca   :  { %1643 = vmatprep.mubr.f32.mxu0 %v8736_v0 }
 0x1cb   :  { %v1789_v23 = vsel %vm1786_vm4, %v1787_v19, %v1788_v15  ;;  %v1791_v41 = vsel %vm1786_vm4, %v1788_v15, %v1790_v25  ;;  %v1802_v19 = vrot.slane %v6804_v49, 4  ;;  %v6805_v15 = vld [vmem:[%s8726_s0 + $0x48] sm:$0xff]  ;;  %v2771_v49 = vld [vmem:[#allocation3 + $0x1f8] sm:$0xff] }
 0x1cc   :  { %5680 = vmatmul.mubr.msk.f32.gmra.mrb[30].mxu1 %vm220_vm1, %v210_v20  ;;  %v1804_v20 = vrot.slane %v6805_v15, 4 }
 0x1cd   :  { %5780 = vmatmul.mubr.msk.f32.gmra.mrb[38].mxu0 %vm220_vm1, %v1366_v21  ;;  %v2740_v21 = vld [vmem:[#allocation3 + $0x100] sm:$0xff]  ;;  %2836 = vmatprep.mubr.f32.mxu1 %v8736_v0 }
 0x1ce   :  { %1649 = vmatprep.mubr.f32.mxu0 %v8736_v0 }
 0x1d1   :  { %5781 = vmatmul.mubr.msk.f32.gmra.mrb[40].mxu0 %vm220_vm1, %v1368_v26  ;;  %v5912_v26 = vpack.c.bf16 %v2743_v13, %v2741_v12  ;;  %v1805_v12 = vsel %vm1786_vm4, %v1802_v19, %v1804_v20  ;;  %v6806_v13 = vld [vmem:[%s8726_s0 + $0x50] sm:$0xff] }
 0x1d2   :  { %1655 = vmatprep.mubr.f32.mxu0 %v8736_v0 }
 0x1d3   :  { %5913 = vmatprep.subr.bf16.mxu1 %v5912_v26 }
 0x1d5   :  { %5782 = vmatmul.mubr.msk.f32.gmra.mrb[42].mxu0 %vm220_vm1, %v1370_v30  ;;  %v5914_v30 = vpack.c.bf16 %v2742_v27, %v2740_v21  ;;  %v1806_v21 = vrot.slane %v6806_v13, 4  ;;  %v6808_v27 = vld [vmem:[%s8726_s0 + $0x60] sm:$0xff]  ;;  %v2770_v13 = vld [vmem:[#allocation3 + $0x1f0] sm:$0xff] }
 0x1d6   :  { %1661 = vmatprep.mubr.f32.mxu0 %v8736_v0  ;;  %v1810_v29 = vrot.slane %v6808_v27, 4  ;;  %v6817_v27 = vld [vmem:[%s8726_s0 + $0xf0] sm:$0xff] }
 0x1d7   :  { %5915 = vmatpush1.bf16.msra.mxu1 %v5914_v30  ;;  %v6809_v30 = vld [vmem:[%s8726_s0 + $0x68] sm:$0xff] }
 0x1d8   :  { %5917 = vmatprep.subr.bf16.mxu1 %v5916_v51  ;;  %v1812_v51 = vrot.slane %v6809_v30, 4  ;;  %v6818_v30 = vld [vmem:[%s8726_s0 + $0xf8] sm:$0xff] }
 0x1d9   :  { %5783 = vmatmul.mubr.msk.f32.gmra.mrb[44].mxu0 %vm220_vm1, %v1372_v54  ;;  %v2749_v54 = vld [vmem:[#allocation3 + $0x148] sm:$0xff] }
 0x1da   :  { %1667 = vmatprep.mubr.f32.mxu0 %v8736_v0  ;;  %v5920_v58 = vpack.c.bf16 %v2751_v37, %v2749_v54  ;;  %v1813_v52 = vsel %vm1786_vm4, %v1810_v29, %v1812_v51  ;;  %v1814_v54 = vrot.slane %v6810_v28, 4  ;;  %v2580_v28 = vld [vmem:[#allocation3 + $0x8] sm:$0xff] }
 0x1db   :  { %5919 = vmatpush1.bf16.msra.mxu1 %v5918_v55  ;;  %v6811_v55 = vld [vmem:[%s8726_s0 + $0x78] sm:$0xff] }
 0x1dc   :  { %5921 = vmatprep.subr.bf16.mxu1 %v5920_v58  ;;  %v1815_v37 = vsel %vm1786_vm4, %v1812_v51, %v1814_v54  ;;  %v1848_v51 = vrot.slane %v6818_v30, 4 }
 0x1dd   :  { %5784 = vmatmul.mubr.msk.f32.gmra.mrb[46].mxu0 %vm220_vm1, %v1374_v57  ;;  %v6799_v57 = vld [vmem:[%s8726_s0 + $0x18] sm:$0xff] }
 0x1de   :  { %1673 = vmatprep.mubr.f32.mxu0 %v8736_v0  ;;  %v1792_v44 = vrot.slane %v6799_v57, 4 }
 0x1e0   :  { %v1795_v2 = vsel %vm1786_vm4, %v1792_v44, %v1794_v1 }
 0x1e1   :  { %5785 = vmatmul.mubr.msk.f32.gmra.mrb[48].mxu0 %vm220_vm1, %v1376_v60  ;;  %v2750_v60 = vld [vmem:[#allocation3 + $0x150] sm:$0xff] }
 0x1e2   :  { %1679 = vmatprep.mubr.f32.mxu0 %v8736_v0  ;;  %v5922_v53 = vpack.c.bf16 %v2750_v60, %v2748_v47  ;;  %v1820_v60 = vrot.slane %v7276_v31, 4 }
 0x1e4   :  { %5923 = vmatpush1.bf16.msra.mxu1 %v5922_v53  ;;  %v1823_v53 = vsel %vm1786_vm4, %v1820_v60, %v1822_v61 }
 0x1e5   :  { %5786 = vmatmul.mubr.msk.f32.gmra.mrb[50].mxu0 %vm220_vm1, %v1378_v63  ;;  %v1793_v63 = vsel %vm1786_vm4, %v1790_v25, %v1792_v44  ;;  %5925 = vmatprep.subr.bf16.mxu1 %v5924_v59  ;;  %v1808_v25 = vrot.slane %v6807_v24, 4  ;;  %v6812_v44 = vld [vmem:[%s8726_s0 + $0x80] sm:$0xff]  ;;  %v1830_v59 = vrot.slane %v7316_v36, 4  ;;  %v6816_v24 = vld [vmem:[%s8726_s0 + $0xe8] sm:$0xff] }
 0x1e6   :  { %1685 = vmatprep.mubr.f32.mxu0 %v8736_v0  ;;  %v1818_v58 = vrot.slane %v6812_v44, 4 }
 0x1e7   :  { %v1809_v26 = vsel %vm1786_vm4, %v1806_v21, %v1808_v25  ;;  %v1811_v22 = vsel %vm1786_vm4, %v1808_v25, %v1810_v29  ;;  %v1844_v25 = vrot.slane %v6816_v24, 4  ;;  %v1846_v29 = vrot.slane %v6817_v27, 4 }
 0x1e8   :  { %v1821_v50 = vsel %vm1786_vm4, %v1818_v58, %v1820_v60 }
 0x1e9   :  { %5787 = vmatmul.mubr.msk.f32.gmra.mrb[52].mxu0 %vm220_vm1, %v1380_v42  ;;  %v2752_v42 = vld [vmem:[#allocation3 + $0x160] sm:$0xff] }
 0x1ea   :  { %1691 = vmatprep.mubr.f32.mxu0 %v8736_v0 }
 0x1ed   :  { %5788 = vmatmul.mubr.msk.f32.gmra.mrb[54].mxu0 %vm220_vm1, %v1382_v43  ;;  %v5926_v43 = vpack.c.bf16 %v2754_v3, %v2752_v42  ;;  %v1832_v42 = vrot.slane %v7324_v38, 4  ;;  %v1834_v3 = vrot.slane %v7332_v39, 4  ;;  %v6813_v39 = vld [vmem:[%s8726_s0 + $0xd0] sm:$0xff] }
 0x1ee   :  { %1697 = vmatprep.mubr.f32.mxu0 %v8736_v0 }
 0x1ef   :  { %5927 = vmatpush1.bf16.msra.mxu1 %v5926_v43  ;;  %v1835_v36 = vsel %vm1786_vm4, %v1832_v42, %v1834_v3  ;;  %v2763_v43 = vld [vmem:[#allocation3 + $0x1b8] sm:$0xff] }
 0x1f1   :  { %5789 = vmatmul.mubr.msk.f32.gmra.mrb[56].mxu0 %vm220_vm1, %v1384_v45  ;;  %v5928_v45 = vpack.c.bf16 %v2759_v4, %v2757_v62  ;;  %v1836_v62 = vrot.slane %v7340_v40, 4  ;;  %v2761_v4 = vld [vmem:[#allocation3 + $0x1a8] sm:$0xff] }
 0x1f2   :  { %1703 = vmatprep.mubr.f32.mxu0 %v8736_v0  ;;  %v5932_v38 = vpack.c.bf16 %v2763_v43, %v2761_v4  ;;  %v2765_v40 = vld [vmem:[#allocation3 + $0x1c8] sm:$0xff] }
 0x1f3   :  { %5929 = vmatprep.subr.bf16.mxu1 %v5928_v45  ;;  %v1838_v45 = vrot.slane %v6813_v39, 4 }
 0x1f4   :  { %5931 = vmatpush1.bf16.msra.mxu1 %v5930_v9 }
 0x1f5   :  { %5790 = vmatmul.mubr.msk.f32.gmra.mrb[58].mxu0 %vm220_vm1, %v1386_v46  ;;  %v1797_v46 = vsel %vm1786_vm4, %v1794_v1, %v1796_v5  ;;  %v1828_v1 = vrot.slane %v7308_v35, 4  ;;  %v1833_v35 = vsel %vm1786_vm4, %v1830_v59, %v1832_v42  ;;  %v1837_v5 = vsel %vm1786_vm4, %v1834_v3, %v1836_v62  ;;  %5933 = vmatprep.subr.bf16.mxu1 %v5932_v38 }
 0x1f6   :  { %1709 = vmatprep.mubr.f32.mxu0 %v8736_v0  ;;  %v1839_v9 = vsel %vm1786_vm4, %v1836_v62, %v1838_v45 }
 0x1f7   :  { %v1831_v34 = vsel %vm1786_vm4, %v1828_v1, %v1830_v59 }
 0x1f9   :  { %5791 = vmatmul.mubr.msk.f32.gmra.mrb[60].mxu0 %vm220_vm1, %v1388_v48  ;;  %v6803_v48 = vld [vmem:[%s8726_s0 + $0x38] sm:$0xff] }
 0x1fa   :  { %1715 = vmatprep.mubr.f32.mxu0 %v8736_v0  ;;  %v1800_v17 = vrot.slane %v6803_v48, 4  ;;  %v2766_v48 = vld [vmem:[#allocation3 + $0x1d0] sm:$0xff] }
 0x1fc   :  { %v1803_v11 = vsel %vm1786_vm4, %v1800_v17, %v1802_v19 }
 0x1fd   :  { %5792 = vmatmul.mubr.msk.f32.gmra.mrb[62].mxu0 %vm220_vm1, %v1390_v18  ;;  %v1801_v18 = vsel %vm1786_vm4, %v1798_v14, %v1800_v17  ;;  %v5936_v14 = vpack.c.bf16 %v2767_v8, %v2765_v40 }
 0x1fe   :  { %1990 = vmatprep.mubr.f32.mxu0 %v8736_v0 }
 0x201   :  { %5801 = vmatmul.mubr.msk.f32.vlgmr.msra.gmra.mrb[0].mxu0 %vm220_vm1, %v1789_v23  ;;  %v1807_v23 = vsel %vm1786_vm4, %v1804_v20, %v1806_v21 }
 0x202   :  { %1996 = vmatprep.mubr.f32.mxu0 %v8736_v0 }
 0x205   :  { %5802 = vmatmul.mubr.msk.f32.gmra.mrb[2].mxu0 %vm220_vm1, %v1791_v41  ;;  %v1816_v41 = vrot.slane %v6811_v55, 4  ;;  %v1851_v55 = vsel %vm1786_vm4, %v1848_v51, 0.0 }
 0x206   :  { %2002 = vmatprep.mubr.f32.mxu0 %v8736_v0 }
 0x207   :  { %v1817_v57 = vsel %vm1786_vm4, %v1814_v54, %v1816_v41  ;;  %v1819_v47 = vsel %vm1786_vm4, %v1816_v41, %v1818_v58  ;;  %v2582_v54 = vld [vmem:[#allocation3 + $0x18] sm:$0xff] }
 0x209   :  { %5803 = vmatmul.mubr.msk.f32.gmra.mrb[4].mxu0 %vm220_vm1, %v1793_v63  ;;  %v1824_v63 = vrot.slane %v7292_v33, 4  ;;  %v1829_v33 = vsel %vm1786_vm4, %v1826_v56, %v1828_v1 }
 0x20a   :  { %2008 = vmatprep.mubr.f32.mxu0 %v8736_v0 }
 0x20b   :  { %v1825_v31 = vsel %vm1786_vm4, %v1822_v61, %v1824_v63  ;;  %v1827_v32 = vsel %vm1786_vm4, %v1824_v63, %v1826_v56 }
 0x20d   :  { %5804 = vmatmul.mubr.msk.f32.gmra.mrb[6].mxu0 %vm220_vm1, %v1795_v2  ;;  %v2760_v2 = vld [vmem:[#allocation3 + $0x1a0] sm:$0xff] }
 0x20e   :  { %2014 = vmatprep.mubr.f32.mxu0 %v8736_v0  ;;  %v5934_v7 = vpack.c.bf16 %v2762_v6, %v2760_v2  ;;  %v2249_v6 = vlaneseq }
 0x210   :  { %5935 = vmatpush1.bf16.msra.mxu1 %v5934_v7 }
 0x211   :  { %5805 = vmatmul.mubr.msk.f32.gmra.mrb[8].mxu0 %vm220_vm1, %v1797_v46  ;;  %v6814_v46 = vld [vmem:[%s8726_s0 + $0xd8] sm:$0xff]  ;;  %5937 = vmatprep.subr.bf16.mxu1 %v5936_v14 }
 0x212   :  { %2020 = vmatprep.mubr.f32.mxu0 %v8736_v0  ;;  %v1840_v10 = vrot.slane %v6814_v46, 4 }
 0x214   :  { %v1841_v19 = vsel %vm1786_vm4, %v1838_v45, %v1840_v10  ;;  %v2250_v45 = vshrl.u32 %v2249_v6, 7 }
 0x215   :  { %5806 = vmatmul.mubr.msk.f32.gmra.mrb[10].mxu0 %vm220_vm1, %v1799_v16  ;;  %v2764_v16 = vld [vmem:[#allocation3 + $0x1c0] sm:$0xff] }
 0x216   :  { %2026 = vmatprep.mubr.f32.mxu0 %v8736_v0  ;;  %v5938_v17 = vpack.c.bf16 %v2766_v48, %v2764_v16  ;;  %v7990_v8 = vsub.s32 0, %v2250_v45  ;;  %v7995_v46 = vsub.s32 1, %v2250_v45 }
 0x217   :  { %v7930_v41 = vpop.f32.mrb[0].mxu1 }
 0x218   :  { %5939 = vmatpush1.bf16.msra.mxu1 %v5938_v17  ;;  %8758 = vst [vmem:[#allocation10_spill] sm:$0xff] %v7990_v8  ;;  %8759 = vst [vmem:[#allocation11_spill] sm:$0xff] %v7995_v46 }
 0x219   :  { %5807 = vmatmul.mubr.msk.f32.gmra.mrb[12].mxu0 %vm220_vm1, %v1801_v18  ;;  %v2769_v18 = vld [vmem:[#allocation3 + $0x1e8] sm:$0xff] }
 0x21a   :  { %2032 = vmatprep.mubr.f32.mxu0 %v8736_v0  ;;  %v5940_v20 = vpack.c.bf16 %v2771_v49, %v2769_v18 }
 0x21c   :  { %5941 = vmatprep.subr.bf16.mxu1 %v5940_v20 }
 0x21d   :  { %5808 = vmatmul.mubr.msk.f32.gmra.mrb[14].mxu0 %vm220_vm1, %v1803_v11  ;;  %v6815_v11 = vld [vmem:[%s8726_s0 + $0xe0] sm:$0xff] }
 0x21e   :  { %2038 = vmatprep.mubr.f32.mxu0 %v8736_v0  ;;  %v1842_v15 = vrot.slane %v6815_v11, 4 }
 0x221   :  { %5809 = vmatmul.mubr.msk.f32.gmra.mrb[16].mxu0 %vm220_vm1, %v1805_v12  ;;  %v2768_v12 = vld [vmem:[#allocation3 + $0x1e0] sm:$0xff] }
 0x222   :  { %2044 = vmatprep.mubr.f32.mxu0 %v8736_v0  ;;  %v5942_v21 = vpack.c.bf16 %v2770_v13, %v2768_v12 }
 0x224   :  { %5943 = vmatpush1.bf16.msra.mxu1 %v5942_v21 }
 0x225   :  { %5810 = vmatmul.mubr.msk.f32.gmra.mrb[18].mxu0 %vm220_vm1, %v1807_v23  ;;  %v1843_v23 = vsel %vm1786_vm4, %v1840_v10, %v1842_v15 }
 0x226   :  { %2050 = vmatprep.mubr.f32.mxu0 %v8736_v0 }
 0x229   :  { %5811 = vmatmul.mubr.msk.f32.gmra.mrb[20].mxu0 %vm220_vm1, %v1809_v26  ;;  %v1845_v26 = vsel %vm1786_vm4, %v1842_v15, %v1844_v25 }
 0x22a   :  { %2056 = vmatprep.mubr.f32.mxu0 %v8736_v0 }
 0x22d   :  { %5812 = vmatmul.mubr.msk.f32.gmra.mrb[22].mxu0 %vm220_vm1, %v1811_v22  ;;  %v1847_v22 = vsel %vm1786_vm4, %v1844_v25, %v1846_v29 }
 0x22e   :  { %2062 = vmatprep.mubr.f32.mxu0 %v8736_v0 }
 0x231   :  { %5813 = vmatmul.mubr.msk.f32.gmra.mrb[24].mxu0 %vm220_vm1, %v1813_v52  ;;  %v1849_v52 = vsel %vm1786_vm4, %v1846_v29, %v1848_v51 }
 0x232   :  { %2068 = vmatprep.mubr.f32.mxu0 %v8736_v0 }
 0x235   :  { %5814 = vmatmul.mubr.msk.f32.gmra.mrb[26].mxu0 %vm220_vm1, %v1815_v37  ;;  %v5944_v37 = vpack.c.bf16 %v2582_v54, %v2580_v28 }
 0x236   :  { %2074 = vmatprep.mubr.f32.mxu0 %v8736_v0 }
 0x237   :  { %5945 = vmatprep.subr.bf16.mxu1 %v5944_v37 }
 0x239   :  { %5815 = vmatmul.mubr.msk.f32.gmra.mrb[28].mxu0 %vm220_vm1, %v1817_v57  ;;  %v7932_v57 = vpop.f32.mrb[1].mxu1 }
 0x23a   :  { %2080 = vmatprep.mubr.f32.mxu0 %v8736_v0  ;;  %v7934_v44 = vpop.f32.mrb[2].mxu1 }
 0x23b   :  { %v7936_v58 = vpop.f32.mrb[3].mxu1 }
 0x23d   :  { %5816 = vmatmul.mubr.msk.f32.gmra.mrb[30].mxu0 %vm220_vm1, %v1819_v47 }
 0x23e   :  { %2086 = vmatprep.mubr.f32.mxu0 %v8736_v0 }
 0x241   :  { %5817 = vmatmul.mubr.msk.f32.gmra.mrb[32].mxu0 %vm220_vm1, %v1821_v50 }
 0x242   :  { %2092 = vmatprep.mubr.f32.mxu0 %v8736_v0 }
 0x245   :  { %5818 = vmatmul.mubr.msk.f32.gmra.mrb[34].mxu0 %vm220_vm1, %v1823_v53 }
 0x246   :  { %2098 = vmatprep.mubr.f32.mxu0 %v8736_v0 }
 0x249   :  { %5819 = vmatmul.mubr.msk.f32.gmra.mrb[36].mxu0 %vm220_vm1, %v1825_v31 }
 0x24a   :  { %2104 = vmatprep.mubr.f32.mxu0 %v8736_v0 }
 0x24d   :  { %5820 = vmatmul.mubr.msk.f32.gmra.mrb[38].mxu0 %vm220_vm1, %v1827_v32 }
 0x24e   :  { %2110 = vmatprep.mubr.f32.mxu0 %v8736_v0 }
 0x251   :  { %5821 = vmatmul.mubr.msk.f32.gmra.mrb[40].mxu0 %vm220_vm1, %v1829_v33 }
 0x252   :  { %2116 = vmatprep.mubr.f32.mxu0 %v8736_v0 }
 0x255   :  { %5822 = vmatmul.mubr.msk.f32.gmra.mrb[42].mxu0 %vm220_vm1, %v1831_v34 }
 0x256   :  { %2122 = vmatprep.mubr.f32.mxu0 %v8736_v0  ;;  %v7938_v47 = vpop.f32.mrb[4].mxu1 }
 0x257   :  { %v7940_v60 = vpop.f32.mrb[5].mxu1 }
 0x259   :  { %5823 = vmatmul.mubr.msk.f32.gmra.mrb[44].mxu0 %vm220_vm1, %v1833_v35 }
 0x25a   :  { %2128 = vmatprep.mubr.f32.mxu0 %v8736_v0  ;;  %v7942_v50 = vpop.f32.mrb[6].mxu1 }
 0x25b   :  { %v7944_v61 = vpop.f32.mrb[7].mxu1 }
 0x25d   :  { %5824 = vmatmul.mubr.msk.f32.gmra.mrb[46].mxu0 %vm220_vm1, %v1835_v36 }
 0x25e   :  { %2134 = vmatprep.mubr.f32.mxu0 %v8736_v0  ;;  %v7946_v53 = vpop.f32.mrb[8].mxu1 }
 0x25f   :  { %v7948_v63 = vpop.f32.mrb[9].mxu1 }
 0x261   :  { %5825 = vmatmul.mubr.msk.f32.gmra.mrb[48].mxu0 %vm220_vm1, %v1837_v5 }
 0x262   :  { %2140 = vmatprep.mubr.f32.mxu0 %v8736_v0  ;;  %v7950_v31 = vpop.f32.mrb[10].mxu1 }
 0x263   :  { %v7952_v56 = vpop.f32.mrb[11].mxu1 }
 0x265   :  { %5826 = vmatmul.mubr.msk.f32.gmra.mrb[50].mxu0 %vm220_vm1, %v1839_v9  ;;  %v2247_v9 = vld [vmem:[%s8728_s2] sm:$0x3] }
 0x266   :  { %2146 = vmatprep.mubr.f32.mxu0 %v8736_v0  ;;  %v8002_v16 = vrot.slane %v2247_v9, %v7990_v8  ;;  %v8005_v48 = vrot.slane %v2247_v9, %v7995_v46 }
 0x267   :  { %v7954_v32 = vpop.f32.mrb[12].mxu1 }
 0x268   :  { %v7956_v1 = vpop.f32.mrb[13].mxu1 }
 0x269   :  { %5827 = vmatmul.mubr.msk.f32.gmra.mrb[52].mxu0 %vm220_vm1, %v1841_v19 }
 0x26a   :  { %2152 = vmatprep.mubr.f32.mxu0 %v8736_v0 }
 0x26d   :  { %5828 = vmatmul.mubr.msk.f32.gmra.mrb[54].mxu0 %vm220_vm1, %v1843_v23 }
 0x26e   :  { %2158 = vmatprep.mubr.f32.mxu0 %v8736_v0 }
 0x26f   :  { %v7958_v33 = vpop.f32.mrb[14].mxu1 }
 0x270   :  { %v7960_v59 = vpop.f32.mrb[15].mxu1 }
 0x271   :  { %5829 = vmatmul.mubr.msk.f32.gmra.mrb[56].mxu0 %vm220_vm1, %v1845_v26 }
 0x272   :  { %2164 = vmatprep.mubr.f32.mxu0 %v8736_v0 }
 0x275   :  { %5830 = vmatmul.mubr.msk.f32.gmra.mrb[58].mxu0 %vm220_vm1, %v1847_v22 }
 0x276   :  { %2170 = vmatprep.mubr.f32.mxu0 %v8736_v0 }
 0x277   :  { %v7962_v34 = vpop.f32.mrb[16].mxu1 }
 0x278   :  { %v7964_v42 = vpop.f32.mrb[17].mxu1 }
 0x279   :  { %5831 = vmatmul.mubr.msk.f32.gmra.mrb[60].mxu0 %vm220_vm1, %v1849_v52 }
 0x27a   :  { %2176 = vmatprep.mubr.f32.mxu0 %v8736_v0 }
 0x27d   :  { %5832 = vmatmul.mubr.msk.f32.gmra.mrb[62].mxu0 %vm220_vm1, %v1851_v55 }
 0x27e   :  { %5065 = vmatprep.mubr.f32.mxu0 %v8736_v0  ;;  %v2590_v0 = vld [vmem:[#allocation3 + $0x58] sm:$0xff] }
 0x27f   :  { %v7966_v35 = vpop.f32.mrb[18].mxu1 }
 0x280   :  { %v7968_v3 = vpop.f32.mrb[19].mxu1 }
 0x289   :  { %v7970_v36 = vpop.f32.mrb[20].mxu1 }
 0x28a   :  { %v7972_v62 = vpop.f32.mrb[21].mxu1 }
 0x28d   :  { %v7974_v4 = vpop.f32.mrb[22].mxu1 }
 0x28e   :  { %v7976_v43 = vpop.f32.mrb[23].mxu1 }
 0x293   :  { %v7978_v2 = vpop.f32.mrb[24].mxu1 }
 0x294   :  { %v7980_v38 = vpop.f32.mrb[25].mxu1 }
 0x297   :  { %v7982_v5 = vpop.f32.mrb[26].mxu1 }
 0x298   :  { %v7984_v39 = vpop.f32.mrb[27].mxu1 }
 0x29b   :  { %v7986_v7 = vpop.f32.mrb[28].mxu1 }
 0x29c   :  { %v7988_v40 = vpop.f32.mrb[29].mxu1 }
 0x29f   :  { %v7997_v10 = vpop.f32.mrb[30].mxu1 }
 0x2a0   :  { %v7999_v14 = vpop.f32.mrb[31].mxu1 }
 0x2a1   :  { %8760 = vst [vmem:[#allocation12_spill] sm:$0xff] %v7999_v14 }
 0x2d4   :  { %v1992_v17 = vpop.f32.mrb[0].mxu0 }
 0x2d5   :  { %v2259_v18 = vadd.f32 %v8002_v16, %v1992_v17  ;;  %v1994_v49 = vpop.f32.mrb[1].mxu0 }
 0x2d6   :  { %v2260_v19 = vadd.f32 %v8005_v48, %v1994_v49 }
 0x2d7   :  { %v2323_v11 = vmax.f32 %v2259_v18, 0.0 }
 0x2d8   :  { %v2324_v15 = vmax.f32 %v2260_v19, 0.0  ;;  %v1998_v20 = vpop.f32.mrb[2].mxu0 }
 0x2d9   :  { %v2261_v12 = vadd.f32 %v8002_v16, %v1998_v20  ;;  %v2000_v13 = vpop.f32.mrb[3].mxu0 }
 0x2da   :  { %v2387_v21 = vmax.f32 %v2323_v11, %v2324_v15  ;;  %v2262_v23 = vadd.f32 %v8005_v48, %v2000_v13 }
 0x2db   :  { %v2325_v24 = vmax.f32 %v2261_v12, 0.0 }
 0x2dc   :  { %v2326_v25 = vmax.f32 %v2262_v23, 0.0  ;;  %v2004_v26 = vpop.f32.mrb[4].mxu0  ;;  %v2451_v52 = vrot.slane %v2387_v21, 1 }
 0x2dd   :  { %v2263_v27 = vadd.f32 %v8002_v16, %v2004_v26  ;;  %v2006_v29 = vpop.f32.mrb[5].mxu0  ;;  %v2581_v26 = vld [vmem:[#allocation3 + $0x10] sm:$0xff] }
 0x2de   :  { %v2388_v22 = vmax.f32 %v2325_v24, %v2326_v25  ;;  %v2264_v30 = vadd.f32 %v8005_v48, %v2006_v29  ;;  %v2579_v25 = vld [vmem:[#allocation3] sm:$0xff] }
 0x2df   :  { %v2327_v51 = vmax.f32 %v2263_v27, 0.0 }
 0x2e0   :  { %v2452_v28 = vrot.slane %v2388_v22, 1  ;;  %v2328_v54 = vmax.f32 %v2264_v30, 0.0  ;;  %v2010_v37 = vpop.f32.mrb[6].mxu0  ;;  %v2584_v30 = vld [vmem:[#allocation3 + $0x28] sm:$0xff] }
 0x2e1   :  { %v2265_v55 = vadd.f32 %v8002_v16, %v2010_v37  ;;  %v2012_v6 = vpop.f32.mrb[7].mxu0 }
 0x2e2   :  { %v2453_v45 = vsel %vm145_vm0, %v2451_v52, %v2452_v28  ;;  %v2389_v9 = vmax.f32 %v2327_v51, %v2328_v54  ;;  %v2266_v17 = vadd.f32 %v8005_v48, %v2012_v6 }
 0x2e3   :  { %v8016_v18 = vmax.f32 %v2387_v21, %v2453_v45  ;;  %v2329_v49 = vmax.f32 %v2265_v55, 0.0  ;;  %v2586_v21 = vld [vmem:[#allocation3 + $0x38] sm:$0xff]  ;;  %v5946_v45 = vpack.c.bf16 %v2581_v26, %v2579_v25  ;;  %v8764_v26 = vmov 0.0  }
 0x2e4   :  { %v2454_v19 = vrot.slane %v2389_v9, 1  ;;  %v2330_v11 = vmax.f32 %v2266_v17, 0.0  ;;  %v2016_v15 = vpop.f32.mrb[8].mxu0 }
 0x2e5   :  { %8761 = vst [vmem:[#allocation13_spill] sm:$0xff] %v8016_v18  ;;  %v2267_v20 = vadd.f32 %v8002_v16, %v2016_v15  ;;  %v2018_v12 = vpop.f32.mrb[9].mxu0  ;;  %v2643_v6 = vrot.slane %v8016_v18, 2  ;;  %v2583_v15 = vld [vmem:[#allocation3 + $0x20] sm:$0xff] }
 0x2e6   :  { %v2455_v13 = vsel %vm145_vm0, %v2452_v28, %v2454_v19  ;;  %v2390_v23 = vmax.f32 %v2329_v49, %v2330_v11  ;;  %v2268_v24 = vadd.f32 %v8005_v48, %v2018_v12  ;;  %v5948_v11 = vpack.c.bf16 %v2586_v21, %v2584_v30 }
 0x2e7   :  { %v8021_v27 = vmax.f32 %v2388_v22, %v2455_v13  ;;  %v2331_v29 = vmax.f32 %v2267_v20, 0.0  ;;  %v2585_v20 = vld [vmem:[#allocation3 + $0x30] sm:$0xff] }
 0x2e8   :  { %v2456_v51 = vrot.slane %v2390_v23, 1  ;;  %v2332_v52 = vmax.f32 %v2268_v24, 0.0  ;;  %v2022_v54 = vpop.f32.mrb[10].mxu0  ;;  %v5950_v30 = vpack.c.bf16 %v2585_v20, %v2583_v15 }
 0x2e9   :  { %8762 = vst [vmem:[#allocation14_spill] sm:$0xff] %v8021_v27  ;;  %v2269_v37 = vadd.f32 %v8002_v16, %v2022_v54  ;;  %v2024_v55 = vpop.f32.mrb[11].mxu0  ;;  %v2644_v28 = vrot.slane %v8021_v27, 2  ;;  %v2588_v54 = vld [vmem:[#allocation3 + $0x48] sm:$0xff]  ;;  %v2594_v27 = vld [vmem:[#allocation3 + $0x78] sm:$0xff] }
 0x2ea   :  { %v2457_v17 = vsel %vm145_vm0, %v2454_v19, %v2456_v51  ;;  %v2391_v49 = vmax.f32 %v2331_v29, %v2332_v52  ;;  %v2270_v22 = vadd.f32 %v8005_v48, %v2024_v55  ;;  %v2587_v55 = vld [vmem:[#allocation3 + $0x40] sm:$0xff] }
 0x2eb   :  { %v8028_v12 = vmax.f32 %v2389_v9, %v2457_v17  ;;  %v2333_v13 = vmax.f32 %v2269_v37, 0.0  ;;  %v2645_v24 = vsel %vm864_vm2, %v2643_v6, %v2644_v28  ;;  %v5952_v37 = vpack.c.bf16 %v2590_v0, %v2588_v54  ;;  %v2589_v6 = vld [vmem:[#allocation3 + $0x50] sm:$0xff] }
 0x2ec   :  { %v2458_v46 = vrot.slane %v2391_v49, 1  ;;  %v2334_v8 = vmax.f32 %v2270_v22, 0.0  ;;  %v2028_v18 = vpop.f32.mrb[12].mxu0  ;;  %2837 = vmatmul.mubr.f32.vlgmr.msra.gmra.mrb[32].mxu1 %v2645_v24  ;;  %v2592_v24 = vld [vmem:[#allocation3 + $0x68] sm:$0xff]  ;;  %v2593_v54 = vld [vmem:[#allocation3 + $0x70] sm:$0xff] }
 0x2ed   :  { %8763 = vst [vmem:[#allocation15_spill] sm:$0xff] %v8028_v12  ;;  %v2271_v25 = vadd.f32 %v8002_v16, %v2028_v18  ;;  %v2030_v19 = vpop.f32.mrb[13].mxu0  ;;  %2842 = vmatprep.mubr.f32.mxu1 %v8764_v26  ;;  %5947 = vmatpush1.bf16.msra.mxu1 %v5946_v45  ;;  %v2646_v29 = vrot.slane %v8028_v12, 2  ;;  %v5956_v20 = vpack.c.bf16 %v2594_v27, %v2592_v24  ;;  %v2597_v24 = vld [vmem:[#allocation3 + $0x90] sm:$0xff] }
 0x2ee   :  { %v2459_v9 = vsel %vm145_vm0, %v2456_v51, %v2458_v46  ;;  %v2392_v21 = vmax.f32 %v2333_v13, %v2334_v8  ;;  %v2272_v52 = vadd.f32 %v8005_v48, %v2030_v19  ;;  %5949 = vmatprep.subr.bf16.mxu1 %v5948_v11  ;;  %v5954_v11 = vpack.c.bf16 %v2589_v6, %v2587_v55  ;;  %v2591_v13 = vld [vmem:[#allocation3 + $0x60] sm:$0xff] }
 0x2ef   :  { %v8036_v17 = vmax.f32 %v2390_v23, %v2459_v9  ;;  %v2335_v22 = vmax.f32 %v2271_v25, 0.0  ;;  %v2647_v18 = vsel %vm864_vm2, %v2644_v28, %v2646_v29  ;;  %v2596_v9 = vld [vmem:[#allocation3 + $0x88] sm:$0xff] }
 0x2f0   :  { %v2460_v45 = vrot.slane %v2392_v21, 1  ;;  %v2336_v14 = vmax.f32 %v2272_v52, 0.0  ;;  %v2034_v12 = vpop.f32.mrb[14].mxu0  ;;  %2843 = vmatmul.mubr.f32.gmra.mrb[34].mxu1 %v2647_v18  ;;  %v2598_v52 = vld [vmem:[#allocation3 + $0x98] sm:$0xff] }
 0x2f1   :  { %8765 = vst [vmem:[#allocation16_spill] sm:$0xff] %v8036_v17  ;;  %v2273_v51 = vadd.f32 %v8002_v16, %v2034_v12  ;;  %v2036_v8 = vpop.f32.mrb[15].mxu0  ;;  %2848 = vmatprep.mubr.f32.mxu1 %v8764_v26  ;;  %v2648_v0 = vrot.slane %v8036_v17, 2  ;;  %5951 = vmatpush1.bf16.msra.mxu1 %v5950_v30  ;;  %v5960_v6 = vpack.c.bf16 %v2598_v52, %v2596_v9  ;;  %v2599_v9 = vld [vmem:[#allocation3 + $0xa0] sm:$0xff]  ;;  %v2601_v52 = vld [vmem:[#allocation3 + $0xb0] sm:$0xff] }
 0x2f2   :  { %v2461_v23 = vsel %vm145_vm0, %v2458_v46, %v2460_v45  ;;  %v2393_v15 = vmax.f32 %v2335_v22, %v2336_v14  ;;  %v2274_v28 = vadd.f32 %v8005_v48, %v2036_v8  ;;  %5953 = vmatprep.subr.bf16.mxu1 %v5952_v37  ;;  %v5958_v37 = vpack.c.bf16 %v2593_v54, %v2591_v13  ;;  %v2595_v22 = vld [vmem:[#allocation3 + $0x80] sm:$0xff] }
 0x2f3   :  { %v8044_v25 = vmax.f32 %v2391_v49, %v2461_v23  ;;  %v2337_v19 = vmax.f32 %v2273_v51, 0.0  ;;  %v2649_v12 = vsel %vm864_vm2, %v2646_v29, %v2648_v0  ;;  %v5962_v13 = vpack.c.bf16 %v2597_v24, %v2595_v22 }
 0x2f4   :  { %v2462_v18 = vrot.slane %v2393_v15, 1  ;;  %v2338_v17 = vmax.f32 %v2274_v28, 0.0  ;;  %v2040_v30 = vpop.f32.mrb[16].mxu0  ;;  %2849 = vmatmul.mubr.f32.gmra.mrb[36].mxu1 %v2649_v12  ;;  %v2600_v28 = vld [vmem:[#allocation3 + $0xa8] sm:$0xff]  ;;  %v2602_v12 = vld [vmem:[#allocation3 + $0xb8] sm:$0xff]  ;;  %v5966_v22 = vpack.c.bf16 %v2601_v52, %v2599_v9 }
 0x2f5   :  { %8766 = vst [vmem:[#allocation17_spill] sm:$0xff] %v8044_v25  ;;  %v2275_v46 = vadd.f32 %v8002_v16, %v2040_v30  ;;  %v2042_v14 = vpop.f32.mrb[17].mxu0  ;;  %2854 = vmatprep.mubr.f32.mxu1 %v8764_v26  ;;  %v2650_v27 = vrot.slane %v8044_v25, 2  ;;  %5955 = vmatpush1.bf16.msra.mxu1 %v5954_v11 }
 0x2f6   :  { %v2463_v49 = vsel %vm145_vm0, %v2460_v45, %v2462_v18  ;;  %v2394_v55 = vmax.f32 %v2337_v19, %v2338_v17  ;;  %v2276_v29 = vadd.f32 %v8005_v48, %v2042_v14  ;;  %5957 = vmatprep.subr.bf16.mxu1 %v5956_v20  ;;  %v5964_v19 = vpack.c.bf16 %v2602_v12, %v2600_v28  ;;  %v2603_v28 = vld [vmem:[#allocation3 + $0xc0] sm:$0xff]  ;;  %v2605_v12 = vld [vmem:[#allocation3 + $0xd0] sm:$0xff] }
 0x2f7   :  { %v8052_v51 = vmax.f32 %v2392_v21, %v2463_v49  ;;  %v2339_v8 = vmax.f32 %v2275_v46, 0.0  ;;  %v2651_v23 = vsel %vm864_vm2, %v2648_v0, %v2650_v27  ;;  %v5970_v9 = vpack.c.bf16 %v2605_v12, %v2603_v28 }
 0x2f8   :  { %v2464_v30 = vrot.slane %v2394_v55, 1  ;;  %v2340_v25 = vmax.f32 %v2276_v29, 0.0  ;;  %v2046_v11 = vpop.f32.mrb[18].mxu0  ;;  %2855 = vmatmul.mubr.f32.gmra.mrb[38].mxu1 %v2651_v23  ;;  %v2604_v29 = vld [vmem:[#allocation3 + $0xc8] sm:$0xff]  ;;  %v2606_v23 = vld [vmem:[#allocation3 + $0xd8] sm:$0xff] }
 0x2f9   :  { %8767 = vst [vmem:[#allocation18_spill] sm:$0xff] %v8052_v51  ;;  %v2277_v45 = vadd.f32 %v8002_v16, %v2046_v11  ;;  %v2048_v17 = vpop.f32.mrb[19].mxu0  ;;  %2860 = vmatprep.mubr.f32.mxu1 %v8764_v26  ;;  %v2652_v20 = vrot.slane %v8052_v51, 2  ;;  %5959 = vmatpush1.bf16.msra.mxu1 %v5958_v37 }
 0x2fa   :  { %v2465_v21 = vsel %vm145_vm0, %v2462_v18, %v2464_v30  ;;  %v2395_v54 = vmax.f32 %v2339_v8, %v2340_v25  ;;  %v2278_v0 = vadd.f32 %v8005_v48, %v2048_v17  ;;  %5961 = vmatprep.subr.bf16.mxu1 %v5960_v6  ;;  %v5968_v8 = vpack.c.bf16 %v2606_v23, %v2604_v29  ;;  %v2607_v29 = vld [vmem:[#allocation3 + $0xe0] sm:$0xff]  ;;  %v2609_v23 = vld [vmem:[#allocation3 + $0xf0] sm:$0xff] }
 0x2fb   :  { %v8060_v46 = vmax.f32 %v2393_v15, %v2465_v21  ;;  %v2341_v14 = vmax.f32 %v2277_v45, 0.0  ;;  %v2653_v49 = vsel %vm864_vm2, %v2650_v27, %v2652_v20  ;;  %v5974_v28 = vpack.c.bf16 %v2609_v23, %v2607_v29 }
 0x2fc   :  { %v2466_v11 = vrot.slane %v2395_v54, 1  ;;  %v2342_v51 = vmax.f32 %v2278_v0, 0.0  ;;  %v2052_v37 = vpop.f32.mrb[20].mxu0  ;;  %2861 = vmatmul.mubr.f32.gmra.mrb[40].mxu1 %v2653_v49  ;;  %v2608_v0 = vld [vmem:[#allocation3 + $0xe8] sm:$0xff]  ;;  %v2610_v49 = vld [vmem:[#allocation3 + $0xf8] sm:$0xff] }
 0x2fd   :  { %8768 = vst [vmem:[#allocation19_spill] sm:$0xff] %v8060_v46  ;;  %v2279_v18 = vadd.f32 %v8002_v16, %v2052_v37  ;;  %v2054_v25 = vpop.f32.mrb[21].mxu0  ;;  %2866 = vmatprep.mubr.f32.mxu1 %v8764_v26  ;;  %v2654_v6 = vrot.slane %v8060_v46, 2  ;;  %5963 = vmatpush1.bf16.msra.mxu1 %v5962_v13 }
 0x2fe   :  { %v2467_v15 = vsel %vm145_vm0, %v2464_v30, %v2466_v11  ;;  %v2396_v24 = vmax.f32 %v2341_v14, %v2342_v51  ;;  %v2280_v27 = vadd.f32 %v8005_v48, %v2054_v25  ;;  %5965 = vmatprep.subr.bf16.mxu1 %v5964_v19  ;;  %v5972_v14 = vpack.c.bf16 %v2610_v49, %v2608_v0 }
 0x2ff   :  { %v8068_v45 = vmax.f32 %v2394_v55, %v2467_v15  ;;  %v2343_v17 = vmax.f32 %v2279_v18, 0.0  ;;  %v2655_v21 = vsel %vm864_vm2, %v2652_v20, %v2654_v6 }
 0x300   :  { %v2468_v37 = vrot.slane %v2396_v24, 1  ;;  %v2344_v46 = vmax.f32 %v2280_v27, 0.0  ;;  %v2058_v13 = vpop.f32.mrb[22].mxu0  ;;  %2867 = vmatmul.mubr.f32.gmra.mrb[42].mxu1 %v2655_v21  ;;  %v3384_v27 = vld [vmem:[#allocation3 + $0x208] sm:$0xff]  ;;  %v3386_v21 = vld [vmem:[#allocation3 + $0x218] sm:$0xff] }
 0x301   :  { %8769 = vst [vmem:[#allocation20_spill] sm:$0xff] %v8068_v45  ;;  %v2281_v30 = vadd.f32 %v8002_v16, %v2058_v13  ;;  %v2060_v51 = vpop.f32.mrb[23].mxu0  ;;  %2872 = vmatprep.mubr.f32.mxu1 %v8764_v26  ;;  %v2656_v19 = vrot.slane %v8068_v45, 2  ;;  %5967 = vmatpush1.bf16.msra.mxu1 %v5966_v22 }
 0x302   :  { %v2469_v55 = vsel %vm145_vm0, %v2466_v11, %v2468_v37  ;;  %v2397_v52 = vmax.f32 %v2343_v17, %v2344_v46  ;;  %v2282_v20 = vadd.f32 %v8005_v48, %v2060_v51  ;;  %5969 = vmatprep.subr.bf16.mxu1 %v5968_v8  ;;  %v5976_v17 = vpack.c.bf16 %v3386_v21, %v3384_v27 }
 0x303   :  { %v8076_v18 = vmax.f32 %v2395_v54, %v2469_v55  ;;  %v2345_v25 = vmax.f32 %v2281_v30, 0.0  ;;  %v2657_v15 = vsel %vm864_vm2, %v2654_v6, %v2656_v19 }
 0x304   :  { %v2470_v13 = vrot.slane %v2397_v52, 1  ;;  %v2346_v45 = vmax.f32 %v2282_v20, 0.0  ;;  %v2064_v22 = vpop.f32.mrb[24].mxu0  ;;  %2873 = vmatmul.mubr.f32.gmra.mrb[44].mxu1 %v2657_v15 }
 0x305   :  { %v2283_v11 = vadd.f32 %v8002_v16, %v2064_v22  ;;  %v2066_v46 = vpop.f32.mrb[25].mxu0  ;;  %2878 = vmatprep.mubr.f32.mxu1 %v8764_v26  ;;  %v2658_v8 = vrot.slane %v8076_v18, 2  ;;  %5971 = vmatpush1.bf16.msra.mxu1 %v5970_v9 }
 0x306   :  { %v2471_v54 = vsel %vm145_vm0, %v2468_v37, %v2470_v13  ;;  %v2398_v12 = vmax.f32 %v2345_v25, %v2346_v45  ;;  %v2284_v6 = vadd.f32 %v8005_v48, %v2066_v46  ;;  %5973 = vmatprep.subr.bf16.mxu1 %v5972_v14 }
 0x307   :  { %v8084_v0 = vmax.f32 %v2396_v24, %v2471_v54  ;;  %v2347_v49 = vmax.f32 %v2283_v11, 0.0  ;;  %v2659_v30 = vsel %vm864_vm2, %v2656_v19, %v2658_v8 }
 0x308   :  { %v2472_v51 = vrot.slane %v2398_v12, 1  ;;  %v2348_v55 = vmax.f32 %v2284_v6, 0.0  ;;  %v2070_v20 = vpop.f32.mrb[26].mxu0  ;;  %2879 = vmatmul.mubr.f32.gmra.mrb[46].mxu1 %v2659_v30 }
 0x309   :  { %v2285_v15 = vadd.f32 %v8002_v16, %v2070_v20  ;;  %v2072_v9 = vpop.f32.mrb[27].mxu0  ;;  %2884 = vmatprep.mubr.f32.mxu1 %v8764_v26  ;;  %v2660_v45 = vrot.slane %v8084_v0, 2  ;;  %5975 = vmatpush1.bf16.msra.mxu1 %v5974_v28 }
 0x30a   :  { %v2473_v37 = vsel %vm145_vm0, %v2470_v13, %v2472_v51  ;;  %v2399_v14 = vmax.f32 %v2347_v49, %v2348_v55  ;;  %v2286_v24 = vadd.f32 %v8005_v48, %v2072_v9  ;;  %5977 = vmatprep.subr.bf16.mxu1 %v5976_v17 }
 0x30b   :  { %v8092_v29 = vmax.f32 %v2397_v52, %v2473_v37  ;;  %v2349_v19 = vmax.f32 %v2285_v15, 0.0  ;;  %v2661_v23 = vsel %vm864_vm2, %v2658_v8, %v2660_v45 }
 0x30c   :  { %v2474_v25 = vrot.slane %v2399_v14, 1  ;;  %v2350_v27 = vmax.f32 %v2286_v24, 0.0  ;;  %v2076_v21 = vpop.f32.mrb[28].mxu0  ;;  %2885 = vmatmul.mubr.f32.gmra.mrb[48].mxu1 %v2661_v23 }
 0x30d   :  { %v2287_v22 = vadd.f32 %v8002_v16, %v2076_v21  ;;  %v2078_v11 = vpop.f32.mrb[29].mxu0  ;;  %2890 = vmatprep.mubr.f32.mxu1 %v8764_v26  ;;  %v2662_v13 = vrot.slane %v8092_v29, 2 }
 0x30e   :  { %v2475_v46 = vsel %vm145_vm0, %v2472_v51, %v2474_v25  ;;  %v2400_v28 = vmax.f32 %v2349_v19, %v2350_v27  ;;  %v2288_v52 = vadd.f32 %v8005_v48, %v2078_v11 }
 0x30f   :  { %v8100_v54 = vmax.f32 %v2398_v12, %v2475_v46  ;;  %v2351_v6 = vmax.f32 %v2287_v22, 0.0  ;;  %v2663_v8 = vsel %vm864_vm2, %v2660_v45, %v2662_v13 }
 0x310   :  { %v2476_v17 = vrot.slane %v2400_v28, 1  ;;  %v2352_v49 = vmax.f32 %v2288_v52, 0.0  ;;  %v2082_v30 = vpop.f32.mrb[30].mxu0  ;;  %2891 = vmatmul.mubr.f32.gmra.mrb[50].mxu1 %v2663_v8 }
 0x311   :  { %v2289_v55 = vadd.f32 %v8002_v16, %v2082_v30  ;;  %v2084_v20 = vpop.f32.mrb[31].mxu0  ;;  %2896 = vmatprep.mubr.f32.mxu1 %v8764_v26  ;;  %v2664_v15 = vrot.slane %v8100_v54, 2 }
 0x312   :  { %v2477_v51 = vsel %vm145_vm0, %v2474_v25, %v2476_v17  ;;  %v2401_v9 = vmax.f32 %v2351_v6, %v2352_v49  ;;  %v2290_v12 = vadd.f32 %v8005_v48, %v2084_v20 }
 0x313   :  { %v8108_v37 = vmax.f32 %v2399_v14, %v2477_v51  ;;  %v2353_v24 = vmax.f32 %v2289_v55, 0.0  ;;  %v2665_v45 = vsel %vm864_vm2, %v2662_v13, %v2664_v15 }
 0x314   :  { %v2478_v19 = vrot.slane %v2401_v9, 1  ;;  %v2354_v23 = vmax.f32 %v2290_v12, 0.0  ;;  %v2088_v27 = vpop.f32.mrb[32].mxu0  ;;  %2897 = vmatmul.mubr.f32.gmra.mrb[52].mxu1 %v2665_v45 }
 0x315   :  { %v6268_v21 = vadd.f32 %v2088_v27, %v7930_v41  ;;  %v2090_v22 = vpop.f32.mrb[33].mxu0  ;;  %2902 = vmatprep.mubr.f32.mxu1 %v8764_v26  ;;  %v2666_v11 = vrot.slane %v8108_v37, 2 }
 0x316   :  { %v2479_v25 = vsel %vm145_vm0, %v2476_v17, %v2478_v19  ;;  %v2402_v46 = vmax.f32 %v2353_v24, %v2354_v23  ;;  %v6269_v14 = vadd.f32 %v2090_v22, %v7932_v57 }
 0x317   :  { %v8116_v52 = vmax.f32 %v2400_v28, %v2479_v25  ;;  %v2291_v13 = vadd.f32 %v6268_v21, %v8002_v16  ;;  %v2667_v6 = vsel %vm864_vm2, %v2664_v15, %v2666_v11 }
 0x318   :  { %v2480_v8 = vrot.slane %v2402_v46, 1  ;;  %v2292_v49 = vadd.f32 %v6269_v14, %v8005_v48  ;;  %v2094_v41 = vpop.f32.mrb[34].mxu0  ;;  %2903 = vmatmul.mubr.f32.gmra.mrb[54].mxu1 %v2667_v6 }
 0x319   :  { %v2355_v30 = vmax.f32 %v2291_v13, 0.0  ;;  %v6270_v55 = vadd.f32 %v2094_v41, %v7934_v44  ;;  %v2096_v20 = vpop.f32.mrb[35].mxu0  ;;  %2908 = vmatprep.mubr.f32.mxu1 %v8764_v26  ;;  %v2668_v17 = vrot.slane %v8116_v52, 2 }
 0x31a   :  { %v2481_v57 = vsel %vm145_vm0, %v2478_v19, %v2480_v8  ;;  %v2356_v28 = vmax.f32 %v2292_v49, 0.0  ;;  %v6271_v51 = vadd.f32 %v2096_v20, %v7936_v58 }
 0x31b   :  { %v8126_v12 = vmax.f32 %v2401_v9, %v2481_v57  ;;  %v2293_v15 = vadd.f32 %v6270_v55, %v8002_v16  ;;  %v2669_v24 = vsel %vm864_vm2, %v2666_v11, %v2668_v17 }
 0x31c   :  { %v2403_v45 = vmax.f32 %v2355_v30, %v2356_v28  ;;  %v2294_v23 = vadd.f32 %v6271_v51, %v8005_v48  ;;  %v2100_v44 = vpop.f32.mrb[36].mxu0  ;;  %2909 = vmatmul.mubr.f32.gmra.mrb[56].mxu1 %v2669_v24 }
 0x31d   :  { %v2357_v27 = vmax.f32 %v2293_v15, 0.0  ;;  %v6272_v21 = vadd.f32 %v2100_v44, %v7938_v47  ;;  %v2102_v22 = vpop.f32.mrb[37].mxu0  ;;  %2914 = vmatprep.mubr.f32.mxu1 %v8764_v26  ;;  %v2670_v19 = vrot.slane %v8126_v12, 2 }
 0x31e   :  { %v2482_v58 = vrot.slane %v2403_v45, 1  ;;  %v2358_v9 = vmax.f32 %v2294_v23, 0.0  ;;  %v6273_v25 = vadd.f32 %v2102_v22, %v7940_v60 }
 0x31f   :  { %v2295_v14 = vadd.f32 %v6272_v21, %v8002_v16  ;;  %v2671_v11 = vsel %vm864_vm2, %v2668_v17, %v2670_v19 }
 0x320   :  { %v2483_v13 = vsel %vm145_vm0, %v2480_v8, %v2482_v58  ;;  %v2404_v6 = vmax.f32 %v2357_v27, %v2358_v9  ;;  %v2296_v49 = vadd.f32 %v6273_v25, %v8005_v48  ;;  %v2106_v41 = vpop.f32.mrb[38].mxu0  ;;  %2915 = vmatmul.mubr.f32.gmra.mrb[58].mxu1 %v2671_v11 }
 0x321   :  { %v8139_v47 = vmax.f32 %v2402_v46, %v2483_v13  ;;  %v2359_v30 = vmax.f32 %v2295_v14, 0.0  ;;  %v6274_v55 = vadd.f32 %v2106_v41, %v7942_v50  ;;  %v2108_v20 = vpop.f32.mrb[39].mxu0  ;;  %2920 = vmatprep.mubr.f32.mxu1 %v8764_v26 }
 0x322   :  { %v2484_v60 = vrot.slane %v2404_v6, 1  ;;  %v2360_v57 = vmax.f32 %v2296_v49, 0.0  ;;  %v6275_v28 = vadd.f32 %v2108_v20, %v7944_v61 }
 0x323   :  { %v2297_v17 = vadd.f32 %v6274_v55, %v8002_v16  ;;  %v2672_v8 = vrot.slane %v8139_v47, 2 }
 0x324   :  { %v2485_v51 = vsel %vm145_vm0, %v2482_v58, %v2484_v60  ;;  %v2405_v15 = vmax.f32 %v2359_v30, %v2360_v57  ;;  %v2298_v46 = vadd.f32 %v6275_v28, %v8005_v48  ;;  %v2112_v24 = vpop.f32.mrb[40].mxu0 }
 0x325   :  { %v8148_v23 = vmax.f32 %v2403_v45, %v2485_v51  ;;  %v2361_v50 = vmax.f32 %v2297_v17, 0.0  ;;  %v6276_v44 = vadd.f32 %v2112_v24, %v7946_v53  ;;  %v2114_v27 = vpop.f32.mrb[41].mxu0  ;;  %v2673_v21 = vsel %vm864_vm2, %v2670_v19, %v2672_v8 }
 0x326   :  { %v2486_v22 = vrot.slane %v2405_v15, 1  ;;  %v2362_v61 = vmax.f32 %v2298_v46, 0.0  ;;  %v6277_v9 = vadd.f32 %v2114_v27, %v7948_v63  ;;  %2921 = vmatmul.mubr.f32.gmra.mrb[60].mxu1 %v2673_v21 }
 0x327   :  { %v2299_v25 = vadd.f32 %v6276_v44, %v8002_v16  ;;  %2926 = vmatprep.mubr.f32.mxu1 %v8764_v26  ;;  %v2674_v58 = vrot.slane %v8148_v23, 2 }
 0x328   :  { %v2487_v45 = vsel %vm145_vm0, %v2484_v60, %v2486_v22  ;;  %v2406_v14 = vmax.f32 %v2361_v50, %v2362_v61  ;;  %v2300_v11 = vadd.f32 %v6277_v9, %v8005_v48  ;;  %v2118_v53 = vpop.f32.mrb[42].mxu0 }
 0x329   :  { %v8158_v13 = vmax.f32 %v2404_v6, %v2487_v45  ;;  %v2363_v19 = vmax.f32 %v2299_v25, 0.0  ;;  %v6278_v49 = vadd.f32 %v2118_v53, %v7950_v31  ;;  %v2120_v41 = vpop.f32.mrb[43].mxu0  ;;  %v2675_v63 = vsel %vm864_vm2, %v2672_v8, %v2674_v58 }
 0x32a   :  { %v2488_v30 = vrot.slane %v2406_v14, 1  ;;  %v2364_v55 = vmax.f32 %v2300_v11, 0.0  ;;  %v6279_v20 = vadd.f32 %v2120_v41, %v7952_v56  ;;  %2927 = vmatmul.mubr.f32.gmra.mrb[62].mxu1 %v2675_v63 }
 0x32b   :  { %v2301_v57 = vadd.f32 %v6278_v49, %v8002_v16  ;;  %2932 = vmatprep.mubr.f32.mxu1 %v8764_v26  ;;  %v2676_v60 = vrot.slane %v8158_v13, 2 }
 0x32c   :  { %v2489_v6 = vsel %vm145_vm0, %v2486_v22, %v2488_v30  ;;  %v2407_v28 = vmax.f32 %v2363_v19, %v2364_v55  ;;  %v2302_v17 = vadd.f32 %v6279_v20, %v8005_v48  ;;  %v2124_v31 = vpop.f32.mrb[44].mxu0 }
 0x32d   :  { %v8168_v51 = vmax.f32 %v2405_v15, %v2489_v6  ;;  %v2365_v8 = vmax.f32 %v2301_v57, 0.0  ;;  %v6280_v46 = vadd.f32 %v2124_v31, %v7954_v32  ;;  %v2126_v24 = vpop.f32.mrb[45].mxu0  ;;  %v2677_v56 = vsel %vm864_vm2, %v2674_v58, %v2676_v60 }
 0x32e   :  { %v2490_v50 = vrot.slane %v2407_v28, 1  ;;  %v2366_v44 = vmax.f32 %v2302_v17, 0.0  ;;  %v6281_v27 = vadd.f32 %v2126_v24, %v7956_v1  ;;  %2933 = vmatmul.mubr.f32.gmra.mrb[64].mxu1 %v2677_v56 }
 0x32f   :  { %v2303_v21 = vadd.f32 %v6280_v46, %v8002_v16  ;;  %2938 = vmatprep.mubr.f32.mxu1 %v8764_v26  ;;  %v2678_v22 = vrot.slane %v8168_v51, 2 }
 0x330   :  { %v2491_v15 = vsel %vm145_vm0, %v2488_v30, %v2490_v50  ;;  %v2408_v61 = vmax.f32 %v2365_v8, %v2366_v44  ;;  %v2304_v9 = vadd.f32 %v6281_v27, %v8005_v48  ;;  %v2130_v32 = vpop.f32.mrb[46].mxu0 }
 0x331   :  { %v8178_v25 = vmax.f32 %v2406_v14, %v2491_v15  ;;  %v2367_v58 = vmax.f32 %v2303_v21, 0.0  ;;  %v6282_v45 = vadd.f32 %v2130_v32, %v7958_v33  ;;  %v2132_v11 = vpop.f32.mrb[47].mxu0  ;;  %v2679_v1 = vsel %vm864_vm2, %v2676_v60, %v2678_v22 }
 0x332   :  { %v2492_v53 = vrot.slane %v2408_v61, 1  ;;  %v2368_v19 = vmax.f32 %v2304_v9, 0.0  ;;  %v6283_v49 = vadd.f32 %v2132_v11, %v7960_v59  ;;  %2939 = vmatmul.mubr.f32.gmra.mrb[66].mxu1 %v2679_v1 }
 0x333   :  { %v2305_v41 = vadd.f32 %v6282_v45, %v8002_v16  ;;  %2944 = vmatprep.mubr.f32.mxu1 %v8764_v26  ;;  %v2680_v63 = vrot.slane %v8178_v25, 2 }
 0x334   :  { %v2493_v14 = vsel %vm145_vm0, %v2490_v50, %v2492_v53  ;;  %v2409_v30 = vmax.f32 %v2367_v58, %v2368_v19  ;;  %v2306_v55 = vadd.f32 %v6283_v49, %v8005_v48  ;;  %v2136_v33 = vpop.f32.mrb[48].mxu0 }
 0x335   :  { %v8188_v20 = vmax.f32 %v2407_v28, %v2493_v14  ;;  %v2369_v57 = vmax.f32 %v2305_v41, 0.0  ;;  %v6284_v60 = vadd.f32 %v2136_v33, %v7962_v34  ;;  %v2138_v6 = vpop.f32.mrb[49].mxu0  ;;  %v2681_v59 = vsel %vm864_vm2, %v2678_v22, %v2680_v63 }
 0x336   :  { %v2494_v17 = vrot.slane %v2409_v30, 1  ;;  %v2370_v31 = vmax.f32 %v2306_v55, 0.0  ;;  %v6285_v8 = vadd.f32 %v2138_v6, %v7964_v42  ;;  %2945 = vmatmul.mubr.f32.gmra.mrb[68].mxu1 %v2681_v59 }
 0x337   :  { %v2307_v46 = vadd.f32 %v6284_v60, %v8002_v16  ;;  %2950 = vmatprep.mubr.f32.mxu1 %v8764_v26  ;;  %v2682_v24 = vrot.slane %v8188_v20, 2 }
 0x338   :  { %v2495_v28 = vsel %vm145_vm0, %v2492_v53, %v2494_v17  ;;  %v2410_v56 = vmax.f32 %v2369_v57, %v2370_v31  ;;  %v2308_v50 = vadd.f32 %v6285_v8, %v8005_v48  ;;  %v2142_v34 = vpop.f32.mrb[50].mxu0 }
 0x339   :  { %v8198_v44 = vmax.f32 %v2408_v61, %v2495_v28  ;;  %v2371_v27 = vmax.f32 %v2307_v46, 0.0  ;;  %v6286_v21 = vadd.f32 %v2142_v34, %v7966_v35  ;;  %v2144_v22 = vpop.f32.mrb[51].mxu0  ;;  %v2683_v42 = vsel %vm864_vm2, %v2680_v63, %v2682_v24 }
 0x33a   :  { %v2496_v15 = vrot.slane %v2410_v56, 1  ;;  %v2372_v9 = vmax.f32 %v2308_v50, 0.0  ;;  %v6287_v32 = vadd.f32 %v2144_v22, %v7968_v3  ;;  %2951 = vmatmul.mubr.f32.gmra.mrb[70].mxu1 %v2683_v42 }
 0x33b   :  { %v2309_v58 = vadd.f32 %v6286_v21, %v8002_v16  ;;  %2956 = vmatprep.mubr.f32.mxu1 %v8764_v26  ;;  %v2684_v45 = vrot.slane %v8198_v44, 2 }
 0x33c   :  { %v2497_v61 = vsel %vm145_vm0, %v2494_v17, %v2496_v15  ;;  %v2411_v11 = vmax.f32 %v2371_v27, %v2372_v9  ;;  %v2310_v1 = vadd.f32 %v6287_v32, %v8005_v48  ;;  %v2148_v35 = vpop.f32.mrb[52].mxu0 }
 0x33d   :  { %v8208_v53 = vmax.f32 %v2409_v30, %v2497_v61  ;;  %v2373_v19 = vmax.f32 %v2309_v58, 0.0  ;;  %v6288_v49 = vadd.f32 %v2148_v35, %v7970_v36  ;;  %v2150_v41 = vpop.f32.mrb[53].mxu0  ;;  %v2685_v3 = vsel %vm864_vm2, %v2682_v24, %v2684_v45 }
 0x33e   :  { %v2498_v63 = vrot.slane %v2411_v11, 1  ;;  %v2374_v14 = vmax.f32 %v2310_v1, 0.0  ;;  %v6289_v55 = vadd.f32 %v2150_v41, %v7972_v62  ;;  %2957 = vmatmul.mubr.f32.gmra.mrb[72].mxu1 %v2685_v3 }
 0x33f   :  { %v2311_v33 = vadd.f32 %v6288_v49, %v8002_v16  ;;  %2962 = vmatprep.mubr.f32.mxu1 %v8764_v26  ;;  %v2686_v57 = vrot.slane %v8208_v53, 2 }
 0x340   :  { %v2499_v30 = vsel %vm145_vm0, %v2496_v15, %v2498_v63  ;;  %v2412_v60 = vmax.f32 %v2373_v19, %v2374_v14  ;;  %v2312_v6 = vadd.f32 %v6289_v55, %v8005_v48  ;;  %v2154_v36 = vpop.f32.mrb[54].mxu0 }
 0x341   :  { %v8218_v59 = vmax.f32 %v2410_v56, %v2499_v30  ;;  %v2375_v17 = vmax.f32 %v2311_v33, 0.0  ;;  %v6290_v31 = vadd.f32 %v2154_v36, %v7974_v4  ;;  %v2156_v8 = vpop.f32.mrb[55].mxu0  ;;  %v2687_v62 = vsel %vm864_vm2, %v2684_v45, %v2686_v57 }
 0x342   :  { %v2500_v46 = vrot.slane %v2412_v60, 1  ;;  %v2376_v24 = vmax.f32 %v2312_v6, 0.0  ;;  %v6291_v28 = vadd.f32 %v2156_v8, %v7976_v43  ;;  %2963 = vmatmul.mubr.f32.gmra.mrb[74].mxu1 %v2687_v62 }
 0x343   :  { %v2313_v50 = vadd.f32 %v6290_v31, %v8002_v16  ;;  %2968 = vmatprep.mubr.f32.mxu1 %v8764_v26  ;;  %v2688_v34 = vrot.slane %v8218_v59, 2 }
 0x344   :  { %v2501_v56 = vsel %vm145_vm0, %v2498_v63, %v2500_v46  ;;  %v2413_v27 = vmax.f32 %v2375_v17, %v2376_v24  ;;  %v2314_v21 = vadd.f32 %v6291_v28, %v8005_v48  ;;  %v2160_v4 = vpop.f32.mrb[56].mxu0 }
 0x345   :  { %v8228_v22 = vmax.f32 %v2411_v11, %v2501_v56  ;;  %v2377_v42 = vmax.f32 %v2313_v50, 0.0  ;;  %v6292_v15 = vadd.f32 %v2160_v4, %v7978_v2  ;;  %v2162_v9 = vpop.f32.mrb[57].mxu0  ;;  %v2689_v43 = vsel %vm864_vm2, %v2686_v57, %v2688_v34 }
 0x346   :  { %v2502_v32 = vrot.slane %v2413_v27, 1  ;;  %v2378_v58 = vmax.f32 %v2314_v21, 0.0  ;;  %v6293_v45 = vadd.f32 %v2162_v9, %v7980_v38  ;;  %2969 = vmatmul.mubr.f32.gmra.mrb[76].mxu1 %v2689_v43 }
 0x347   :  { %v2315_v61 = vadd.f32 %v6292_v15, %v8002_v16  ;;  %2974 = vmatprep.mubr.f32.mxu1 %v8764_v26  ;;  %v2690_v1 = vrot.slane %v8228_v22, 2 }
 0x348   :  { %v2503_v11 = vsel %vm145_vm0, %v2500_v46, %v2502_v32  ;;  %v2414_v35 = vmax.f32 %v2377_v42, %v2378_v58  ;;  %v2316_v19 = vadd.f32 %v6293_v45, %v8005_v48  ;;  %v2166_v2 = vpop.f32.mrb[58].mxu0  ;;  %v8770_v58 = vld [vmem:[#allocation12_spill] sm:$0xff] }
 0x349   :  { %v8238_v49 = vmax.f32 %v2412_v60, %v2503_v11  ;;  %v2379_v41 = vmax.f32 %v2315_v61, 0.0  ;;  %v6294_v3 = vadd.f32 %v2166_v2, %v7982_v5  ;;  %v2168_v63 = vpop.f32.mrb[59].mxu0  ;;  %v2691_v38 = vsel %vm864_vm2, %v2688_v34, %v2690_v1 }
 0x34a   :  { %v2504_v14 = vrot.slane %v2414_v35, 1  ;;  %v2380_v55 = vmax.f32 %v2316_v19, 0.0  ;;  %v6295_v33 = vadd.f32 %v2168_v63, %v7984_v39  ;;  %2975 = vmatmul.mubr.f32.gmra.mrb[78].mxu1 %v2691_v38 }
 0x34b   :  { %v2317_v57 = vadd.f32 %v6294_v3, %v8002_v16  ;;  %2980 = vmatprep.mubr.f32.mxu1 %v8764_v26  ;;  %v2692_v30 = vrot.slane %v8238_v49, 2 }
 0x34c   :  { %v2505_v60 = vsel %vm145_vm0, %v2502_v32, %v2504_v14  ;;  %v2415_v6 = vmax.f32 %v2379_v41, %v2380_v55  ;;  %v2318_v36 = vadd.f32 %v6295_v33, %v8005_v48  ;;  %v2172_v5 = vpop.f32.mrb[60].mxu0 }
 0x34d   :  { %v8248_v17 = vmax.f32 %v2413_v27, %v2505_v60  ;;  %v2381_v31 = vmax.f32 %v2317_v57, 0.0  ;;  %v6296_v8 = vadd.f32 %v2172_v5, %v7986_v7  ;;  %v2174_v62 = vpop.f32.mrb[61].mxu0  ;;  %v2693_v39 = vsel %vm864_vm2, %v2690_v1, %v2692_v30 }
 0x34e   :  { %v2506_v46 = vrot.slane %v2415_v6, 1  ;;  %v2382_v24 = vmax.f32 %v2318_v36, 0.0  ;;  %v6297_v28 = vadd.f32 %v2174_v62, %v7988_v40  ;;  %2981 = vmatmul.mubr.f32.gmra.mrb[80].mxu1 %v2693_v39 }
 0x34f   :  { %v2319_v50 = vadd.f32 %v6296_v8, %v8002_v16  ;;  %2986 = vmatprep.mubr.f32.mxu1 %v8764_v26  ;;  %v2694_v34 = vrot.slane %v8248_v17, 2 }
 0x350   :  { %v2507_v56 = vsel %vm145_vm0, %v2504_v14, %v2506_v46  ;;  %v2416_v27 = vmax.f32 %v2381_v31, %v2382_v24  ;;  %v2320_v21 = vadd.f32 %v6297_v28, %v8005_v48  ;;  %v2178_v7 = vpop.f32.mrb[62].mxu0  ;;  %v3385_v24 = vld [vmem:[#allocation3 + $0x210] sm:$0xff]  ;;  %v3388_v28 = vld [vmem:[#allocation3 + $0x228] sm:$0xff] }
 0x351   :  { %v8258_v4 = vmax.f32 %v2414_v35, %v2507_v56  ;;  %v2383_v42 = vmax.f32 %v2319_v50, 0.0  ;;  %v6298_v15 = vadd.f32 %v2178_v7, %v7997_v10  ;;  %v2180_v9 = vpop.f32.mrb[63].mxu0  ;;  %v2695_v40 = vsel %vm864_vm2, %v2692_v30, %v2694_v34  ;;  %v3390_v50 = vld [vmem:[#allocation3 + $0x238] sm:$0xff]  ;;  %v3392_v7 = vld [vmem:[#allocation3 + $0x248] sm:$0xff] }
 0x352   :  { %v2508_v43 = vrot.slane %v2416_v27, 1  ;;  %v2384_v32 = vmax.f32 %v2320_v21, 0.0  ;;  %v6299_v45 = vadd.f32 %v2180_v9, %v8770_v58  ;;  %2987 = vmatmul.mubr.f32.gmra.mrb[82].mxu1 %v2695_v40  ;;  %v5980_v56 = vpack.c.bf16 %v3390_v50, %v3388_v28  ;;  %v3389_v21 = vld [vmem:[#allocation3 + $0x230] sm:$0xff]  ;;  %v3396_v58 = vld [vmem:[#allocation3 + $0x268] sm:$0xff]  ;;  %v3407_v28 = vld [vmem:[#allocation3 + $0x2c0] sm:$0xff] }
 0x353   :  { %v2321_v61 = vadd.f32 %v6298_v15, %v8002_v16  ;;  %2992 = vmatprep.mubr.f32.mxu1 %v8764_v26  ;;  %v2696_v1 = vrot.slane %v8258_v4, 2  ;;  %v8771_v15 = vld [vmem:[#allocation13_spill] sm:$0xff]  ;;  %v3409_v50 = vld [vmem:[#allocation3 + $0x2d0] sm:$0xff] }
 0x354   :  { %v2509_v11 = vsel %vm145_vm0, %v2506_v46, %v2508_v43  ;;  %v2417_v35 = vmax.f32 %v2383_v42, %v2384_v32  ;;  %v2322_v19 = vadd.f32 %v6299_v45, %v8005_v48  ;;  %v3383_v46 = vld [vmem:[#allocation3 + $0x200] sm:$0xff]  ;;  %v3394_v42 = vld [vmem:[#allocation3 + $0x258] sm:$0xff]  ;;  %v3393_v32 = vld [vmem:[#allocation3 + $0x250] sm:$0xff] }
 0x355   :  { %v8268_v10 = vmax.f32 %v2415_v6, %v2509_v11  ;;  %v2385_v2 = vmax.f32 %v2321_v61, 0.0  ;;  %v2697_v41 = vsel %vm864_vm2, %v2694_v34, %v2696_v1  ;;  %v5978_v34 = vpack.c.bf16 %v3385_v24, %v3383_v46  ;;  %v3398_v45 = vld [vmem:[#allocation3 + $0x278] sm:$0xff]  ;;  %v8772_v61 = vld [vmem:[#allocation14_spill] sm:$0xff] }
 0x356   :  { %v2510_v3 = vrot.slane %v2417_v35, 1  ;;  %v2386_v63 = vmax.f32 %v2322_v19, 0.0  ;;  %2993 = vmatmul.mubr.f32.gmra.mrb[84].mxu1 %v2697_v41  ;;  %v5984_v40 = vpack.c.bf16 %v3394_v42, %v3392_v7  ;;  %v5988_v11 = vpack.c.bf16 %v3398_v45, %v3396_v58  ;;  %v3397_v19 = vld [vmem:[#allocation3 + $0x270] sm:$0xff]  ;;  %v3402_v41 = vld [vmem:[#allocation3 + $0x298] sm:$0xff]  ;;  %v3411_v42 = vld [vmem:[#allocation3 + $0x2e0] sm:$0xff] }
 0x357   :  { %2998 = vmatprep.mubr.f32.mxu1 %v8764_v26  ;;  %v2698_v16 = vrot.slane %v8268_v10, 2 }
 0x358   :  { %v2511_v38 = vsel %vm145_vm0, %v2508_v43, %v2510_v3  ;;  %v2418_v14 = vmax.f32 %v2385_v2, %v2386_v63  ;;  %v3391_v43 = vld [vmem:[#allocation3 + $0x240] sm:$0xff]  ;;  %v3400_v2 = vld [vmem:[#allocation3 + $0x288] sm:$0xff] }
 0x359   :  { %v8274_v55 = vmax.f32 %v2416_v27, %v2511_v38  ;;  %v2699_v33 = vsel %vm864_vm2, %v2696_v1, %v2698_v16  ;;  %v3387_v27 = vld [vmem:[#allocation3 + $0x220] sm:$0xff]  ;;  %v5986_v1 = vpack.c.bf16 %v3393_v32, %v3391_v43  ;;  %v3837_v43 = vld [vmem:[#allocation3 + $0x318] sm:$0xff]  ;;  %v8777_v32 = vld [vmem:[#allocation19_spill] sm:$0xff] }
 0x35a   :  { %v2512_v48 = vrot.slane %v2418_v14, 1  ;;  %2999 = vmatmul.mubr.f32.gmra.mrb[86].mxu1 %v2699_v33  ;;  %v5982_v9 = vpack.c.bf16 %v3389_v21, %v3387_v27  ;;  %v3399_v38 = vld [vmem:[#allocation3 + $0x280] sm:$0xff]  ;;  %v3404_v33 = vld [vmem:[#allocation3 + $0x2a8] sm:$0xff]  ;;  %v6002_v21 = vpack.c.bf16 %v3409_v50, %v3407_v28 }
 0x35b   :  { %3004 = vmatprep.mubr.f32.mxu1 %v8764_v26  ;;  %v2700_v57 = vrot.slane %v8274_v55, 2  ;;  %v8776_v27 = vld [vmem:[#allocation18_spill] sm:$0xff]  ;;  %v3847_v50 = vld [vmem:[#allocation3 + $0x368] sm:$0xff] }
 0x35c   :  { %v2513_v30 = vsel %vm145_vm0, %v2510_v3, %v2512_v48  ;;  %v2546_v60 = vsel %vm145_vm0, %v2512_v48, 0.0  ;;  %v8773_v3 = vld [vmem:[#allocation15_spill] sm:$0xff]  ;;  %v3406_v48 = vld [vmem:[#allocation3 + $0x2b8] sm:$0xff] }
 0x35d   :  { %v8281_v6 = vmax.f32 %v2417_v35, %v2513_v30  ;;  %v8283_v36 = vmax.f32 %v2418_v14, %v2546_v60  ;;  %v2701_v5 = vsel %vm864_vm2, %v2698_v16, %v2700_v57  ;;  %v3395_v35 = vld [vmem:[#allocation3 + $0x260] sm:$0xff]  ;;  %v5992_v16 = vpack.c.bf16 %v3402_v41, %v3400_v2  ;;  %v3401_v14 = vld [vmem:[#allocation3 + $0x290] sm:$0xff]  ;;  %v3839_v2 = vld [vmem:[#allocation3 + $0x328] sm:$0xff] }
 0x35e   :  { %3005 = vmatmul.mubr.f32.gmra.mrb[88].mxu1 %v2701_v5  ;;  %v5990_v63 = vpack.c.bf16 %v3397_v19, %v3395_v35  ;;  %v5994_v30 = vpack.c.bf16 %v3401_v14, %v3399_v38  ;;  %v5996_v60 = vpack.c.bf16 %v3406_v48, %v3404_v33  ;;  %v3403_v5 = vld [vmem:[#allocation3 + $0x2a0] sm:$0xff]  ;;  %v3836_v35 = vld [vmem:[#allocation3 + $0x310] sm:$0xff]  ;;  %v3287_v19 = vrot.slane %v8772_v61, 4  ;;  %v3841_v41 = vld [vmem:[#allocation3 + $0x338] sm:$0xff] }
 0x35f   :  { %3010 = vmatprep.mubr.f32.mxu1 %v8764_v26  ;;  %v2702_v31 = vrot.slane %v8281_v6, 2  ;;  %v2704_v62 = vrot.slane %v8283_v36, 2  ;;  %v6012_v38 = vpack.c.bf16 %v3841_v41, %v3839_v2  ;;  %v3838_v14 = vld [vmem:[#allocation3 + $0x320] sm:$0xff]  ;;  %v3840_v33 = vld [vmem:[#allocation3 + $0x330] sm:$0xff]  ;;  %v3295_v41 = vrot.slane %v8776_v27, 4 }
 0x361   :  { %v2703_v8 = vsel %vm864_vm2, %v2700_v57, %v2702_v31  ;;  %v2705_v39 = vsel %vm864_vm2, %v2702_v31, %v2704_v62  ;;  %v8774_v57 = vld [vmem:[#allocation16_spill] sm:$0xff] }
 0x362   :  { %3011 = vmatmul.mubr.f32.gmra.mrb[90].mxu1 %v2703_v8  ;;  %v3405_v31 = vld [vmem:[#allocation3 + $0x2b0] sm:$0xff]  ;;  %v3408_v8 = vld [vmem:[#allocation3 + $0x2c8] sm:$0xff]  ;;  %v3291_v28 = vrot.slane %v8774_v57, 4 }
 0x363   :  { %3016 = vmatprep.mubr.f32.mxu1 %v8764_v26  ;;  %v5998_v46 = vpack.c.bf16 %v3405_v31, %v3403_v5  ;;  %v3845_v5 = vld [vmem:[#allocation3 + $0x358] sm:$0xff]  ;;  %v6014_v31 = vpack.c.bf16 %v3840_v33, %v3838_v14  ;;  %v3854_v33 = vld [vmem:[#allocation3 + $0x3a0] sm:$0xff] }
 0x366   :  { %3017 = vmatmul.mubr.f32.gmra.mrb[92].mxu1 %v2705_v39  ;;  %v8775_v39 = vld [vmem:[#allocation17_spill] sm:$0xff] }
 0x367   :  { %3022 = vmatprep.mubr.f32.mxu1 %v8764_v26 }
 0x36a   :  { %5833 = vmatmul.mubr.msk.f32.gmra.mrb[94].mxu1 %vm864_vm2, %v2704_v62  ;;  %v3410_v62 = vld [vmem:[#allocation3 + $0x2d8] sm:$0xff] }
 0x36b   :  { %3093 = vmatprep.mubr.f32.mxu1 %v8764_v26  ;;  %v6000_v24 = vpack.c.bf16 %v3410_v62, %v3408_v8  ;;  %v3842_v62 = vld [vmem:[#allocation3 + $0x340] sm:$0xff] }
 0x36e   :  { %3094 = vmatmul.mubr.f32.vlgmr.msra.gmra.mrb[32].mxu1 %v8771_v15 }
 0x36f   :  { %5979 = vmatpush1.bf16.msra.mxu1 %v5978_v34  ;;  %3099 = vmatprep.mubr.f32.mxu1 %v8764_v26  ;;  %v3412_v34 = vld [vmem:[#allocation3 + $0x2e8] sm:$0xff] }
 0x370   :  { %5981 = vmatprep.subr.bf16.mxu1 %v5980_v56  ;;  %v3414_v56 = vld [vmem:[#allocation3 + $0x2f8] sm:$0xff] }
 0x371   :  { %v6004_v7 = vpack.c.bf16 %v3414_v56, %v3412_v34  ;;  %v3849_v34 = vld [vmem:[#allocation3 + $0x378] sm:$0xff] }
 0x372   :  { %3100 = vmatmul.mubr.f32.gmra.mrb[34].mxu1 %v8772_v61 }
 0x373   :  { %3105 = vmatprep.mubr.f32.mxu1 %v8764_v26  ;;  %5983 = vmatpush1.bf16.msra.mxu1 %v5982_v9  ;;  %v3413_v9 = vld [vmem:[#allocation3 + $0x2f0] sm:$0xff] }
 0x374   :  { %5985 = vmatprep.subr.bf16.mxu1 %v5984_v40  ;;  %v3835_v40 = vld [vmem:[#allocation3 + $0x308] sm:$0xff]  ;;  %v6006_v58 = vpack.c.bf16 %v3413_v9, %v3411_v42  ;;  %v3848_v42 = vld [vmem:[#allocation3 + $0x370] sm:$0xff] }
 0x375   :  { %v6008_v45 = vpack.c.bf16 %v3837_v43, %v3835_v40  ;;  %v3293_v40 = vrot.slane %v8775_v39, 4  ;;  %v3851_v43 = vld [vmem:[#allocation3 + $0x388] sm:$0xff] }
 0x376   :  { %3106 = vmatmul.mubr.f32.gmra.mrb[36].mxu1 %v8773_v3 }
 0x377   :  { %3111 = vmatprep.mubr.f32.mxu1 %v8764_v26  ;;  %5987 = vmatpush1.bf16.msra.mxu1 %v5986_v1  ;;  %v8778_v1 = vld [vmem:[#allocation20_spill] sm:$0xff]  ;;  %v3294_v2 = vsel %vm1786_vm4, %v3291_v28, %v3293_v40 }
 0x378   :  { %5989 = vmatprep.subr.bf16.mxu1 %v5988_v11  ;;  %v3834_v11 = vld [vmem:[#allocation3 + $0x300] sm:$0xff] }
 0x37a   :  { %3112 = vmatmul.mubr.f32.gmra.mrb[38].mxu1 %v8774_v57 }
 0x37b   :  { %3117 = vmatprep.mubr.f32.mxu1 %v8764_v26  ;;  %5991 = vmatpush1.bf16.msra.mxu1 %v5990_v63  ;;  %v3286_v63 = vrot.slane %v8771_v15, 4 }
 0x37c   :  { %5993 = vmatprep.subr.bf16.mxu1 %v5992_v16  ;;  %v6010_v16 = vpack.c.bf16 %v3836_v35, %v3834_v11  ;;  %v3850_v35 = vld [vmem:[#allocation3 + $0x380] sm:$0xff] }
 0x37d   :  { %v3288_v48 = vsel %vm1786_vm4, %v3286_v63, %v3287_v19  ;;  %v3855_v63 = vld [vmem:[#allocation3 + $0x3a8] sm:$0xff] }
 0x37e   :  { %3118 = vmatmul.mubr.f32.gmra.mrb[40].mxu1 %v8775_v39 }
 0x37f   :  { %3123 = vmatprep.mubr.f32.mxu1 %v8764_v26  ;;  %5995 = vmatpush1.bf16.msra.mxu1 %v5994_v30  ;;  %v3289_v30 = vrot.slane %v8773_v3, 4 }
 0x380   :  { %5997 = vmatprep.subr.bf16.mxu1 %v5996_v60  ;;  %v3843_v60 = vld [vmem:[#allocation3 + $0x348] sm:$0xff] }
 0x381   :  { %v6016_v8 = vpack.c.bf16 %v3845_v5, %v3843_v60  ;;  %v3292_v9 = vsel %vm1786_vm4, %v3289_v30, %v3291_v28  ;;  %v3297_v60 = vrot.slane %v8777_v32, 4  ;;  %v3859_v5 = vld [vmem:[#allocation3 + $0x3c8] sm:$0xff] }
 0x382   :  { %3124 = vmatmul.mubr.f32.gmra.mrb[42].mxu1 %v8776_v27 }
 0x383   :  { %3129 = vmatprep.mubr.f32.mxu1 %v8764_v26  ;;  %5999 = vmatpush1.bf16.msra.mxu1 %v5998_v46  ;;  %v3844_v46 = vld [vmem:[#allocation3 + $0x350] sm:$0xff]  ;;  %v3298_v28 = vsel %vm1786_vm4, %v3295_v41, %v3297_v60 }
 0x384   :  { %6001 = vmatprep.subr.bf16.mxu1 %v6000_v24  ;;  %v3290_v24 = vsel %vm1786_vm4, %v3287_v19, %v3289_v30  ;;  %v6018_v56 = vpack.c.bf16 %v3844_v46, %v3842_v62  ;;  %v3852_v19 = vld [vmem:[#allocation3 + $0x390] sm:$0xff]  ;;  %v3296_v30 = vsel %vm1786_vm4, %v3293_v40, %v3295_v41  ;;  %v3858_v46 = vld [vmem:[#allocation3 + $0x3c0] sm:$0xff] }
 0x386   :  { %3130 = vmatmul.mubr.f32.gmra.mrb[44].mxu1 %v8777_v32 }
 0x387   :  { %3135 = vmatprep.mubr.f32.mxu1 %v8764_v26  ;;  %6003 = vmatpush1.bf16.msra.mxu1 %v6002_v21  ;;  %v6020_v21 = vpack.c.bf16 %v3849_v34, %v3847_v50  ;;  %v3299_v50 = vrot.slane %v8778_v1, 4  ;;  %v3863_v34 = vld [vmem:[#allocation3 + $0x3e8] sm:$0xff] }
 0x388   :  { %6005 = vmatprep.subr.bf16.mxu1 %v6004_v7  ;;  %v3846_v7 = vld [vmem:[#allocation3 + $0x360] sm:$0xff] }
 0x389   :  { %v3300_v40 = vsel %vm1786_vm4, %v3297_v60, %v3299_v50 }
 0x38a   :  { %3136 = vmatmul.mubr.f32.gmra.mrb[46].mxu1 %v8778_v1 }
 0x38b   :  { %3141 = vmatprep.mubr.f32.mxu1 %v8764_v26  ;;  %6007 = vmatpush1.bf16.msra.mxu1 %v6006_v58  ;;  %v3853_v58 = vld [vmem:[#allocation3 + $0x398] sm:$0xff] }
 0x38c   :  { %6009 = vmatprep.subr.bf16.mxu1 %v6008_v45  ;;  %v6022_v45 = vpack.c.bf16 %v3848_v42, %v3846_v7  ;;  %v6024_v11 = vpack.c.bf16 %v3853_v58, %v3851_v43  ;;  %v3862_v42 = vld [vmem:[#allocation3 + $0x3e0] sm:$0xff]  ;;  %v3301_v43 = vrot.slane %v8076_v18, 4  ;;  %v4189_v58 = vld [vmem:[#allocation3 + $0x408] sm:$0xff] }
 0x38e   :  { %3142 = vmatmul.mubr.f32.gmra.mrb[48].mxu1 %v8076_v18 }
 0x38f   :  { %3147 = vmatprep.mubr.f32.mxu1 %v8764_v26 }
 0x392   :  { %3148 = vmatmul.mubr.f32.gmra.mrb[50].mxu1 %v8084_v0 }
 0x393   :  { %3153 = vmatprep.mubr.f32.mxu1 %v8764_v26 }
 0x396   :  { %3154 = vmatmul.mubr.f32.gmra.mrb[52].mxu1 %v8092_v29 }
 0x397   :  { %3159 = vmatprep.mubr.f32.mxu1 %v8764_v26 }
 0x39a   :  { %3160 = vmatmul.mubr.f32.gmra.mrb[54].mxu1 %v8100_v54 }
 0x39b   :  { %3165 = vmatprep.mubr.f32.mxu1 %v8764_v26 }
 0x39e   :  { %3166 = vmatmul.mubr.f32.gmra.mrb[56].mxu1 %v8108_v37 }
 0x39f   :  { %3171 = vmatprep.mubr.f32.mxu1 %v8764_v26 }
 0x3a2   :  { %3172 = vmatmul.mubr.f32.gmra.mrb[58].mxu1 %v8116_v52 }
 0x3a3   :  { %3177 = vmatprep.mubr.f32.mxu1 %v8764_v26 }
 0x3a6   :  { %3178 = vmatmul.mubr.f32.gmra.mrb[60].mxu1 %v8126_v12 }
 0x3a7   :  { %3183 = vmatprep.mubr.f32.mxu1 %v8764_v26 }
 0x3aa   :  { %3184 = vmatmul.mubr.f32.gmra.mrb[62].mxu1 %v8139_v47 }
 0x3ab   :  { %3189 = vmatprep.mubr.f32.mxu1 %v8764_v26 }
 0x3ae   :  { %3190 = vmatmul.mubr.f32.gmra.mrb[64].mxu1 %v8148_v23 }
 0x3af   :  { %3195 = vmatprep.mubr.f32.mxu1 %v8764_v26 }
 0x3b2   :  { %3196 = vmatmul.mubr.f32.gmra.mrb[66].mxu1 %v8158_v13 }
 0x3b3   :  { %3201 = vmatprep.mubr.f32.mxu1 %v8764_v26 }
 0x3b6   :  { %3202 = vmatmul.mubr.f32.gmra.mrb[68].mxu1 %v8168_v51 }
 0x3b7   :  { %3207 = vmatprep.mubr.f32.mxu1 %v8764_v26 }
 0x3ba   :  { %3208 = vmatmul.mubr.f32.gmra.mrb[70].mxu1 %v8178_v25 }
 0x3bb   :  { %3213 = vmatprep.mubr.f32.mxu1 %v8764_v26 }
 0x3be   :  { %3214 = vmatmul.mubr.f32.gmra.mrb[72].mxu1 %v8188_v20 }
 0x3bf   :  { %3219 = vmatprep.mubr.f32.mxu1 %v8764_v26 }
 0x3c2   :  { %3220 = vmatmul.mubr.f32.gmra.mrb[74].mxu1 %v8198_v44 }
 0x3c3   :  { %3225 = vmatprep.mubr.f32.mxu1 %v8764_v26 }
 0x3c6   :  { %3226 = vmatmul.mubr.f32.gmra.mrb[76].mxu1 %v8208_v53 }
 0x3c7   :  { %3231 = vmatprep.mubr.f32.mxu1 %v8764_v26 }
 0x3ca   :  { %3232 = vmatmul.mubr.f32.gmra.mrb[78].mxu1 %v8218_v59 }
 0x3cb   :  { %3237 = vmatprep.mubr.f32.mxu1 %v8764_v26 }
 0x3ce   :  { %3238 = vmatmul.mubr.f32.gmra.mrb[80].mxu1 %v8228_v22 }
 0x3cf   :  { %3243 = vmatprep.mubr.f32.mxu1 %v8764_v26 }
 0x3d2   :  { %3244 = vmatmul.mubr.f32.gmra.mrb[82].mxu1 %v8238_v49 }
 0x3d3   :  { %3249 = vmatprep.mubr.f32.mxu1 %v8764_v26 }
 0x3d6   :  { %3250 = vmatmul.mubr.f32.gmra.mrb[84].mxu1 %v8248_v17 }
 0x3d7   :  { %3255 = vmatprep.mubr.f32.mxu1 %v8764_v26 }
 0x3da   :  { %3256 = vmatmul.mubr.f32.gmra.mrb[86].mxu1 %v8258_v4 }
 0x3db   :  { %3261 = vmatprep.mubr.f32.mxu1 %v8764_v26 }
 0x3de   :  { %3262 = vmatmul.mubr.f32.gmra.mrb[88].mxu1 %v8268_v10 }
 0x3df   :  { %3267 = vmatprep.mubr.f32.mxu1 %v8764_v26 }
 0x3e2   :  { %3268 = vmatmul.mubr.f32.gmra.mrb[90].mxu1 %v8274_v55 }
 0x3e3   :  { %3273 = vmatprep.mubr.f32.mxu1 %v8764_v26 }
 0x3e6   :  { %3274 = vmatmul.mubr.f32.gmra.mrb[92].mxu1 %v8281_v6 }
 0x3e7   :  { %3279 = vmatprep.mubr.f32.mxu1 %v8764_v26 }
 0x3ea   :  { %3280 = vmatmul.mubr.f32.gmra.mrb[94].mxu1 %v8283_v36 }
 0x3eb   :  { %3479 = vmatprep.mubr.f32.mxu1 %v8764_v26 }
 0x3ee   :  { %3480 = vmatmul.mubr.f32.vlgmr.msra.gmra.mrb[32].mxu1 %v3288_v48  ;;  %v3856_v48 = vld [vmem:[#allocation3 + $0x3b0] sm:$0xff] }
 0x3ef   :  { %6011 = vmatpush1.bf16.msra.mxu1 %v6010_v16  ;;  %3485 = vmatprep.mubr.f32.mxu1 %v8764_v26  ;;  %v3857_v16 = vld [vmem:[#allocation3 + $0x3b8] sm:$0xff] }
 0x3f0   :  { %6013 = vmatprep.subr.bf16.mxu1 %v6012_v38  ;;  %v6026_v38 = vpack.c.bf16 %v3852_v19, %v3850_v35  ;;  %v6028_v14 = vpack.c.bf16 %v3857_v16, %v3855_v63  ;;  %v3302_v19 = vsel %vm1786_vm4, %v3299_v50, %v3301_v43  ;;  %v3305_v63 = vrot.slane %v8092_v29, 4 }
 0x3f2   :  { %3486 = vmatmul.mubr.f32.gmra.mrb[34].mxu1 %v3290_v24  ;;  %v3860_v24 = vld [vmem:[#allocation3 + $0x3d0] sm:$0xff] }
 0x3f3   :  { %3491 = vmatprep.mubr.f32.mxu1 %v8764_v26  ;;  %6015 = vmatpush1.bf16.msra.mxu1 %v6014_v31  ;;  %v3861_v31 = vld [vmem:[#allocation3 + $0x3d8] sm:$0xff] }
 0x3f4   :  { %6017 = vmatprep.subr.bf16.mxu1 %v6016_v8  ;;  %v6030_v8 = vpack.c.bf16 %v3856_v48, %v3854_v33  ;;  %v6032_v62 = vpack.c.bf16 %v3861_v31, %v3859_v5  ;;  %v3309_v33 = vrot.slane %v8108_v37, 4  ;;  %v3313_v5 = vrot.slane %v8126_v12, 4 }
 0x3f6   :  { %3492 = vmatmul.mubr.f32.gmra.mrb[36].mxu1 %v3292_v9  ;;  %v3864_v9 = vld [vmem:[#allocation3 + $0x3f0] sm:$0xff] }
 0x3f7   :  { %3497 = vmatprep.mubr.f32.mxu1 %v8764_v26  ;;  %6019 = vmatpush1.bf16.msra.mxu1 %v6018_v56  ;;  %v3865_v56 = vld [vmem:[#allocation3 + $0x3f8] sm:$0xff] }
 0x3f8   :  { %6021 = vmatprep.subr.bf16.mxu1 %v6020_v21  ;;  %v6034_v21 = vpack.c.bf16 %v3860_v24, %v3858_v46  ;;  %v6036_v7 = vpack.c.bf16 %v3865_v56, %v3863_v34  ;;  %v3317_v46 = vrot.slane %v8148_v23, 4  ;;  %v3321_v34 = vrot.slane %v8168_v51, 4 }
 0x3fa   :  { %3498 = vmatmul.mubr.f32.gmra.mrb[38].mxu1 %v3294_v2  ;;  %v3303_v2 = vrot.slane %v8084_v0, 4 }
 0x3fb   :  { %3503 = vmatprep.mubr.f32.mxu1 %v8764_v26  ;;  %6023 = vmatpush1.bf16.msra.mxu1 %v6022_v45  ;;  %v4191_v45 = vld [vmem:[#allocation3 + $0x418] sm:$0xff] }
 0x3fc   :  { %6025 = vmatprep.subr.bf16.mxu1 %v6024_v11  ;;  %v6038_v11 = vpack.c.bf16 %v3864_v9, %v3862_v42  ;;  %v6040_v35 = vpack.c.bf16 %v4191_v45, %v4189_v58  ;;  %v3304_v41 = vsel %vm1786_vm4, %v3301_v43, %v3303_v2  ;;  %v3306_v16 = vsel %vm1786_vm4, %v3303_v2, %v3305_v63 }
 0x3fd   :  { %v3325_v42 = vrot.slane %v8188_v20, 4  ;;  %v3329_v58 = vrot.slane %v8208_v53, 4 }
 0x3fe   :  { %3504 = vmatmul.mubr.f32.gmra.mrb[40].mxu1 %v3296_v30  ;;  %v3311_v30 = vrot.slane %v8116_v52, 4 }
 0x3ff   :  { %3509 = vmatprep.mubr.f32.mxu1 %v8764_v26  ;;  %6027 = vmatpush1.bf16.msra.mxu1 %v6026_v38  ;;  %v3307_v38 = vrot.slane %v8100_v54, 4 }
 0x400   :  { %6029 = vmatprep.subr.bf16.mxu1 %v6028_v14  ;;  %v3312_v60 = vsel %vm1786_vm4, %v3309_v33, %v3311_v30  ;;  %v3314_v31 = vsel %vm1786_vm4, %v3311_v30, %v3313_v5 }
 0x401   :  { %v3308_v14 = vsel %vm1786_vm4, %v3305_v63, %v3307_v38  ;;  %v3310_v48 = vsel %vm1786_vm4, %v3307_v38, %v3309_v33 }
 0x402   :  { %3510 = vmatmul.mubr.f32.gmra.mrb[42].mxu1 %v3298_v28  ;;  %v3319_v28 = vrot.slane %v8158_v13, 4 }
 0x403   :  { %3515 = vmatprep.mubr.f32.mxu1 %v8764_v26  ;;  %6031 = vmatpush1.bf16.msra.mxu1 %v6030_v8  ;;  %v3315_v8 = vrot.slane %v8139_v47, 4 }
 0x404   :  { %6033 = vmatprep.subr.bf16.mxu1 %v6032_v62  ;;  %v3320_v50 = vsel %vm1786_vm4, %v3317_v46, %v3319_v28  ;;  %v3322_v56 = vsel %vm1786_vm4, %v3319_v28, %v3321_v34  ;;  %v4190_v28 = vld [vmem:[#allocation3 + $0x410] sm:$0xff] }
 0x405   :  { %v3316_v62 = vsel %vm1786_vm4, %v3313_v5, %v3315_v8  ;;  %v3318_v24 = vsel %vm1786_vm4, %v3315_v8, %v3317_v46 }
 0x406   :  { %3516 = vmatmul.mubr.f32.gmra.mrb[44].mxu1 %v3300_v40  ;;  %v3327_v40 = vrot.slane %v8198_v44, 4 }
 0x407   :  { %3521 = vmatprep.mubr.f32.mxu1 %v8764_v26  ;;  %6035 = vmatpush1.bf16.msra.mxu1 %v6034_v21  ;;  %v3323_v21 = vrot.slane %v8178_v25, 4 }
 0x408   :  { %6037 = vmatprep.subr.bf16.mxu1 %v6036_v7  ;;  %v3328_v43 = vsel %vm1786_vm4, %v3325_v42, %v3327_v40  ;;  %v3330_v45 = vsel %vm1786_vm4, %v3327_v40, %v3329_v58  ;;  %v4194_v40 = vld [vmem:[#allocation3 + $0x430] sm:$0xff] }
 0x409   :  { %v3324_v7 = vsel %vm1786_vm4, %v3321_v34, %v3323_v21  ;;  %v3326_v9 = vsel %vm1786_vm4, %v3323_v21, %v3325_v42  ;;  %v4193_v34 = vld [vmem:[#allocation3 + $0x428] sm:$0xff]  ;;  %v3737_v21 = vrot.slane %v8771_v15, 6 }
 0x40a   :  { %3522 = vmatmul.mubr.f32.gmra.mrb[46].mxu1 %v3302_v19  ;;  %v3333_v19 = vrot.slane %v8228_v22, 4 }
 0x40b   :  { %3527 = vmatprep.mubr.f32.mxu1 %v8764_v26  ;;  %6039 = vmatpush1.bf16.msra.mxu1 %v6038_v11  ;;  %v3331_v11 = vrot.slane %v8218_v59, 4 }
 0x40c   :  { %6041 = vmatprep.subr.bf16.mxu1 %v6040_v35 }
 0x40d   :  { %v3332_v35 = vsel %vm1786_vm4, %v3329_v58, %v3331_v11  ;;  %v3334_v2 = vsel %vm1786_vm4, %v3331_v11, %v3333_v19  ;;  %v3740_v58 = vrot.slane %v8773_v3, 6  ;;  %v4199_v11 = vld [vmem:[#allocation3 + $0x458] sm:$0xff] }
 0x40e   :  { %3528 = vmatmul.mubr.f32.gmra.mrb[48].mxu1 %v3304_v41  ;;  %v3335_v41 = vrot.slane %v8238_v49, 4 }
 0x40f   :  { %3533 = vmatprep.mubr.f32.mxu1 %v8764_v26 }
 0x410   :  { %v3336_v63 = vsel %vm1786_vm4, %v3333_v19, %v3335_v41 }
 0x412   :  { %3534 = vmatmul.mubr.f32.gmra.mrb[50].mxu1 %v3306_v16  ;;  %v3337_v16 = vrot.slane %v8248_v17, 4 }
 0x413   :  { %3539 = vmatprep.mubr.f32.mxu1 %v8764_v26 }
 0x414   :  { %v3338_v38 = vsel %vm1786_vm4, %v3335_v41, %v3337_v16  ;;  %v4198_v41 = vld [vmem:[#allocation3 + $0x450] sm:$0xff] }
 0x416   :  { %3540 = vmatmul.mubr.f32.gmra.mrb[52].mxu1 %v3308_v14  ;;  %v3339_v14 = vrot.slane %v8258_v4, 4 }
 0x417   :  { %3545 = vmatprep.mubr.f32.mxu1 %v8764_v26 }
 0x418   :  { %v3340_v33 = vsel %vm1786_vm4, %v3337_v16, %v3339_v14  ;;  %v4201_v16 = vld [vmem:[#allocation3 + $0x468] sm:$0xff] }
 0x41a   :  { %3546 = vmatmul.mubr.f32.gmra.mrb[54].mxu1 %v3310_v48  ;;  %v3341_v48 = vrot.slane %v8268_v10, 4 }
 0x41b   :  { %3551 = vmatprep.mubr.f32.mxu1 %v8764_v26 }
 0x41c   :  { %v3342_v30 = vsel %vm1786_vm4, %v3339_v14, %v3341_v48 }
 0x41e   :  { %3552 = vmatmul.mubr.f32.gmra.mrb[56].mxu1 %v3312_v60  ;;  %v3343_v60 = vrot.slane %v8274_v55, 4 }
 0x41f   :  { %3557 = vmatprep.mubr.f32.mxu1 %v8764_v26 }
 0x420   :  { %v3344_v5 = vsel %vm1786_vm4, %v3341_v48, %v3343_v60  ;;  %v4200_v48 = vld [vmem:[#allocation3 + $0x460] sm:$0xff] }
 0x422   :  { %3558 = vmatmul.mubr.f32.gmra.mrb[58].mxu1 %v3314_v31  ;;  %v3345_v31 = vrot.slane %v8281_v6, 4 }
 0x423   :  { %3563 = vmatprep.mubr.f32.mxu1 %v8764_v26 }
 0x424   :  { %v3346_v8 = vsel %vm1786_vm4, %v3343_v60, %v3345_v31 }
 0x426   :  { %3564 = vmatmul.mubr.f32.gmra.mrb[60].mxu1 %v3316_v62  ;;  %v3347_v62 = vrot.slane %v8283_v36, 4 }
 0x427   :  { %3569 = vmatprep.mubr.f32.mxu1 %v8764_v26 }
 0x428   :  { %v3348_v46 = vsel %vm1786_vm4, %v3345_v31, %v3347_v62  ;;  %v4205_v31 = vld [vmem:[#allocation3 + $0x488] sm:$0xff] }
 0x42a   :  { %3570 = vmatmul.mubr.f32.gmra.mrb[62].mxu1 %v3318_v24  ;;  %v4188_v24 = vld [vmem:[#allocation3 + $0x400] sm:$0xff] }
 0x42b   :  { %3575 = vmatprep.mubr.f32.mxu1 %v8764_v26 }
 0x42e   :  { %3576 = vmatmul.mubr.f32.gmra.mrb[64].mxu1 %v3320_v50  ;;  %v3738_v50 = vrot.slane %v8772_v61, 6 }
 0x42f   :  { %3581 = vmatprep.mubr.f32.mxu1 %v8764_v26 }
 0x430   :  { %v3741_v15 = vsel %vm3736_vm5, %v3738_v50, %v3740_v58 }
 0x432   :  { %3582 = vmatmul.mubr.f32.gmra.mrb[66].mxu1 %v3322_v56  ;;  %v4195_v56 = vld [vmem:[#allocation3 + $0x438] sm:$0xff] }
 0x433   :  { %3587 = vmatprep.mubr.f32.mxu1 %v8764_v26  ;;  %v6044_v42 = vpack.c.bf16 %v4195_v56, %v4193_v34  ;;  %v3746_v34 = vrot.slane %v8776_v27, 6  ;;  %v4209_v56 = vld [vmem:[#allocation3 + $0x4a8] sm:$0xff] }
 0x436   :  { %3588 = vmatmul.mubr.f32.gmra.mrb[68].mxu1 %v3324_v7  ;;  %v6042_v7 = vpack.c.bf16 %v4190_v28, %v4188_v24  ;;  %v4204_v24 = vld [vmem:[#allocation3 + $0x480] sm:$0xff]  ;;  %v4206_v28 = vld [vmem:[#allocation3 + $0x490] sm:$0xff] }
 0x437   :  { %3593 = vmatprep.mubr.f32.mxu1 %v8764_v26 }
 0x43a   :  { %3594 = vmatmul.mubr.f32.gmra.mrb[70].mxu1 %v3326_v9  ;;  %v4192_v9 = vld [vmem:[#allocation3 + $0x420] sm:$0xff] }
 0x43b   :  { %3599 = vmatprep.mubr.f32.mxu1 %v8764_v26 }
 0x43e   :  { %3600 = vmatmul.mubr.f32.gmra.mrb[72].mxu1 %v3328_v43  ;;  %v3739_v43 = vsel %vm3736_vm5, %v3737_v21, %v3738_v50  ;;  %v4211_v21 = vld [vmem:[#allocation3 + $0x4b8] sm:$0xff] }
 0x43f   :  { %3605 = vmatprep.mubr.f32.mxu1 %v8764_v26 }
 0x442   :  { %3606 = vmatmul.mubr.f32.gmra.mrb[74].mxu1 %v3330_v45  ;;  %v4197_v45 = vld [vmem:[#allocation3 + $0x448] sm:$0xff] }
 0x443   :  { %3611 = vmatprep.mubr.f32.mxu1 %v8764_v26  ;;  %v6048_v19 = vpack.c.bf16 %v4199_v11, %v4197_v45  ;;  %v4213_v45 = vld [vmem:[#allocation3 + $0x4c8] sm:$0xff]  ;;  %v4215_v11 = vld [vmem:[#allocation3 + $0x4d8] sm:$0xff] }
 0x446   :  { %3612 = vmatmul.mubr.f32.gmra.mrb[76].mxu1 %v3332_v35  ;;  %v6046_v35 = vpack.c.bf16 %v4194_v40, %v4192_v9  ;;  %v4208_v9 = vld [vmem:[#allocation3 + $0x4a0] sm:$0xff]  ;;  %v4210_v40 = vld [vmem:[#allocation3 + $0x4b0] sm:$0xff] }
 0x447   :  { %3617 = vmatprep.mubr.f32.mxu1 %v8764_v26 }
 0x44a   :  { %3618 = vmatmul.mubr.f32.gmra.mrb[78].mxu1 %v3334_v2  ;;  %v4196_v2 = vld [vmem:[#allocation3 + $0x440] sm:$0xff] }
 0x44b   :  { %3623 = vmatprep.mubr.f32.mxu1 %v8764_v26  ;;  %v6050_v14 = vpack.c.bf16 %v4198_v41, %v4196_v2  ;;  %v4212_v2 = vld [vmem:[#allocation3 + $0x4c0] sm:$0xff]  ;;  %v4214_v41 = vld [vmem:[#allocation3 + $0x4d0] sm:$0xff] }
 0x44e   :  { %3624 = vmatmul.mubr.f32.gmra.mrb[80].mxu1 %v3336_v63  ;;  %v3742_v63 = vrot.slane %v8774_v57, 6 }
 0x44f   :  { %3629 = vmatprep.mubr.f32.mxu1 %v8764_v26 }
 0x450   :  { %v3743_v60 = vsel %vm3736_vm5, %v3740_v58, %v3742_v63  ;;  %v3748_v58 = vrot.slane %v8777_v32, 6 }
 0x452   :  { %3630 = vmatmul.mubr.f32.gmra.mrb[82].mxu1 %v3338_v38  ;;  %v4203_v38 = vld [vmem:[#allocation3 + $0x478] sm:$0xff] }
 0x453   :  { %3635 = vmatprep.mubr.f32.mxu1 %v8764_v26 }
 0x456   :  { %3636 = vmatmul.mubr.f32.gmra.mrb[84].mxu1 %v3340_v33  ;;  %v6052_v33 = vpack.c.bf16 %v4203_v38, %v4201_v16  ;;  %v4217_v16 = vld [vmem:[#allocation3 + $0x4e8] sm:$0xff]  ;;  %v4219_v38 = vld [vmem:[#allocation3 + $0x4f8] sm:$0xff] }
 0x457   :  { %3641 = vmatprep.mubr.f32.mxu1 %v8764_v26 }
 0x45a   :  { %3642 = vmatmul.mubr.f32.gmra.mrb[86].mxu1 %v3342_v30  ;;  %v4202_v30 = vld [vmem:[#allocation3 + $0x470] sm:$0xff] }
 0x45b   :  { %3647 = vmatprep.mubr.f32.mxu1 %v8764_v26 }
 0x45e   :  { %3648 = vmatmul.mubr.f32.gmra.mrb[88].mxu1 %v3344_v5  ;;  %v3744_v5 = vrot.slane %v8775_v39, 6 }
 0x45f   :  { %3653 = vmatprep.mubr.f32.mxu1 %v8764_v26 }
 0x460   :  { %v3745_v50 = vsel %vm3736_vm5, %v3742_v63, %v3744_v5  ;;  %v3750_v63 = vrot.slane %v8778_v1, 6 }
 0x462   :  { %3654 = vmatmul.mubr.f32.gmra.mrb[90].mxu1 %v3346_v8  ;;  %v4207_v8 = vld [vmem:[#allocation3 + $0x498] sm:$0xff] }
 0x463   :  { %3659 = vmatprep.mubr.f32.mxu1 %v8764_v26 }
 0x466   :  { %3660 = vmatmul.mubr.f32.gmra.mrb[92].mxu1 %v3348_v46  ;;  %v6056_v46 = vpack.c.bf16 %v4207_v8, %v4205_v31 }
 0x467   :  { %3665 = vmatprep.mubr.f32.mxu1 %v8764_v26 }
 0x46a   :  { %5834 = vmatmul.mubr.msk.f32.gmra.mrb[94].mxu1 %vm1786_vm4, %v3347_v62  ;;  %v6054_v62 = vpack.c.bf16 %v4202_v30, %v4200_v48  ;;  %v4216_v48 = vld [vmem:[#allocation3 + $0x4e0] sm:$0xff]  ;;  %v4218_v30 = vld [vmem:[#allocation3 + $0x4f0] sm:$0xff] }
 0x46b   :  { %3930 = vmatprep.mubr.f32.mxu1 %v8764_v26  ;;  %v6070_v31 = vpack.c.bf16 %v4218_v30, %v4216_v48  ;;  %v3780_v48 = vrot.slane %v8208_v53, 6 }
 0x46e   :  { %3931 = vmatmul.mubr.f32.vlgmr.msra.gmra.mrb[32].mxu1 %v3739_v43  ;;  %v3747_v43 = vsel %vm3736_vm5, %v3744_v5, %v3746_v34  ;;  %v3752_v5 = vrot.slane %v8076_v18, 6 }
 0x46f   :  { %6043 = vmatpush1.bf16.msra.mxu1 %v6042_v7  ;;  %3936 = vmatprep.mubr.f32.mxu1 %v8764_v26  ;;  %v6058_v7 = vpack.c.bf16 %v4206_v28, %v4204_v24  ;;  %v3756_v24 = vrot.slane %v8092_v29, 6 }
 0x470   :  { %6045 = vmatprep.subr.bf16.mxu1 %v6044_v42  ;;  %v6060_v42 = vpack.c.bf16 %v4211_v21, %v4209_v56  ;;  %v3753_v8 = vsel %vm3736_vm5, %v3750_v63, %v3752_v5  ;;  %v3760_v56 = vrot.slane %v8108_v37, 6 }
 0x472   :  { %3937 = vmatmul.mubr.f32.gmra.mrb[34].mxu1 %v3741_v15  ;;  %v3749_v15 = vsel %vm3736_vm5, %v3746_v34, %v3748_v58 }
 0x473   :  { %3942 = vmatprep.mubr.f32.mxu1 %v8764_v26  ;;  %6047 = vmatpush1.bf16.msra.mxu1 %v6046_v35  ;;  %v6062_v35 = vpack.c.bf16 %v4210_v40, %v4208_v9  ;;  %v3764_v9 = vrot.slane %v8126_v12, 6 }
 0x474   :  { %6049 = vmatprep.subr.bf16.mxu1 %v6048_v19  ;;  %v6064_v19 = vpack.c.bf16 %v4215_v11, %v4213_v45  ;;  %v3768_v45 = vrot.slane %v8148_v23, 6 }
 0x476   :  { %3943 = vmatmul.mubr.f32.gmra.mrb[36].mxu1 %v3743_v60  ;;  %v3751_v60 = vsel %vm3736_vm5, %v3748_v58, %v3750_v63 }
 0x477   :  { %3948 = vmatprep.mubr.f32.mxu1 %v8764_v26  ;;  %6051 = vmatpush1.bf16.msra.mxu1 %v6050_v14  ;;  %v6066_v14 = vpack.c.bf16 %v4214_v41, %v4212_v2  ;;  %v3772_v2 = vrot.slane %v8168_v51, 6 }
 0x478   :  { %6053 = vmatprep.subr.bf16.mxu1 %v6052_v33  ;;  %v6068_v33 = vpack.c.bf16 %v4219_v38, %v4217_v16  ;;  %v3776_v16 = vrot.slane %v8188_v20, 6 }
 0x47a   :  { %3949 = vmatmul.mubr.f32.gmra.mrb[38].mxu1 %v3745_v50  ;;  %v3758_v50 = vrot.slane %v8100_v54, 6 }
 0x47b   :  { %3954 = vmatprep.mubr.f32.mxu1 %v8764_v26  ;;  %6055 = vmatpush1.bf16.msra.mxu1 %v6054_v62  ;;  %v3754_v62 = vrot.slane %v8084_v0, 6 }
 0x47c   :  { %6057 = vmatprep.subr.bf16.mxu1 %v6056_v46  ;;  %v3759_v34 = vsel %vm3736_vm5, %v3756_v24, %v3758_v50  ;;  %v3761_v21 = vsel %vm3736_vm5, %v3758_v50, %v3760_v56  ;;  %v3790_v50 = vrot.slane %v8258_v4, 6 }
 0x47d   :  { %v3755_v46 = vsel %vm3736_vm5, %v3752_v5, %v3754_v62  ;;  %v3757_v28 = vsel %vm3736_vm5, %v3754_v62, %v3756_v24  ;;  %v3786_v62 = vrot.slane %v8238_v49, 6  ;;  %v3788_v24 = vrot.slane %v8248_v17, 6 }
 0x47e   :  { %3955 = vmatmul.mubr.f32.gmra.mrb[40].mxu1 %v3747_v43  ;;  %v3766_v43 = vrot.slane %v8139_v47, 6 }
 0x47f   :  { %3960 = vmatprep.mubr.f32.mxu1 %v8764_v26  ;;  %6059 = vmatpush1.bf16.msra.mxu1 %v6058_v7  ;;  %v3762_v7 = vrot.slane %v8116_v52, 6 }
 0x480   :  { %6061 = vmatprep.subr.bf16.mxu1 %v6060_v42  ;;  %v3767_v58 = vsel %vm3736_vm5, %v3764_v9, %v3766_v43  ;;  %v3769_v11 = vsel %vm3736_vm5, %v3766_v43, %v3768_v45  ;;  %v3798_v43 = vrot.slane %v8283_v36, 6 }
 0x481   :  { %v3763_v42 = vsel %vm3736_vm5, %v3760_v56, %v3762_v7  ;;  %v3765_v40 = vsel %vm3736_vm5, %v3762_v7, %v3764_v9  ;;  %v3792_v56 = vrot.slane %v8268_v10, 6  ;;  %v3794_v7 = vrot.slane %v8274_v55, 6 }
 0x482   :  { %3961 = vmatmul.mubr.f32.gmra.mrb[42].mxu1 %v3749_v15  ;;  %v3774_v15 = vrot.slane %v8178_v25, 6  ;;  %v3796_v9 = vrot.slane %v8281_v6, 6 }
 0x483   :  { %3966 = vmatprep.mubr.f32.mxu1 %v8764_v26  ;;  %6063 = vmatpush1.bf16.msra.mxu1 %v6062_v35  ;;  %v3770_v35 = vrot.slane %v8158_v13, 6 }
 0x484   :  { %6065 = vmatprep.subr.bf16.mxu1 %v6064_v19  ;;  %v3775_v63 = vsel %vm3736_vm5, %v3772_v2, %v3774_v15  ;;  %v3777_v38 = vsel %vm3736_vm5, %v3774_v15, %v3776_v16  ;;  %v4996_v15 = vld [vmem:[#allocation5 + $0x1d8] sm:$0xff] }
 0x485   :  { %v3771_v19 = vsel %vm3736_vm5, %v3768_v45, %v3770_v35  ;;  %v3773_v41 = vsel %vm3736_vm5, %v3770_v35, %v3772_v2  ;;  %v4992_v45 = vld [vmem:[#allocation5 + $0x1b8] sm:$0xff] }
 0x486   :  { %3967 = vmatmul.mubr.f32.gmra.mrb[44].mxu1 %v3751_v60  ;;  %v3782_v60 = vrot.slane %v8218_v59, 6 }
 0x487   :  { %3972 = vmatprep.mubr.f32.mxu1 %v8764_v26  ;;  %6067 = vmatpush1.bf16.msra.mxu1 %v6066_v14  ;;  %v3778_v14 = vrot.slane %v8198_v44, 6 }
 0x488   :  { %6069 = vmatprep.subr.bf16.mxu1 %v6068_v33  ;;  %v3783_v5 = vsel %vm3736_vm5, %v3780_v48, %v3782_v60 }
 0x489   :  { %v3779_v33 = vsel %vm3736_vm5, %v3776_v16, %v3778_v14  ;;  %v3781_v30 = vsel %vm3736_vm5, %v3778_v14, %v3780_v48  ;;  %v8779_v48 = vld [vmem:[#allocation10_spill] sm:$0xff] }
 0x48a   :  { %3973 = vmatmul.mubr.f32.gmra.mrb[46].mxu1 %v3753_v8 }
 0x48b   :  { %3978 = vmatprep.mubr.f32.mxu1 %v8764_v26  ;;  %6071 = vmatpush1.bf16.msra.mxu1 %v6070_v31  ;;  %v3784_v31 = vrot.slane %v8228_v22, 6 }
 0x48d   :  { %v3785_v8 = vsel %vm3736_vm5, %v3782_v60, %v3784_v31  ;;  %v8780_v60 = vld [vmem:[#allocation11_spill] sm:$0xff] }
 0x48e   :  { %3979 = vmatmul.mubr.f32.gmra.mrb[48].mxu1 %v3755_v46  ;;  %v3787_v46 = vsel %vm3736_vm5, %v3784_v31, %v3786_v62 }
 0x48f   :  { %3984 = vmatprep.mubr.f32.mxu1 %v8764_v26 }
 0x492   :  { %3985 = vmatmul.mubr.f32.gmra.mrb[50].mxu1 %v3757_v28  ;;  %v3789_v28 = vsel %vm3736_vm5, %v3786_v62, %v3788_v24 }
 0x493   :  { %3990 = vmatprep.mubr.f32.mxu1 %v8764_v26 }
 0x496   :  { %3991 = vmatmul.mubr.f32.gmra.mrb[52].mxu1 %v3759_v34  ;;  %v3791_v34 = vsel %vm3736_vm5, %v3788_v24, %v3790_v50 }
 0x497   :  { %3996 = vmatprep.mubr.f32.mxu1 %v8764_v26 }
 0x49a   :  { %3997 = vmatmul.mubr.f32.gmra.mrb[54].mxu1 %v3761_v21  ;;  %v3793_v21 = vsel %vm3736_vm5, %v3790_v50, %v3792_v56 }
 0x49b   :  { %4002 = vmatprep.mubr.f32.mxu1 %v8764_v26 }
 0x49e   :  { %4003 = vmatmul.mubr.f32.gmra.mrb[56].mxu1 %v3763_v42  ;;  %v3795_v42 = vsel %vm3736_vm5, %v3792_v56, %v3794_v7 }
 0x49f   :  { %4008 = vmatprep.mubr.f32.mxu1 %v8764_v26 }
 0x4a2   :  { %4009 = vmatmul.mubr.f32.gmra.mrb[58].mxu1 %v3765_v40  ;;  %v3797_v40 = vsel %vm3736_vm5, %v3794_v7, %v3796_v9  ;;  %v5000_v7 = vld [vmem:[#allocation5 + $0x1f8] sm:$0xff] }
 0x4a3   :  { %4014 = vmatprep.mubr.f32.mxu1 %v8764_v26 }
 0x4a6   :  { %4015 = vmatmul.mubr.f32.gmra.mrb[60].mxu1 %v3767_v58  ;;  %v3799_v58 = vsel %vm3736_vm5, %v3796_v9, %v3798_v43 }
 0x4a7   :  { %4020 = vmatprep.mubr.f32.mxu1 %v8764_v26 }
 0x4aa   :  { %4021 = vmatmul.mubr.f32.gmra.mrb[62].mxu1 %v3769_v11  ;;  %v4989_v11 = vld [vmem:[#allocation5 + $0x1a0] sm:$0xff] }
 0x4ab   :  { %4026 = vmatprep.mubr.f32.mxu1 %v8764_v26 }
 0x4ae   :  { %4027 = vmatmul.mubr.f32.gmra.mrb[64].mxu1 %v3771_v19  ;;  %v4991_v19 = vld [vmem:[#allocation5 + $0x1b0] sm:$0xff] }
 0x4af   :  { %4032 = vmatprep.mubr.f32.mxu1 %v8764_v26  ;;  %v6094_v2 = vpack.c.bf16 %v4991_v19, %v4989_v11 }
 0x4b2   :  { %4033 = vmatmul.mubr.f32.gmra.mrb[66].mxu1 %v3773_v41  ;;  %v4994_v41 = vld [vmem:[#allocation5 + $0x1c8] sm:$0xff] }
 0x4b3   :  { %4038 = vmatprep.mubr.f32.mxu1 %v8764_v26  ;;  %v6096_v16 = vpack.c.bf16 %v4996_v15, %v4994_v41 }
 0x4b6   :  { %4039 = vmatmul.mubr.f32.gmra.mrb[68].mxu1 %v3775_v63  ;;  %v4993_v63 = vld [vmem:[#allocation5 + $0x1c0] sm:$0xff] }
 0x4b7   :  { %4044 = vmatprep.mubr.f32.mxu1 %v8764_v26 }
 0x4ba   :  { %4045 = vmatmul.mubr.f32.gmra.mrb[70].mxu1 %v3777_v38  ;;  %v4995_v38 = vld [vmem:[#allocation5 + $0x1d0] sm:$0xff] }
 0x4bb   :  { %4050 = vmatprep.mubr.f32.mxu1 %v8764_v26  ;;  %v6098_v14 = vpack.c.bf16 %v4995_v38, %v4993_v63 }
 0x4be   :  { %4051 = vmatmul.mubr.f32.gmra.mrb[72].mxu1 %v3779_v33  ;;  %v4541_v33 = vld [vmem:[%s8730_s4] sm:$0x3] }
 0x4bf   :  { %4056 = vmatprep.mubr.f32.mxu1 %v8764_v26 }
 0x4c2   :  { %4057 = vmatmul.mubr.f32.gmra.mrb[74].mxu1 %v3781_v30  ;;  %v8618_v30 = vrot.slane %v4541_v33, %v8779_v48 }
 0x4c3   :  { %4062 = vmatprep.mubr.f32.mxu1 %v8764_v26 }
 0x4c6   :  { %4063 = vmatmul.mubr.f32.gmra.mrb[76].mxu1 %v3783_v5  ;;  %v8621_v5 = vrot.slane %v4541_v33, %v8780_v60 }
 0x4c7   :  { %4068 = vmatprep.mubr.f32.mxu1 %v8764_v26 }
 0x4ca   :  { %4069 = vmatmul.mubr.f32.gmra.mrb[78].mxu1 %v3785_v8 }
 0x4cb   :  { %4074 = vmatprep.mubr.f32.mxu1 %v8764_v26 }
 0x4ce   :  { %4075 = vmatmul.mubr.f32.gmra.mrb[80].mxu1 %v3787_v46 }
 0x4cf   :  { %4080 = vmatprep.mubr.f32.mxu1 %v8764_v26 }
 0x4d2   :  { %4081 = vmatmul.mubr.f32.gmra.mrb[82].mxu1 %v3789_v28 }
 0x4d3   :  { %4086 = vmatprep.mubr.f32.mxu1 %v8764_v26 }
 0x4d6   :  { %4087 = vmatmul.mubr.f32.gmra.mrb[84].mxu1 %v3791_v34 }
 0x4d7   :  { %4092 = vmatprep.mubr.f32.mxu1 %v8764_v26 }
 0x4da   :  { %4093 = vmatmul.mubr.f32.gmra.mrb[86].mxu1 %v3793_v21  ;;  %v4998_v21 = vld [vmem:[#allocation5 + $0x1e8] sm:$0xff] }
 0x4db   :  { %4098 = vmatprep.mubr.f32.mxu1 %v8764_v26 }
 0x4de   :  { %4099 = vmatmul.mubr.f32.gmra.mrb[88].mxu1 %v3795_v42  ;;  %v4997_v42 = vld [vmem:[#allocation5 + $0x1e0] sm:$0xff] }
 0x4df   :  { %4104 = vmatprep.mubr.f32.mxu1 %v8764_v26 }
 0x4e2   :  { %4105 = vmatmul.mubr.f32.gmra.mrb[90].mxu1 %v3797_v40 }
 0x4e3   :  { %4110 = vmatprep.mubr.f32.mxu1 %v8764_v26 }
 0x4e6   :  { %4111 = vmatmul.mubr.f32.gmra.mrb[92].mxu1 %v3799_v58  ;;  %v4999_v58 = vld [vmem:[#allocation5 + $0x1f0] sm:$0xff] }
 0x4e7   :  { %4116 = vmatprep.mubr.f32.mxu1 %v8764_v26 }
 0x4ea   :  { %5835 = vmatmul.mubr.msk.f32.gmra.mrb[94].mxu1 %vm3736_vm5, %v3798_v43  ;;  %v6100_v43 = vpack.c.bf16 %v5000_v7, %v4998_v21 }
 0x4eb   :  { %4284 = vmatprep.mubr.f32.mxu1 %v8764_v26 }
 0x4ee   :  { %4285 = vmatmul.mubr.f32.vlgmr.msra.gmra.mrb[32].mxu1 %v8772_v61  ;;  %v4986_v61 = vld [vmem:[#allocation5 + $0x188] sm:$0xff] }
 0x4ef   :  { %4290 = vmatprep.mubr.f32.mxu1 %v8764_v26 }
 0x4f2   :  { %4291 = vmatmul.mubr.f32.gmra.mrb[34].mxu1 %v8773_v3  ;;  %v4988_v3 = vld [vmem:[#allocation5 + $0x198] sm:$0xff] }
 0x4f3   :  { %4296 = vmatprep.mubr.f32.mxu1 %v8764_v26 }
 0x4f6   :  { %4297 = vmatmul.mubr.f32.gmra.mrb[36].mxu1 %v8774_v57  ;;  %v4985_v57 = vld [vmem:[#allocation5 + $0x180] sm:$0xff] }
 0x4f7   :  { %4302 = vmatprep.mubr.f32.mxu1 %v8764_v26 }
 0x4fa   :  { %4303 = vmatmul.mubr.f32.gmra.mrb[38].mxu1 %v8775_v39  ;;  %v6088_v39 = vpack.c.bf16 %v4988_v3, %v4986_v61 }
 0x4fb   :  { %4308 = vmatprep.mubr.f32.mxu1 %v8764_v26 }
 0x4fe   :  { %4309 = vmatmul.mubr.f32.gmra.mrb[40].mxu1 %v8776_v27  ;;  %v4987_v27 = vld [vmem:[#allocation5 + $0x190] sm:$0xff] }
 0x4ff   :  { %4314 = vmatprep.mubr.f32.mxu1 %v8764_v26 }
 0x502   :  { %4315 = vmatmul.mubr.f32.gmra.mrb[42].mxu1 %v8777_v32  ;;  %v6090_v32 = vpack.c.bf16 %v4987_v27, %v4985_v57 }
 0x503   :  { %4320 = vmatprep.mubr.f32.mxu1 %v8764_v26 }
 0x506   :  { %4321 = vmatmul.mubr.f32.gmra.mrb[44].mxu1 %v8778_v1  ;;  %v4990_v1 = vld [vmem:[#allocation5 + $0x1a8] sm:$0xff] }
 0x507   :  { %4326 = vmatprep.mubr.f32.mxu1 %v8764_v26  ;;  %v6092_v35 = vpack.c.bf16 %v4992_v45, %v4990_v1 }
 0x50a   :  { %4327 = vmatmul.mubr.f32.gmra.mrb[46].mxu1 %v8076_v18  ;;  %v4970_v18 = vld [vmem:[#allocation5 + $0x108] sm:$0xff] }
 0x50b   :  { %4332 = vmatprep.mubr.f32.mxu1 %v8764_v26 }
 0x50e   :  { %4333 = vmatmul.mubr.f32.gmra.mrb[48].mxu1 %v8084_v0  ;;  %v4972_v0 = vld [vmem:[#allocation5 + $0x118] sm:$0xff] }
 0x50f   :  { %4338 = vmatprep.mubr.f32.mxu1 %v8764_v26 }
 0x512   :  { %4339 = vmatmul.mubr.f32.gmra.mrb[50].mxu1 %v8092_v29  ;;  %v4969_v29 = vld [vmem:[#allocation5 + $0x100] sm:$0xff] }
 0x513   :  { %4344 = vmatprep.mubr.f32.mxu1 %v8764_v26 }
 0x516   :  { %4345 = vmatmul.mubr.f32.gmra.mrb[52].mxu1 %v8100_v54  ;;  %v6072_v54 = vpack.c.bf16 %v4972_v0, %v4970_v18  ;;  %v6102_v0 = vpack.c.bf16 %v4999_v58, %v4997_v42 }
 0x517   :  { %4350 = vmatprep.mubr.f32.mxu1 %v8764_v26 }
 0x518   :  { %6073 = vmatprep.subr.bf16.mxu0 %v6072_v54 }
 0x51a   :  { %4351 = vmatmul.mubr.f32.gmra.mrb[54].mxu1 %v8108_v37  ;;  %v4971_v37 = vld [vmem:[#allocation5 + $0x110] sm:$0xff] }
 0x51b   :  { %4356 = vmatprep.mubr.f32.mxu1 %v8764_v26 }
 0x51e   :  { %4357 = vmatmul.mubr.f32.gmra.mrb[56].mxu1 %v8116_v52  ;;  %v6074_v52 = vpack.c.bf16 %v4971_v37, %v4969_v29 }
 0x51f   :  { %4362 = vmatprep.mubr.f32.mxu1 %v8764_v26 }
 0x520   :  { %6075 = vmatpush1.bf16.msra.mxu0 %v6074_v52 }
 0x522   :  { %4363 = vmatmul.mubr.f32.gmra.mrb[58].mxu1 %v8126_v12  ;;  %v4974_v12 = vld [vmem:[#allocation5 + $0x128] sm:$0xff] }
 0x523   :  { %4368 = vmatprep.mubr.f32.mxu1 %v8764_v26 }
 0x526   :  { %4369 = vmatmul.mubr.f32.gmra.mrb[60].mxu1 %v8139_v47  ;;  %v4976_v47 = vld [vmem:[#allocation5 + $0x138] sm:$0xff] }
 0x527   :  { %4374 = vmatprep.mubr.f32.mxu1 %v8764_v26 }
 0x52a   :  { %4375 = vmatmul.mubr.f32.gmra.mrb[62].mxu1 %v8148_v23  ;;  %v4973_v23 = vld [vmem:[#allocation5 + $0x120] sm:$0xff] }
 0x52b   :  { %4380 = vmatprep.mubr.f32.mxu1 %v8764_v26 }
 0x52e   :  { %4381 = vmatmul.mubr.f32.gmra.mrb[64].mxu1 %v8158_v13  ;;  %v6076_v13 = vpack.c.bf16 %v4976_v47, %v4974_v12  ;;  %v4921_v12 = vld [vmem:[#allocation5 + $0x8] sm:$0xff]  ;;  %v4923_v47 = vld [vmem:[#allocation5 + $0x18] sm:$0xff] }
 0x52f   :  { %4386 = vmatprep.mubr.f32.mxu1 %v8764_v26 }
 0x530   :  { %6077 = vmatprep.subr.bf16.mxu0 %v6076_v13 }
 0x532   :  { %4387 = vmatmul.mubr.f32.gmra.mrb[66].mxu1 %v8168_v51  ;;  %v4975_v51 = vld [vmem:[#allocation5 + $0x130] sm:$0xff] }
 0x533   :  { %4392 = vmatprep.mubr.f32.mxu1 %v8764_v26 }
 0x536   :  { %4393 = vmatmul.mubr.f32.gmra.mrb[68].mxu1 %v8178_v25  ;;  %v6078_v25 = vpack.c.bf16 %v4975_v51, %v4973_v23  ;;  %v6104_v51 = vpack.c.bf16 %v4923_v47, %v4921_v12 }
 0x537   :  { %4398 = vmatprep.mubr.f32.mxu1 %v8764_v26 }
 0x538   :  { %6079 = vmatpush1.bf16.msra.mxu0 %v6078_v25 }
 0x53a   :  { %4399 = vmatmul.mubr.f32.gmra.mrb[70].mxu1 %v8188_v20  ;;  %v4978_v20 = vld [vmem:[#allocation5 + $0x148] sm:$0xff] }
 0x53b   :  { %4404 = vmatprep.mubr.f32.mxu1 %v8764_v26 }
 0x53e   :  { %4405 = vmatmul.mubr.f32.gmra.mrb[72].mxu1 %v8198_v44  ;;  %v4980_v44 = vld [vmem:[#allocation5 + $0x158] sm:$0xff] }
 0x53f   :  { %4410 = vmatprep.mubr.f32.mxu1 %v8764_v26 }
 0x542   :  { %4411 = vmatmul.mubr.f32.gmra.mrb[74].mxu1 %v8208_v53  ;;  %v4977_v53 = vld [vmem:[#allocation5 + $0x140] sm:$0xff] }
 0x543   :  { %4416 = vmatprep.mubr.f32.mxu1 %v8764_v26 }
 0x546   :  { %4417 = vmatmul.mubr.f32.gmra.mrb[76].mxu1 %v8218_v59  ;;  %v6080_v59 = vpack.c.bf16 %v4980_v44, %v4978_v20 }
 0x547   :  { %4422 = vmatprep.mubr.f32.mxu1 %v8764_v26 }
 0x548   :  { %6081 = vmatprep.subr.bf16.mxu0 %v6080_v59 }
 0x54a   :  { %4423 = vmatmul.mubr.f32.gmra.mrb[78].mxu1 %v8228_v22  ;;  %v4979_v22 = vld [vmem:[#allocation5 + $0x150] sm:$0xff] }
 0x54b   :  { %4428 = vmatprep.mubr.f32.mxu1 %v8764_v26 }
 0x54e   :  { %4429 = vmatmul.mubr.f32.gmra.mrb[80].mxu1 %v8238_v49  ;;  %v6082_v49 = vpack.c.bf16 %v4979_v22, %v4977_v53 }
 0x54f   :  { %4434 = vmatprep.mubr.f32.mxu1 %v8764_v26 }
 0x550   :  { %6083 = vmatpush1.bf16.msra.mxu0 %v6082_v49 }
 0x552   :  { %4435 = vmatmul.mubr.f32.gmra.mrb[82].mxu1 %v8248_v17  ;;  %v4982_v17 = vld [vmem:[#allocation5 + $0x168] sm:$0xff] }
 0x553   :  { %4440 = vmatprep.mubr.f32.mxu1 %v8764_v26 }
 0x556   :  { %4441 = vmatmul.mubr.f32.gmra.mrb[84].mxu1 %v8258_v4  ;;  %v4984_v4 = vld [vmem:[#allocation5 + $0x178] sm:$0xff] }
 0x557   :  { %4446 = vmatprep.mubr.f32.mxu1 %v8764_v26 }
 0x55a   :  { %4447 = vmatmul.mubr.f32.gmra.mrb[86].mxu1 %v8268_v10  ;;  %v4981_v10 = vld [vmem:[#allocation5 + $0x160] sm:$0xff] }
 0x55b   :  { %4452 = vmatprep.mubr.f32.mxu1 %v8764_v26 }
 0x55e   :  { %4453 = vmatmul.mubr.f32.gmra.mrb[88].mxu1 %v8274_v55  ;;  %v6084_v55 = vpack.c.bf16 %v4984_v4, %v4982_v17 }
 0x55f   :  { %4458 = vmatprep.mubr.f32.mxu1 %v8764_v26 }
 0x560   :  { %6085 = vmatprep.subr.bf16.mxu0 %v6084_v55 }
 0x562   :  { %4459 = vmatmul.mubr.f32.gmra.mrb[90].mxu1 %v8281_v6  ;;  %v4983_v6 = vld [vmem:[#allocation5 + $0x170] sm:$0xff] }
 0x563   :  { %4464 = vmatprep.mubr.f32.mxu1 %v8764_v26 }
 0x566   :  { %4465 = vmatmul.mubr.f32.gmra.mrb[92].mxu1 %v8283_v36  ;;  %v6086_v36 = vpack.c.bf16 %v4983_v6, %v4981_v10 }
 0x567   :  { %4470 = vmatprep.mubr.f32.mxu1 %v8764_v26 }
 0x568   :  { %6087 = vmatpush1.bf16.msra.mxu0 %v6086_v36 }
 0x569   :  { %6089 = vmatprep.subr.bf16.mxu0 %v6088_v39 }
 0x56a   :  { %4471 = vmatmul.mubr.f32.gmra.mrb[94].mxu1 %v8764_v26 }
 0x56c   :  { %6091 = vmatpush1.bf16.msra.mxu0 %v6090_v32 }
 0x56d   :  { %6093 = vmatprep.subr.bf16.mxu0 %v6092_v35 }
 0x570   :  { %6095 = vmatpush1.bf16.msra.mxu0 %v6094_v2 }
 0x571   :  { %6097 = vmatprep.subr.bf16.mxu0 %v6096_v16 }
 0x574   :  { %6099 = vmatpush1.bf16.msra.mxu0 %v6098_v14 }
 0x575   :  { %6101 = vmatprep.subr.bf16.mxu0 %v6100_v43 }
 0x578   :  { %6103 = vmatpush1.bf16.msra.mxu0 %v6102_v0 }
 0x579   :  { %6105 = vmatprep.subr.bf16.mxu0 %v6104_v51 }
 0x5c1   :  { %v4286_v31 = vpop.f32.mrb[32].mxu1 }
 0x5c2   :  { %v4553_v8 = vadd.f32 %v8618_v30, %v4286_v31  ;;  %v4288_v62 = vpop.f32.mrb[33].mxu1 }
 0x5c3   :  { %v4554_v46 = vadd.f32 %v8621_v5, %v4288_v62 }
 0x5c4   :  { %v4617_v24 = vmax.f32 %v4553_v8, 0.0 }
 0x5c5   :  { %v4618_v28 = vmax.f32 %v4554_v46, 0.0  ;;  %v4292_v50 = vpop.f32.mrb[34].mxu1 }
 0x5c6   :  { %v4555_v34 = vadd.f32 %v8618_v30, %v4292_v50  ;;  %v4294_v56 = vpop.f32.mrb[35].mxu1 }
 0x5c7   :  { %v4681_v9 = vmax.f32 %v4617_v24, %v4618_v28  ;;  %v4556_v40 = vadd.f32 %v8621_v5, %v4294_v56 }
 0x5c8   :  { %v4619_v18 = vmax.f32 %v4555_v34, 0.0 }
 0x5c9   :  { %v4620_v29 = vmax.f32 %v4556_v40, 0.0  ;;  %v4298_v54 = vpop.f32.mrb[36].mxu1  ;;  %v4745_v20 = vrot.slane %v4681_v9, 2 }
 0x5ca   :  { %v4557_v37 = vadd.f32 %v8618_v30, %v4298_v54  ;;  %v4300_v52 = vpop.f32.mrb[37].mxu1 }
 0x5cb   :  { %v4682_v23 = vmax.f32 %v4619_v18, %v4620_v29  ;;  %v4558_v13 = vadd.f32 %v8621_v5, %v4300_v52 }
 0x5cc   :  { %v4621_v25 = vmax.f32 %v4557_v37, 0.0 }
 0x5cd   :  { %v4746_v44 = vrot.slane %v4682_v23, 2  ;;  %v4622_v53 = vmax.f32 %v4558_v13, 0.0  ;;  %v4304_v59 = vpop.f32.mrb[38].mxu1 }
 0x5ce   :  { %v4559_v22 = vadd.f32 %v8618_v30, %v4304_v59  ;;  %v4306_v49 = vpop.f32.mrb[39].mxu1 }
 0x5cf   :  { %v4747_v17 = vsel %vm864_vm2, %v4745_v20, %v4746_v44  ;;  %v4683_v4 = vmax.f32 %v4621_v25, %v4622_v53  ;;  %v4560_v10 = vadd.f32 %v8621_v5, %v4306_v49 }
 0x5d0   :  { %v4841_v55 = vmax.f32 %v4681_v9, %v4747_v17  ;;  %v4623_v6 = vmax.f32 %v4559_v22, 0.0 }
 0x5d1   :  { %v4748_v36 = vrot.slane %v4683_v4, 2  ;;  %v4624_v61 = vmax.f32 %v4560_v10, 0.0  ;;  %v4310_v3 = vpop.f32.mrb[40].mxu1 }
 0x5d2   :  { %4873 = vst [vmem:[#allocation2] sm:$0xff] %v4841_v55  ;;  %v4561_v57 = vadd.f32 %v8618_v30, %v4310_v3  ;;  %v4312_v39 = vpop.f32.mrb[41].mxu1 }
 0x5d3   :  { %v4749_v27 = vsel %vm864_vm2, %v4746_v44, %v4748_v36  ;;  %v4684_v32 = vmax.f32 %v4623_v6, %v4624_v61  ;;  %v4562_v1 = vadd.f32 %v8621_v5, %v4312_v39 }
 0x5d4   :  { %v4842_v45 = vmax.f32 %v4682_v23, %v4749_v27  ;;  %v4625_v11 = vmax.f32 %v4561_v57, 0.0 }
 0x5d5   :  { %v4750_v35 = vrot.slane %v4684_v32, 2  ;;  %v4626_v19 = vmax.f32 %v4562_v1, 0.0  ;;  %v4316_v2 = vpop.f32.mrb[42].mxu1 }
 0x5d6   :  { %4874 = vst [vmem:[#allocation2 + $0x8] sm:$0xff] %v4842_v45  ;;  %v4563_v41 = vadd.f32 %v8618_v30, %v4316_v2  ;;  %v4318_v15 = vpop.f32.mrb[43].mxu1 }
 0x5d7   :  { %v4751_v63 = vsel %vm864_vm2, %v4748_v36, %v4750_v35  ;;  %v4685_v16 = vmax.f32 %v4625_v11, %v4626_v19  ;;  %v4564_v38 = vadd.f32 %v8621_v5, %v4318_v15 }
 0x5d8   :  { %v4843_v14 = vmax.f32 %v4683_v4, %v4751_v63  ;;  %v4627_v33 = vmax.f32 %v4563_v41, 0.0 }
 0x5d9   :  { %v4752_v31 = vrot.slane %v4685_v16, 2  ;;  %v4628_v8 = vmax.f32 %v4564_v38, 0.0  ;;  %v4322_v62 = vpop.f32.mrb[44].mxu1 }
 0x5da   :  { %4875 = vst [vmem:[#allocation2 + $0x10] sm:$0xff] %v4843_v14  ;;  %v4565_v46 = vadd.f32 %v8618_v30, %v4322_v62  ;;  %v4324_v24 = vpop.f32.mrb[45].mxu1 }
 0x5db   :  { %v4686_v28 = vmax.f32 %v4627_v33, %v4628_v8  ;;  %v4566_v50 = vadd.f32 %v8621_v5, %v4324_v24 }
 0x5dc   :  { %v4629_v34 = vmax.f32 %v4565_v46, 0.0 }
 0x5dd   :  { %v4754_v56 = vrot.slane %v4686_v28, 2  ;;  %v4630_v21 = vmax.f32 %v4566_v50, 0.0  ;;  %v4328_v7 = vpop.f32.mrb[46].mxu1 }
 0x5de   :  { %v4567_v42 = vadd.f32 %v8618_v30, %v4328_v7  ;;  %v4330_v9 = vpop.f32.mrb[47].mxu1 }
 0x5df   :  { %v4755_v40 = vsel %vm864_vm2, %v4752_v31, %v4754_v56  ;;  %v4687_v43 = vmax.f32 %v4629_v34, %v4630_v21  ;;  %v4568_v58 = vadd.f32 %v8621_v5, %v4330_v9 }
 0x5e0   :  { %v4845_v18 = vmax.f32 %v4685_v16, %v4755_v40  ;;  %v4631_v0 = vmax.f32 %v4567_v42, 0.0 }
 0x5e1   :  { %v4756_v29 = vrot.slane %v4687_v43, 2  ;;  %v4632_v54 = vmax.f32 %v4568_v58, 0.0  ;;  %v4334_v37 = vpop.f32.mrb[48].mxu1 }
 0x5e2   :  { %4877 = vst [vmem:[#allocation2 + $0x20] sm:$0xff] %v4845_v18  ;;  %v4569_v52 = vadd.f32 %v8618_v30, %v4334_v37  ;;  %v4336_v12 = vpop.f32.mrb[49].mxu1 }
 0x5e3   :  { %v4757_v47 = vsel %vm864_vm2, %v4754_v56, %v4756_v29  ;;  %v4688_v23 = vmax.f32 %v4631_v0, %v4632_v54  ;;  %v4570_v13 = vadd.f32 %v8621_v5, %v4336_v12 }
 0x5e4   :  { %v4846_v51 = vmax.f32 %v4686_v28, %v4757_v47  ;;  %v4633_v25 = vmax.f32 %v4569_v52, 0.0 }
 0x5e5   :  { %v4758_v20 = vrot.slane %v4688_v23, 2  ;;  %v4634_v44 = vmax.f32 %v4570_v13, 0.0  ;;  %v4340_v53 = vpop.f32.mrb[50].mxu1 }
 0x5e6   :  { %4878 = vst [vmem:[#allocation2 + $0x28] sm:$0xff] %v4846_v51  ;;  %v4571_v59 = vadd.f32 %v8618_v30, %v4340_v53  ;;  %v4342_v22 = vpop.f32.mrb[51].mxu1 }
 0x5e7   :  { %v4759_v49 = vsel %vm864_vm2, %v4756_v29, %v4758_v20  ;;  %v4689_v17 = vmax.f32 %v4633_v25, %v4634_v44  ;;  %v4572_v4 = vadd.f32 %v8621_v5, %v4342_v22 }
 0x5e8   :  { %v4847_v10 = vmax.f32 %v4687_v43, %v4759_v49  ;;  %v4635_v55 = vmax.f32 %v4571_v59, 0.0 }
 0x5e9   :  { %v4760_v6 = vrot.slane %v4689_v17, 2  ;;  %v4636_v36 = vmax.f32 %v4572_v4, 0.0  ;;  %v4346_v61 = vpop.f32.mrb[52].mxu1 }
 0x5ea   :  { %4879 = vst [vmem:[#allocation2 + $0x30] sm:$0xff] %v4847_v10  ;;  %v4573_v3 = vadd.f32 %v8618_v30, %v4346_v61  ;;  %v4348_v57 = vpop.f32.mrb[53].mxu1 }
 0x5eb   :  { %v4690_v39 = vmax.f32 %v4635_v55, %v4636_v36  ;;  %v4574_v27 = vadd.f32 %v8621_v5, %v4348_v57 }
 0x5ec   :  { %v4637_v32 = vmax.f32 %v4573_v3, 0.0 }
 0x5ed   :  { %v4762_v1 = vrot.slane %v4690_v39, 2  ;;  %v4638_v45 = vmax.f32 %v4574_v27, 0.0  ;;  %v4352_v11 = vpop.f32.mrb[54].mxu1 }
 0x5ee   :  { %v4575_v35 = vadd.f32 %v8618_v30, %v4352_v11  ;;  %v4354_v19 = vpop.f32.mrb[55].mxu1 }
 0x5ef   :  { %v4763_v2 = vsel %vm864_vm2, %v4760_v6, %v4762_v1  ;;  %v4691_v41 = vmax.f32 %v4637_v32, %v4638_v45  ;;  %v4576_v15 = vadd.f32 %v8621_v5, %v4354_v19 }
 0x5f0   :  { %v4849_v63 = vmax.f32 %v4689_v17, %v4763_v2  ;;  %v4639_v16 = vmax.f32 %v4575_v35, 0.0 }
 0x5f1   :  { %v4764_v38 = vrot.slane %v4691_v41, 2  ;;  %v4640_v14 = vmax.f32 %v4576_v15, 0.0  ;;  %v4358_v33 = vpop.f32.mrb[56].mxu1 }
 0x5f2   :  { %4881 = vst [vmem:[#allocation2 + $0x40] sm:$0xff] %v4849_v63  ;;  %v4577_v31 = vadd.f32 %v8618_v30, %v4358_v33  ;;  %v4360_v8 = vpop.f32.mrb[57].mxu1 }
 0x5f3   :  { %v4765_v62 = vsel %vm864_vm2, %v4762_v1, %v4764_v38  ;;  %v4692_v46 = vmax.f32 %v4639_v16, %v4640_v14  ;;  %v4578_v24 = vadd.f32 %v8621_v5, %v4360_v8 }
 0x5f4   :  { %v4850_v28 = vmax.f32 %v4690_v39, %v4765_v62  ;;  %v4641_v50 = vmax.f32 %v4577_v31, 0.0 }
 0x5f5   :  { %v4766_v34 = vrot.slane %v4692_v46, 2  ;;  %v4642_v56 = vmax.f32 %v4578_v24, 0.0  ;;  %v4364_v21 = vpop.f32.mrb[58].mxu1 }
 0x5f6   :  { %4882 = vst [vmem:[#allocation2 + $0x48] sm:$0xff] %v4850_v28  ;;  %v4579_v7 = vadd.f32 %v8618_v30, %v4364_v21  ;;  %v4366_v42 = vpop.f32.mrb[59].mxu1 }
 0x5f7   :  { %v4767_v9 = vsel %vm864_vm2, %v4764_v38, %v4766_v34  ;;  %v4693_v40 = vmax.f32 %v4641_v50, %v4642_v56  ;;  %v4580_v43 = vadd.f32 %v8621_v5, %v4366_v42 }
 0x5f8   :  { %v4851_v58 = vmax.f32 %v4691_v41, %v4767_v9  ;;  %v4643_v18 = vmax.f32 %v4579_v7, 0.0 }
 0x5f9   :  { %v4768_v0 = vrot.slane %v4693_v40, 2  ;;  %v4644_v29 = vmax.f32 %v4580_v43, 0.0  ;;  %v4370_v54 = vpop.f32.mrb[60].mxu1 }
 0x5fa   :  { %4883 = vst [vmem:[#allocation2 + $0x50] sm:$0xff] %v4851_v58  ;;  %v4581_v37 = vadd.f32 %v8618_v30, %v4370_v54  ;;  %v4372_v52 = vpop.f32.mrb[61].mxu1 }
 0x5fb   :  { %v4694_v12 = vmax.f32 %v4643_v18, %v4644_v29  ;;  %v4582_v47 = vadd.f32 %v8621_v5, %v4372_v52 }
 0x5fc   :  { %v4645_v23 = vmax.f32 %v4581_v37, 0.0 }
 0x5fd   :  { %v4770_v13 = vrot.slane %v4694_v12, 2  ;;  %v4646_v51 = vmax.f32 %v4582_v47, 0.0  ;;  %v4376_v25 = vpop.f32.mrb[62].mxu1 }
 0x5fe   :  { %v4583_v20 = vadd.f32 %v8618_v30, %v4376_v25  ;;  %v4378_v44 = vpop.f32.mrb[63].mxu1 }
 0x5ff   :  { %v4771_v53 = vsel %vm864_vm2, %v4768_v0, %v4770_v13  ;;  %v4695_v59 = vmax.f32 %v4645_v23, %v4646_v51  ;;  %v4584_v22 = vadd.f32 %v8621_v5, %v4378_v44 }
 0x600   :  { %v4853_v49 = vmax.f32 %v4693_v40, %v4771_v53  ;;  %v4647_v17 = vmax.f32 %v4583_v20, 0.0 }
 0x601   :  { %v4772_v4 = vrot.slane %v4695_v59, 2  ;;  %v4648_v10 = vmax.f32 %v4584_v22, 0.0  ;;  %v4382_v55 = vpop.f32.mrb[64].mxu1 }
 0x602   :  { %4885 = vst [vmem:[#allocation2 + $0x60] sm:$0xff] %v4853_v49  ;;  %v4585_v6 = vadd.f32 %v8618_v30, %v4382_v55  ;;  %v4384_v36 = vpop.f32.mrb[65].mxu1 }
 0x603   :  { %v4773_v61 = vsel %vm864_vm2, %v4770_v13, %v4772_v4  ;;  %v4696_v3 = vmax.f32 %v4647_v17, %v4648_v10  ;;  %v4586_v57 = vadd.f32 %v8621_v5, %v4384_v36 }
 0x604   :  { %v4854_v39 = vmax.f32 %v4694_v12, %v4773_v61  ;;  %v4649_v27 = vmax.f32 %v4585_v6, 0.0 }
 0x605   :  { %v4774_v32 = vrot.slane %v4696_v3, 2  ;;  %v4650_v1 = vmax.f32 %v4586_v57, 0.0  ;;  %v4388_v45 = vpop.f32.mrb[66].mxu1 }
 0x606   :  { %4886 = vst [vmem:[#allocation2 + $0x68] sm:$0xff] %v4854_v39  ;;  %v4587_v11 = vadd.f32 %v8618_v30, %v4388_v45  ;;  %v4390_v35 = vpop.f32.mrb[67].mxu1 }
 0x607   :  { %v4775_v19 = vsel %vm864_vm2, %v4772_v4, %v4774_v32  ;;  %v4697_v2 = vmax.f32 %v4649_v27, %v4650_v1  ;;  %v4588_v41 = vadd.f32 %v8621_v5, %v4390_v35 }
 0x608   :  { %v4855_v15 = vmax.f32 %v4695_v59, %v4775_v19  ;;  %v4651_v63 = vmax.f32 %v4587_v11, 0.0 }
 0x609   :  { %v4776_v16 = vrot.slane %v4697_v2, 2  ;;  %v4652_v38 = vmax.f32 %v4588_v41, 0.0  ;;  %v4394_v14 = vpop.f32.mrb[68].mxu1 }
 0x60a   :  { %4887 = vst [vmem:[#allocation2 + $0x70] sm:$0xff] %v4855_v15  ;;  %v4589_v33 = vadd.f32 %v8618_v30, %v4394_v14  ;;  %v4396_v31 = vpop.f32.mrb[69].mxu1 }
 0x60b   :  { %v4698_v8 = vmax.f32 %v4651_v63, %v4652_v38  ;;  %v4590_v62 = vadd.f32 %v8621_v5, %v4396_v31 }
 0x60c   :  { %v4653_v46 = vmax.f32 %v4589_v33, 0.0 }
 0x60d   :  { %v4778_v24 = vrot.slane %v4698_v8, 2  ;;  %v4654_v28 = vmax.f32 %v4590_v62, 0.0  ;;  %v4400_v50 = vpop.f32.mrb[70].mxu1 }
 0x60e   :  { %v4591_v34 = vadd.f32 %v8618_v30, %v4400_v50  ;;  %v4402_v56 = vpop.f32.mrb[71].mxu1 }
 0x60f   :  { %v4779_v21 = vsel %vm864_vm2, %v4776_v16, %v4778_v24  ;;  %v4699_v7 = vmax.f32 %v4653_v46, %v4654_v28  ;;  %v4592_v42 = vadd.f32 %v8621_v5, %v4402_v56 }
 0x610   :  { %v4857_v9 = vmax.f32 %v4697_v2, %v4779_v21  ;;  %v4655_v40 = vmax.f32 %v4591_v34, 0.0 }
 0x611   :  { %v4780_v43 = vrot.slane %v4699_v7, 2  ;;  %v4656_v58 = vmax.f32 %v4592_v42, 0.0  ;;  %v4406_v18 = vpop.f32.mrb[72].mxu1 }
 0x612   :  { %4889 = vst [vmem:[#allocation2 + $0x80] sm:$0xff] %v4857_v9  ;;  %v4593_v0 = vadd.f32 %v8618_v30, %v4406_v18  ;;  %v4408_v29 = vpop.f32.mrb[73].mxu1 }
 0x613   :  { %v4781_v54 = vsel %vm864_vm2, %v4778_v24, %v4780_v43  ;;  %v4700_v37 = vmax.f32 %v4655_v40, %v4656_v58  ;;  %v4594_v52 = vadd.f32 %v8621_v5, %v4408_v29 }
 0x614   :  { %v4858_v12 = vmax.f32 %v4698_v8, %v4781_v54  ;;  %v4657_v47 = vmax.f32 %v4593_v0, 0.0 }
 0x615   :  { %v4782_v23 = vrot.slane %v4700_v37, 2  ;;  %v4658_v13 = vmax.f32 %v4594_v52, 0.0  ;;  %v4412_v51 = vpop.f32.mrb[74].mxu1 }
 0x616   :  { %4890 = vst [vmem:[#allocation2 + $0x88] sm:$0xff] %v4858_v12  ;;  %v4595_v25 = vadd.f32 %v8618_v30, %v4412_v51  ;;  %v4414_v20 = vpop.f32.mrb[75].mxu1 }
 0x617   :  { %v4783_v44 = vsel %vm864_vm2, %v4780_v43, %v4782_v23  ;;  %v4701_v53 = vmax.f32 %v4657_v47, %v4658_v13  ;;  %v4596_v59 = vadd.f32 %v8621_v5, %v4414_v20 }
 0x618   :  { %v4859_v22 = vmax.f32 %v4699_v7, %v4783_v44  ;;  %v4659_v49 = vmax.f32 %v4595_v25, 0.0 }
 0x619   :  { %v4784_v17 = vrot.slane %v4701_v53, 2  ;;  %v4660_v4 = vmax.f32 %v4596_v59, 0.0  ;;  %v4418_v10 = vpop.f32.mrb[76].mxu1 }
 0x61a   :  { %4891 = vst [vmem:[#allocation2 + $0x90] sm:$0xff] %v4859_v22  ;;  %v4597_v55 = vadd.f32 %v8618_v30, %v4418_v10  ;;  %v4420_v6 = vpop.f32.mrb[77].mxu1 }
 0x61b   :  { %v4702_v36 = vmax.f32 %v4659_v49, %v4660_v4  ;;  %v4598_v61 = vadd.f32 %v8621_v5, %v4420_v6 }
 0x61c   :  { %v4661_v3 = vmax.f32 %v4597_v55, 0.0 }
 0x61d   :  { %v4786_v57 = vrot.slane %v4702_v36, 2  ;;  %v4662_v39 = vmax.f32 %v4598_v61, 0.0  ;;  %v4424_v27 = vpop.f32.mrb[78].mxu1 }
 0x61e   :  { %v4599_v32 = vadd.f32 %v8618_v30, %v4424_v27  ;;  %v4426_v1 = vpop.f32.mrb[79].mxu1 }
 0x61f   :  { %v4787_v45 = vsel %vm864_vm2, %v4784_v17, %v4786_v57  ;;  %v4703_v11 = vmax.f32 %v4661_v3, %v4662_v39  ;;  %v4600_v35 = vadd.f32 %v8621_v5, %v4426_v1 }
 0x620   :  { %v4861_v19 = vmax.f32 %v4701_v53, %v4787_v45  ;;  %v4663_v2 = vmax.f32 %v4599_v32, 0.0 }
 0x621   :  { %v4788_v41 = vrot.slane %v4703_v11, 2  ;;  %v4664_v15 = vmax.f32 %v4600_v35, 0.0  ;;  %v4430_v63 = vpop.f32.mrb[80].mxu1 }
 0x622   :  { %4893 = vst [vmem:[#allocation2 + $0xa0] sm:$0xff] %v4861_v19  ;;  %v4601_v16 = vadd.f32 %v8618_v30, %v4430_v63  ;;  %v4432_v38 = vpop.f32.mrb[81].mxu1 }
 0x623   :  { %v4789_v14 = vsel %vm864_vm2, %v4786_v57, %v4788_v41  ;;  %v4704_v33 = vmax.f32 %v4663_v2, %v4664_v15  ;;  %v4602_v31 = vadd.f32 %v8621_v5, %v4432_v38 }
 0x624   :  { %v4862_v8 = vmax.f32 %v4702_v36, %v4789_v14  ;;  %v4665_v62 = vmax.f32 %v4601_v16, 0.0 }
 0x625   :  { %v4790_v46 = vrot.slane %v4704_v33, 2  ;;  %v4666_v24 = vmax.f32 %v4602_v31, 0.0  ;;  %v4436_v28 = vpop.f32.mrb[82].mxu1  ;;  %v4954_v33 = vld [vmem:[#allocation2 + $0x4] ss:$32 sm:$0x2] }
 0x626   :  { %4894 = vst [vmem:[#allocation2 + $0xa8] sm:$0xff] %v4862_v8  ;;  %v4603_v50 = vadd.f32 %v8618_v30, %v4436_v28  ;;  %v4438_v34 = vpop.f32.mrb[83].mxu1  ;;  %v4953_v8 = vld [vmem:[#allocation2 + $0x4] ss:$32 sm:$0x1] }
 0x627   :  { %v4791_v56 = vsel %vm864_vm2, %v4788_v41, %v4790_v46  ;;  %v4705_v21 = vmax.f32 %v4665_v62, %v4666_v24  ;;  %v4604_v7 = vadd.f32 %v8621_v5, %v4438_v34  ;;  %v4956_v28 = vld [vmem:[#allocation2 + $0x4] ss:$32 sm:$0x4] }
 0x628   :  { %v4863_v42 = vmax.f32 %v4703_v11, %v4791_v56  ;;  %v4667_v9 = vmax.f32 %v4603_v50, 0.0  ;;  %v4955_v56 = vor.u32 %v4954_v33, %v4953_v8  ;;  %v5545_v33 = vld [vmem:[#allocation7 + $0xa0] sm:$0xff] }
 0x629   :  { %v4792_v40 = vrot.slane %v4705_v21, 2  ;;  %v4668_v43 = vmax.f32 %v4604_v7, 0.0  ;;  %v4442_v58 = vpop.f32.mrb[84].mxu1 }
 0x62a   :  { %4895 = vst [vmem:[#allocation2 + $0xb0] sm:$0xff] %v4863_v42  ;;  %v4605_v18 = vadd.f32 %v8618_v30, %v4442_v58  ;;  %v4444_v0 = vpop.f32.mrb[85].mxu1  ;;  %v4957_v58 = vor.u32 %v4956_v28, %v4955_v56  ;;  %v5529_v56 = vld [vmem:[#allocation7 + $0x20] sm:$0xff] }
 0x62b   :  { %v4706_v29 = vmax.f32 %v4667_v9, %v4668_v43  ;;  %v4606_v54 = vadd.f32 %v8621_v5, %v4444_v0  ;;  %v4958_v9 = vld [vmem:[#allocation2 + $0x4] ss:$32 sm:$0x8] }
 0x62c   :  { %v4669_v37 = vmax.f32 %v4605_v18, 0.0 }
 0x62d   :  { %v4794_v52 = vrot.slane %v4706_v29, 2  ;;  %v4670_v12 = vmax.f32 %v4606_v54, 0.0  ;;  %v4448_v47 = vpop.f32.mrb[86].mxu1  ;;  %v4959_v54 = vor.u32 %v4958_v9, %v4957_v58  ;;  %v5548_v9 = vld [vmem:[#allocation7 + $0xb8] sm:$0xff]  ;;  %v4938_v58 = vld [vmem:[#allocation5 + $0x90] sm:$0xff] }
 0x62e   :  { %v4607_v23 = vadd.f32 %v8618_v30, %v4448_v47  ;;  %v4450_v13 = vpop.f32.mrb[87].mxu1 }
 0x62f   :  { %v4795_v51 = vsel %vm864_vm2, %v4792_v40, %v4794_v52  ;;  %v4707_v25 = vmax.f32 %v4669_v37, %v4670_v12  ;;  %v4608_v20 = vadd.f32 %v8621_v5, %v4450_v13 }
 0x630   :  { %v4865_v44 = vmax.f32 %v4705_v21, %v4795_v51  ;;  %v4671_v53 = vmax.f32 %v4607_v23, 0.0 }
 0x631   :  { %v4796_v59 = vrot.slane %v4707_v25, 2  ;;  %v4672_v22 = vmax.f32 %v4608_v20, 0.0  ;;  %v4454_v49 = vpop.f32.mrb[88].mxu1 }
 0x632   :  { %4897 = vst [vmem:[#allocation2 + $0xc0] sm:$0xff] %v4865_v44  ;;  %v4609_v17 = vadd.f32 %v8618_v30, %v4454_v49  ;;  %v4456_v4 = vpop.f32.mrb[89].mxu1  ;;  %v4925_v44 = vld [vmem:[#allocation5 + $0x28] sm:$0xff] }
 0x633   :  { %v4797_v10 = vsel %vm864_vm2, %v4794_v52, %v4796_v59  ;;  %v4708_v55 = vmax.f32 %v4671_v53, %v4672_v22  ;;  %v4610_v6 = vadd.f32 %v8621_v5, %v4456_v4  ;;  %v4927_v53 = vld [vmem:[#allocation5 + $0x38] sm:$0xff] }
 0x634   :  { %v4866_v36 = vmax.f32 %v4706_v29, %v4797_v10  ;;  %v4673_v61 = vmax.f32 %v4609_v17, 0.0  ;;  %v4960_v29 = vld [vmem:[#allocation2 + $0x4] ss:$32 sm:$0x10]  ;;  %v6108_v10 = vpack.c.bf16 %v4927_v53, %v4925_v44  ;;  %v4947_v44 = vld [vmem:[#allocation5 + $0xd8] sm:$0xff] }
 0x635   :  { %v4798_v3 = vrot.slane %v4708_v55, 2  ;;  %v4674_v57 = vmax.f32 %v4610_v6, 0.0  ;;  %v4460_v39 = vpop.f32.mrb[90].mxu1  ;;  %v4961_v47 = vor.u32 %v4960_v29, %v4959_v54  ;;  %v4924_v55 = vld [vmem:[#allocation5 + $0x20] sm:$0xff]  ;;  %v4926_v6 = vld [vmem:[#allocation5 + $0x30] sm:$0xff]  ;;  %v4941_v29 = vld [vmem:[#allocation5 + $0xa8] sm:$0xff] }
 0x636   :  { %4898 = vst [vmem:[#allocation2 + $0xc8] sm:$0xff] %v4866_v36  ;;  %v4611_v27 = vadd.f32 %v8618_v30, %v4460_v39  ;;  %v4462_v32 = vpop.f32.mrb[91].mxu1  ;;  %v4929_v36 = vld [vmem:[#allocation5 + $0x48] sm:$0xff] }
 0x637   :  { %v4799_v1 = vsel %vm864_vm2, %v4796_v59, %v4798_v3  ;;  %v4709_v45 = vmax.f32 %v4673_v61, %v4674_v57  ;;  %v4612_v11 = vadd.f32 %v8621_v5, %v4462_v32  ;;  %v4931_v61 = vld [vmem:[#allocation5 + $0x58] sm:$0xff]  ;;  %v4928_v3 = vld [vmem:[#allocation5 + $0x40] sm:$0xff]  ;;  %v5542_v39 = vld [vmem:[#allocation7 + $0x88] sm:$0xff]  ;;  %v6110_v32 = vpack.c.bf16 %v4926_v6, %v4924_v55 }
 0x638   :  { %v4867_v35 = vmax.f32 %v4707_v25, %v4799_v1  ;;  %v4675_v19 = vmax.f32 %v4611_v27, 0.0  ;;  %v4922_v25 = vld [vmem:[#allocation5 + $0x10] sm:$0xff]  ;;  %v5541_v57 = vld [vmem:[#allocation7 + $0x80] sm:$0xff] }
 0x639   :  { %v4800_v2 = vrot.slane %v4709_v45, 2  ;;  %v4676_v41 = vmax.f32 %v4612_v11, 0.0  ;;  %v4466_v15 = vpop.f32.mrb[92].mxu1  ;;  %v4964_v13 = vld [vmem:[#allocation2 + $0x4] ss:$32 sm:$0x40] }
 0x63a   :  { %4899 = vst [vmem:[#allocation2 + $0xd0] sm:$0xff] %v4867_v35  ;;  %v4613_v63 = vadd.f32 %v8618_v30, %v4466_v15  ;;  %v4468_v16 = vpop.f32.mrb[93].mxu1  ;;  %v5525_v27 = vld [vmem:[#allocation7] sm:$0xff]  ;;  %v4930_v1 = vld [vmem:[#allocation5 + $0x50] sm:$0xff]  ;;  %v4935_v11 = vld [vmem:[#allocation5 + $0x78] sm:$0xff]  ;;  %v6232_v35 = vpack.c.bf16 %v5542_v39, %v5541_v57 }
 0x63b   :  { %v4710_v38 = vmax.f32 %v4675_v19, %v4676_v41  ;;  %v4614_v14 = vadd.f32 %v8621_v5, %v4468_v16  ;;  %v6112_v19 = vpack.c.bf16 %v4931_v61, %v4929_v36  ;;  %v5543_v41 = vld [vmem:[#allocation7 + $0x90] sm:$0xff]  ;;  %v5544_v15 = vld [vmem:[#allocation7 + $0x98] sm:$0xff]  ;;  %v6114_v8 = vpack.c.bf16 %v4930_v1, %v4928_v3  ;;  %v4905_v55 = vld [vmem:[#allocation2] ss:$32 sm:$0x1] }
 0x63c   :  { %v4677_v31 = vmax.f32 %v4613_v63, 0.0  ;;  %6233 = vmatprep.subr.bf16.mxu1 %v6232_v35  ;;  %v6236_v16 = vpack.c.bf16 %v5544_v15, %v5543_v41  ;;  %v4946_v36 = vld [vmem:[#allocation5 + $0xd0] sm:$0xff]  ;;  %v4949_v61 = vld [vmem:[#allocation5 + $0xe8] sm:$0xff]  ;;  %v4908_v3 = vld [vmem:[#allocation2] ss:$32 sm:$0x4] }
 0x63d   :  { %v4802_v62 = vrot.slane %v4710_v38, 2  ;;  %v4678_v46 = vmax.f32 %v4614_v14, 0.0  ;;  %v4472_v24 = vpop.f32.mrb[94].mxu1  ;;  %v5528_v14 = vld [vmem:[#allocation7 + $0x18] sm:$0xff]  ;;  %v4948_v41 = vld [vmem:[#allocation5 + $0xe0] sm:$0xff] }
 0x63e   :  { %v4615_v50 = vadd.f32 %v8618_v30, %v4472_v24  ;;  %v4474_v34 = vpop.f32.mrb[95].mxu1  ;;  %v4962_v30 = vld [vmem:[#allocation2 + $0x4] ss:$32 sm:$0x20] }
 0x63f   :  { %v4803_v21 = vsel %vm864_vm2, %v4800_v2, %v4802_v62  ;;  %v4711_v7 = vmax.f32 %v4677_v31, %v4678_v46  ;;  %v4616_v42 = vadd.f32 %v8621_v5, %v4474_v34  ;;  %v4963_v51 = vor.u32 %v4962_v30, %v4961_v47  ;;  %v4920_v5 = vld [vmem:[#allocation5] sm:$0xff]  ;;  %v5526_v2 = vld [vmem:[#allocation7 + $0x8] sm:$0xff]  ;;  %v4934_v46 = vld [vmem:[#allocation5 + $0x70] sm:$0xff] }
 0x640   :  { %v4869_v40 = vmax.f32 %v4709_v45, %v4803_v21  ;;  %v4679_v43 = vmax.f32 %v4615_v50, 0.0  ;;  %v6106_v17 = vpack.c.bf16 %v4922_v25, %v4920_v5  ;;  %v4933_v45 = vld [vmem:[#allocation5 + $0x68] sm:$0xff]  ;;  %v6234_v63 = vpack.c.bf16 %v5526_v2, %v5525_v27  ;;  %v4943_v30 = vld [vmem:[#allocation5 + $0xb8] sm:$0xff]  ;;  %v4910_v35 = vld [vmem:[#allocation2] ss:$32 sm:$0x8] }
 0x641   :  { %v4804_v18 = vrot.slane %v4711_v7, 2  ;;  %v4680_v0 = vmax.f32 %v4616_v42, 0.0  ;;  %v4965_v22 = vor.u32 %v4964_v13, %v4963_v51  ;;  %v5546_v31 = vld [vmem:[#allocation7 + $0xa8] sm:$0xff]  ;;  %v6116_v28 = vpack.c.bf16 %v4935_v11, %v4933_v45  ;;  %v5547_v42 = vld [vmem:[#allocation7 + $0xb0] sm:$0xff]  ;;  %v4940_v13 = vld [vmem:[#allocation5 + $0xa0] sm:$0xff] }
 0x642   :  { %4901 = vst [vmem:[#allocation2 + $0xe0] sm:$0xff] %v4869_v40  ;;  %6235 = vmatpush3.bf16.msra.mxu1 %v6234_v63  ;;  %v4937_v50 = vld [vmem:[#allocation5 + $0x88] sm:$0xff]  ;;  %v6240_v34 = vpack.c.bf16 %v5546_v31, %v5545_v33  ;;  %v6244_v54 = vpack.c.bf16 %v5548_v9, %v5547_v42  ;;  %v4942_v51 = vld [vmem:[#allocation5 + $0xb0] sm:$0xff]  ;;  %v4951_v27 = vld [vmem:[#allocation5 + $0xf8] sm:$0xff] }
 0x643   :  { %v4805_v37 = vsel %vm864_vm2, %v4802_v62, %v4804_v18  ;;  %v4712_v52 = vmax.f32 %v4679_v43, %v4680_v0  ;;  %v4932_v62 = vld [vmem:[#allocation5 + $0x60] sm:$0xff]  ;;  %6237 = vmatprep.subr.bf16.mxu1 %v6236_v16  ;;  %v5530_v21 = vld [vmem:[#allocation7 + $0x28] sm:$0xff]  ;;  %v6126_v6 = vpack.c.bf16 %v4942_v51, %v4940_v13  ;;  %v5535_v45 = vld [vmem:[#allocation7 + $0x50] sm:$0xff]  ;;  %v6132_v31 = vpack.c.bf16 %v4951_v27, %v4949_v61 }
 0x644   :  { %v4870_v12 = vmax.f32 %v4710_v38, %v4805_v37  ;;  %v5527_v38 = vld [vmem:[#allocation7 + $0x10] sm:$0xff]  ;;  %v6118_v40 = vpack.c.bf16 %v4934_v46, %v4932_v62  ;;  %v4936_v43 = vld [vmem:[#allocation5 + $0x80] sm:$0xff]  ;;  %v5550_v47 = vld [vmem:[#allocation7 + $0xc8] sm:$0xff] }
 0x645   :  { %v4806_v23 = vrot.slane %v4712_v52, 2  ;;  %v6238_v24 = vpack.c.bf16 %v5528_v14, %v5527_v38  ;;  %v5531_v37 = vld [vmem:[#allocation7 + $0x30] sm:$0xff]  ;;  %v5532_v52 = vld [vmem:[#allocation7 + $0x38] sm:$0xff]  ;;  %v4945_v5 = vld [vmem:[#allocation5 + $0xc8] sm:$0xff] }
 0x646   :  { %4902 = vst [vmem:[#allocation2 + $0xe8] sm:$0xff] %v4870_v12  ;;  %v5549_v12 = vld [vmem:[#allocation7 + $0xc0] sm:$0xff]  ;;  %v6246_v25 = vpack.c.bf16 %v5532_v52, %v5531_v37  ;;  %v6128_v39 = vpack.c.bf16 %v4947_v44, %v4945_v5  ;;  %v5536_v11 = vld [vmem:[#allocation7 + $0x58] sm:$0xff]  ;;  %v5554_v2 = vld [vmem:[#allocation7 + $0xe8] sm:$0xff] }
 0x647   :  { %v4807_v20 = vsel %vm864_vm2, %v4804_v18, %v4806_v23  ;;  %6239 = vmatpush3.bf16.msra.mxu1 %v6238_v24  ;;  %v6242_v18 = vpack.c.bf16 %v5530_v21, %v5529_v56  ;;  %v6122_v23 = vpack.c.bf16 %v4938_v58, %v4936_v43  ;;  %v6248_v53 = vpack.c.bf16 %v5550_v47, %v5549_v12  ;;  %v4950_v16 = vld [vmem:[#allocation5 + $0xf0] sm:$0xff]  ;;  %v4912_v38 = vld [vmem:[#allocation2] ss:$32 sm:$0x10]  ;;  %v5161_v14 = vld [vmem:[#allocation5 + $0x208] sm:$0xff] }
 0x648   :  { %v4871_v59 = vmax.f32 %v4711_v7, %v4807_v20  ;;  %v4939_v7 = vld [vmem:[#allocation5 + $0x98] sm:$0xff]  ;;  %6241 = vmatprep.subr.bf16.mxu1 %v6240_v34  ;;  %v6124_v20 = vpack.c.bf16 %v4943_v30, %v4941_v29  ;;  %v6254_v33 = vpack.c.bf16 %v5536_v11, %v5535_v45  ;;  %v5537_v24 = vld [vmem:[#allocation7 + $0x60] sm:$0xff]  ;;  %v5555_v34 = vld [vmem:[#allocation7 + $0xf0] sm:$0xff] }
 0x649   :  { %v4966_v49 = vld [vmem:[#allocation2 + $0x4] ss:$32 sm:$0x80]  ;;  %v6120_v0 = vpack.c.bf16 %v4939_v7, %v4937_v50  ;;  %v5163_v62 = vld [vmem:[#allocation5 + $0x218] sm:$0xff]  ;;  %v6134_v7 = vpack.c.bf16 %v4950_v16, %v4948_v41  ;;  %v5539_v52 = vld [vmem:[#allocation7 + $0x70] sm:$0xff] }
 0x64a   :  { %4903 = vst [vmem:[#allocation2 + $0xf0] sm:$0xff] %v4871_v59  ;;  %v4967_v4 = vor.u32 %v4966_v49, %v4965_v22  ;;  %v5533_v59 = vld [vmem:[#allocation7 + $0x40] sm:$0xff]  ;;  %v5534_v22 = vld [vmem:[#allocation7 + $0x48] sm:$0xff]  ;;  %v5556_v56 = vld [vmem:[#allocation7 + $0xf8] sm:$0xff]  ;;  %v6136_v58 = vpack.c.bf16 %v5163_v62, %v5161_v14 }
 0x64b   :  { %6243 = vmatpush3.bf16.msra.mxu1 %v6242_v18  ;;  %v4906_v49 = vld [vmem:[#allocation2] ss:$32 sm:$0x2]  ;;  %v6250_v57 = vpack.c.bf16 %v5534_v22, %v5533_v59  ;;  %v5162_v18 = vld [vmem:[#allocation5 + $0x210] sm:$0xff]  ;;  %v5167_v29 = vld [vmem:[#allocation5 + $0x238] sm:$0xff] }
 0x64c   :  { %5066 = vmatmul.mubr.f32.vlgmr.msra.gmra.mrb[64].mxu0 %v4967_v4  ;;  %6245 = vmatprep.subr.bf16.mxu1 %v6244_v54  ;;  %v5552_v4 = vld [vmem:[#allocation7 + $0xd8] sm:$0xff]  ;;  %v4914_v50 = vld [vmem:[#allocation2] ss:$32 sm:$0x20]  ;;  %v6260_v54 = vpack.c.bf16 %v5556_v56, %v5555_v34  ;;  %v5166_v5 = vld [vmem:[#allocation5 + $0x230] sm:$0xff] }
 0x64d   :  { %6107 = vmatpush1.bf16.msra.mxu0 %v6106_v17  ;;  %5136 = vmatprep.mubr.f32.mxu0 %v8764_v26  ;;  %v5551_v17 = vld [vmem:[#allocation7 + $0xd0] sm:$0xff]  ;;  %v4916_v42 = vld [vmem:[#allocation2] ss:$32 sm:$0x40]  ;;  %v5540_v30 = vld [vmem:[#allocation7 + $0x78] sm:$0xff] }
 0x64e   :  { %6109 = vmatprep.subr.bf16.mxu0 %v6108_v10  ;;  %v4944_v10 = vld [vmem:[#allocation5 + $0xc0] sm:$0xff]  ;;  %v6252_v1 = vpack.c.bf16 %v5552_v4, %v5551_v17  ;;  %v5171_v44 = vld [vmem:[#allocation5 + $0x258] sm:$0xff]  ;;  %v5173_v17 = vld [vmem:[#allocation5 + $0x268] sm:$0xff] }
 0x64f   :  { %6247 = vmatpush3.bf16.msra.mxu1 %v6246_v25  ;;  %v6130_v63 = vpack.c.bf16 %v4946_v36, %v4944_v10  ;;  %v5160_v9 = vld [vmem:[#allocation5 + $0x200] sm:$0xff]  ;;  %v6262_v25 = vpack.c.bf16 %v5540_v30, %v5539_v52  ;;  %v5175_v4 = vld [vmem:[#allocation5 + $0x278] sm:$0xff]  ;;  %v5174_v36 = vld [vmem:[#allocation5 + $0x270] sm:$0xff] }
 0x650   :  { %6249 = vmatprep.subr.bf16.mxu1 %v6248_v53  ;;  %v4918_v37 = vld [vmem:[#allocation2] ss:$32 sm:$0x80]  ;;  %v6138_v47 = vpack.c.bf16 %v5162_v18, %v5160_v9  ;;  %v5177_v61 = vld [vmem:[#allocation5 + $0x288] sm:$0xff]  ;;  %v5183_v45 = vld [vmem:[#allocation5 + $0x2b8] sm:$0xff] }
 0x651   :  { %6111 = vmatpush1.bf16.msra.mxu0 %v6110_v32  ;;  %v4907_v32 = vor.u32 %v4906_v49, %v4905_v55  ;;  %v5164_v51 = vld [vmem:[#allocation5 + $0x220] sm:$0xff]  ;;  %v5170_v49 = vld [vmem:[#allocation5 + $0x250] sm:$0xff]  ;;  %v6148_v55 = vpack.c.bf16 %v5175_v4, %v5173_v17  ;;  %v5185_v41 = vld [vmem:[#allocation5 + $0x2c8] sm:$0xff] }
 0x652   :  { %6113 = vmatprep.subr.bf16.mxu0 %v6112_v19  ;;  %v5553_v19 = vld [vmem:[#allocation7 + $0xe0] sm:$0xff]  ;;  %v6142_v53 = vpack.c.bf16 %v5166_v5, %v5164_v51  ;;  %v5147_v14 = vld [vmem:[#allocation2 + $0x8] ss:$32 sm:$0x4]  ;;  %v5284_v30 = vld [vmem:[#allocation5 + $0x310] sm:$0xff] }
 0x653   :  { %v4909_v15 = vor.u32 %v4908_v3, %v4907_v32  ;;  %6251 = vmatpush3.bf16.msra.mxu1 %v6250_v57  ;;  %v6256_v46 = vpack.c.bf16 %v5554_v2, %v5553_v19  ;;  %v5168_v22 = vld [vmem:[#allocation5 + $0x240] sm:$0xff]  ;;  %v5179_v3 = vld [vmem:[#allocation5 + $0x298] sm:$0xff]  ;;  %v5178_v32 = vld [vmem:[#allocation5 + $0x290] sm:$0xff] }
 0x654   :  { %6253 = vmatprep.subr.bf16.mxu1 %v6252_v1  ;;  %v6146_v10 = vpack.c.bf16 %v5170_v49, %v5168_v22  ;;  %v5176_v27 = vld [vmem:[#allocation5 + $0x280] sm:$0xff]  ;;  %v5181_v1 = vld [vmem:[#allocation5 + $0x2a8] sm:$0xff]  ;;  %v5182_v2 = vld [vmem:[#allocation5 + $0x2b0] sm:$0xff] }
 0x655   :  { %6115 = vmatpush1.bf16.msra.mxu0 %v6114_v8  ;;  %v4911_v8 = vor.u32 %v4910_v35, %v4909_v15  ;;  %v6154_v11 = vpack.c.bf16 %v5178_v32, %v5176_v27  ;;  %v6156_v35 = vpack.c.bf16 %v5183_v45, %v5181_v1  ;;  %v5180_v19 = vld [vmem:[#allocation5 + $0x2a0] sm:$0xff]  ;;  %v5187_v15 = vld [vmem:[#allocation5 + $0x2d8] sm:$0xff]  ;;  %v5151_v56 = vld [vmem:[#allocation2 + $0x8] ss:$32 sm:$0x10] }
 0x656   :  { %6117 = vmatprep.subr.bf16.mxu0 %v6116_v28  ;;  %v5538_v28 = vld [vmem:[#allocation7 + $0x68] sm:$0xff]  ;;  %v6158_v16 = vpack.c.bf16 %v5182_v2, %v5180_v19  ;;  %v5282_v52 = vld [vmem:[#allocation5 + $0x300] sm:$0xff]  ;;  %v5292_v4 = vld [vmem:[#allocation5 + $0x350] sm:$0xff] }
 0x657   :  { %v4913_v21 = vor.u32 %v4912_v38, %v4911_v8  ;;  %6255 = vmatpush3.bf16.msra.mxu1 %v6254_v33  ;;  %v5144_v38 = vld [vmem:[#allocation2 + $0x8] ss:$32 sm:$0x1]  ;;  %v6160_v33 = vpack.c.bf16 %v5187_v15, %v5185_v41  ;;  %v5186_v8 = vld [vmem:[#allocation5 + $0x2d0] sm:$0xff]  ;;  %v6170_v51 = vpack.c.bf16 %v5284_v30, %v5282_v52  ;;  %v5290_v17 = vld [vmem:[#allocation5 + $0x340] sm:$0xff] }
 0x658   :  { %6257 = vmatprep.subr.bf16.mxu1 %v6256_v46  ;;  %v5189_v46 = vld [vmem:[#allocation5 + $0x2e8] sm:$0xff]  ;;  %v5298_v1 = vld [vmem:[#allocation5 + $0x380] sm:$0xff]  ;;  %v5300_v45 = vld [vmem:[#allocation5 + $0x390] sm:$0xff] }
 0x659   :  { %6119 = vmatpush1.bf16.msra.mxu0 %v6118_v40  ;;  %v6258_v40 = vpack.c.bf16 %v5538_v28, %v5537_v24  ;;  %v4915_v43 = vor.u32 %v4914_v50, %v4913_v21  ;;  %v5191_v24 = vld [vmem:[#allocation5 + $0x2f8] sm:$0xff]  ;;  %v5149_v28 = vld [vmem:[#allocation2 + $0x8] ss:$32 sm:$0x8]  ;;  %v6186_v19 = vpack.c.bf16 %v5300_v45, %v5298_v1  ;;  %v5302_v41 = vld [vmem:[#allocation5 + $0x3a0] sm:$0xff] }
 0x65a   :  { %6121 = vmatprep.subr.bf16.mxu0 %v6120_v0  ;;  %v5165_v0 = vld [vmem:[#allocation5 + $0x228] sm:$0xff]  ;;  %v6164_v21 = vpack.c.bf16 %v5191_v24, %v5189_v46  ;;  %v5304_v15 = vld [vmem:[#allocation5 + $0x3b0] sm:$0xff] }
 0x65b   :  { %v4917_v12 = vor.u32 %v4916_v42, %v4915_v43  ;;  %6259 = vmatpush3.bf16.msra.mxu1 %v6258_v40  ;;  %v6140_v13 = vpack.c.bf16 %v5167_v29, %v5165_v0  ;;  %v5190_v42 = vld [vmem:[#allocation5 + $0x2f0] sm:$0xff]  ;;  %v5153_v40 = vld [vmem:[#allocation2 + $0x8] ss:$32 sm:$0x20] }
 0x65c   :  { %6261 = vmatprep.subr.bf16.mxu1 %v6260_v54  ;;  %v5283_v43 = vld [vmem:[#allocation5 + $0x308] sm:$0xff]  ;;  %v5308_v46 = vld [vmem:[#allocation5 + $0x3d0] sm:$0xff] }
 0x65d   :  { %6123 = vmatpush1.bf16.msra.mxu0 %v6122_v23  ;;  %v4919_v23 = vor.u32 %v4918_v37, %v4917_v12  ;;  %v5155_v29 = vld [vmem:[#allocation2 + $0x8] ss:$32 sm:$0x40] }
 0x65e   :  { %6125 = vmatprep.subr.bf16.mxu0 %v6124_v20  ;;  %v5169_v20 = vld [vmem:[#allocation5 + $0x248] sm:$0xff] }
 0x65f   :  { %v6144_v59 = vpack.c.bf16 %v5171_v44, %v5169_v20  ;;  %6263 = vmatpush3.bf16.msra.mxu1 %v6262_v25  ;;  %v5157_v12 = vld [vmem:[#allocation2 + $0x8] ss:$32 sm:$0x80]  ;;  %v5286_v20 = vld [vmem:[#allocation5 + $0x320] sm:$0xff]  ;;  %v5288_v44 = vld [vmem:[#allocation5 + $0x330] sm:$0xff] }
 0x660   :  { %v6174_v22 = vpack.c.bf16 %v5288_v44, %v5286_v20 }
 0x661   :  { %6127 = vmatpush1.bf16.msra.mxu0 %v6126_v6  ;;  %v5172_v6 = vld [vmem:[#allocation5 + $0x260] sm:$0xff] }
 0x662   :  { %6129 = vmatprep.subr.bf16.mxu0 %v6128_v39  ;;  %v6150_v57 = vpack.c.bf16 %v5174_v36, %v5172_v6  ;;  %v6152_v39 = vpack.c.bf16 %v5179_v3, %v5177_v61  ;;  %v6178_v6 = vpack.c.bf16 %v5292_v4, %v5290_v17  ;;  %v5294_v61 = vld [vmem:[#allocation5 + $0x360] sm:$0xff]  ;;  %v5296_v3 = vld [vmem:[#allocation5 + $0x370] sm:$0xff] }
 0x663   :  { %v6182_v27 = vpack.c.bf16 %v5296_v3, %v5294_v61 }
 0x665   :  { %6131 = vmatpush1.bf16.msra.mxu0 %v6130_v63  ;;  %v5145_v63 = vld [vmem:[#allocation2 + $0x8] ss:$32 sm:$0x2] }
 0x666   :  { %6133 = vmatprep.subr.bf16.mxu0 %v6132_v31  ;;  %v5184_v31 = vld [vmem:[#allocation5 + $0x2c0] sm:$0xff]  ;;  %v5146_v62 = vor.u32 %v5145_v63, %v5144_v38  ;;  %v5307_v63 = vld [vmem:[#allocation5 + $0x3c8] sm:$0xff] }
 0x667   :  { %v6162_v34 = vpack.c.bf16 %v5186_v8, %v5184_v31  ;;  %v5267_v38 = vld [vmem:[#allocation2 + $0xc] ss:$32 sm:$0x2] }
 0x668   :  { %v5148_v50 = vor.u32 %v5147_v14, %v5146_v62  ;;  %v6190_v14 = vpack.c.bf16 %v5304_v15, %v5302_v41  ;;  %v5269_v31 = vld [vmem:[#allocation2 + $0xc] ss:$32 sm:$0x4]  ;;  %v5306_v62 = vld [vmem:[#allocation5 + $0x3c0] sm:$0xff] }
 0x669   :  { %6135 = vmatpush1.bf16.msra.mxu0 %v6134_v7  ;;  %v5188_v7 = vld [vmem:[#allocation5 + $0x2e0] sm:$0xff] }
 0x66a   :  { %6137 = vmatprep.subr.bf16.mxu0 %v6136_v58  ;;  %v5150_v9 = vor.u32 %v5149_v28, %v5148_v50  ;;  %v5285_v58 = vld [vmem:[#allocation5 + $0x318] sm:$0xff]  ;;  %v6166_v0 = vpack.c.bf16 %v5190_v42, %v5188_v7  ;;  %v5311_v28 = vld [vmem:[#allocation5 + $0x3e8] sm:$0xff]  ;;  %v5424_v15 = vld [vmem:[#allocation5 + $0x4a0] sm:$0xff] }
 0x66b   :  { %v6168_v37 = vpack.c.bf16 %v5285_v58, %v5283_v43  ;;  %v5313_v50 = vld [vmem:[#allocation5 + $0x3f8] sm:$0xff]  ;;  %v5273_v7 = vld [vmem:[#allocation2 + $0xc] ss:$32 sm:$0x10] }
 0x66c   :  { %5137 = vmatmul.mubr.f32.vlgmr.msra.gmra.mrb[64].mxu0 %v4919_v23  ;;  %v5152_v18 = vor.u32 %v5151_v56, %v5150_v9  ;;  %v5289_v23 = vld [vmem:[#allocation5 + $0x338] sm:$0xff]  ;;  %v6196_v42 = vpack.c.bf16 %v5313_v50, %v5311_v28  ;;  %v5310_v9 = vld [vmem:[#allocation5 + $0x3e0] sm:$0xff]  ;;  %v5275_v58 = vld [vmem:[#allocation2 + $0xc] ss:$32 sm:$0x20] }
 0x66d   :  { %6139 = vmatpush1.bf16.msra.mxu0 %v6138_v47  ;;  %5256 = vmatprep.mubr.f32.mxu0 %v8764_v26  ;;  %v5287_v47 = vld [vmem:[#allocation5 + $0x328] sm:$0xff] }
 0x66e   :  { %6141 = vmatprep.subr.bf16.mxu0 %v6140_v13  ;;  %v5154_v54 = vor.u32 %v5153_v40, %v5152_v18  ;;  %v6172_v25 = vpack.c.bf16 %v5289_v23, %v5287_v47  ;;  %v5312_v40 = vld [vmem:[#allocation5 + $0x3f0] sm:$0xff]  ;;  %v5405_v18 = vld [vmem:[#allocation5 + $0x408] sm:$0xff] }
 0x66f   :  { %v5406_v47 = vld [vmem:[#allocation5 + $0x410] sm:$0xff]  ;;  %v5279_v23 = vld [vmem:[#allocation2 + $0xc] ss:$32 sm:$0x80] }
 0x670   :  { %v5156_v13 = vor.u32 %v5155_v29, %v5154_v54  ;;  %v6198_v54 = vpack.c.bf16 %v5312_v40, %v5310_v9  ;;  %v5433_v50 = vld [vmem:[#allocation5 + $0x4e8] sm:$0xff]  ;;  %v5432_v40 = vld [vmem:[#allocation5 + $0x4e0] sm:$0xff] }
 0x671   :  { %6143 = vmatpush1.bf16.msra.mxu0 %v6142_v53  ;;  %v5291_v53 = vld [vmem:[#allocation5 + $0x348] sm:$0xff] }
 0x672   :  { %6145 = vmatprep.subr.bf16.mxu0 %v6144_v59  ;;  %v5158_v5 = vor.u32 %v5157_v12, %v5156_v13  ;;  %v5293_v59 = vld [vmem:[#allocation5 + $0x358] sm:$0xff]  ;;  %v5404_v12 = vld [vmem:[#allocation5 + $0x400] sm:$0xff]  ;;  %v5409_v13 = vld [vmem:[#allocation5 + $0x428] sm:$0xff] }
 0x673   :  { %v6176_v49 = vpack.c.bf16 %v5293_v59, %v5291_v53  ;;  %v5408_v53 = vld [vmem:[#allocation5 + $0x420] sm:$0xff]  ;;  %v5410_v59 = vld [vmem:[#allocation5 + $0x430] sm:$0xff] }
 0x674   :  { %v6206_v17 = vpack.c.bf16 %v5410_v59, %v5408_v53 }
 0x675   :  { %6147 = vmatpush1.bf16.msra.mxu0 %v6146_v10  ;;  %v5295_v10 = vld [vmem:[#allocation5 + $0x368] sm:$0xff] }
 0x676   :  { %6149 = vmatprep.subr.bf16.mxu0 %v6148_v55  ;;  %v5297_v55 = vld [vmem:[#allocation5 + $0x378] sm:$0xff] }
 0x677   :  { %v6180_v36 = vpack.c.bf16 %v5297_v55, %v5295_v10  ;;  %v5412_v10 = vld [vmem:[#allocation5 + $0x440] sm:$0xff]  ;;  %v5414_v55 = vld [vmem:[#allocation5 + $0x450] sm:$0xff] }
 0x678   :  { %v6210_v61 = vpack.c.bf16 %v5414_v55, %v5412_v10 }
 0x679   :  { %6151 = vmatpush1.bf16.msra.mxu0 %v6150_v57  ;;  %v5299_v57 = vld [vmem:[#allocation5 + $0x388] sm:$0xff] }
 0x67a   :  { %6153 = vmatprep.subr.bf16.mxu0 %v6152_v39  ;;  %v5301_v39 = vld [vmem:[#allocation5 + $0x398] sm:$0xff] }
 0x67b   :  { %v6184_v32 = vpack.c.bf16 %v5301_v39, %v5299_v57  ;;  %v5416_v57 = vld [vmem:[#allocation5 + $0x460] sm:$0xff]  ;;  %v5418_v39 = vld [vmem:[#allocation5 + $0x470] sm:$0xff] }
 0x67c   :  { %v6214_v1 = vpack.c.bf16 %v5418_v39, %v5416_v57 }
 0x67d   :  { %6155 = vmatpush1.bf16.msra.mxu0 %v6154_v11  ;;  %v5303_v11 = vld [vmem:[#allocation5 + $0x3a8] sm:$0xff] }
 0x67e   :  { %6157 = vmatprep.subr.bf16.mxu0 %v6156_v35  ;;  %v5305_v35 = vld [vmem:[#allocation5 + $0x3b8] sm:$0xff] }
 0x67f   :  { %v6188_v2 = vpack.c.bf16 %v5305_v35, %v5303_v11  ;;  %v5420_v11 = vld [vmem:[#allocation5 + $0x480] sm:$0xff]  ;;  %v5425_v35 = vld [vmem:[#allocation5 + $0x4a8] sm:$0xff] }
 0x681   :  { %6159 = vmatpush1.bf16.msra.mxu0 %v6158_v16  ;;  %v5309_v16 = vld [vmem:[#allocation5 + $0x3d8] sm:$0xff] }
 0x682   :  { %6161 = vmatprep.subr.bf16.mxu0 %v6160_v33  ;;  %v5266_v33 = vld [vmem:[#allocation2 + $0xc] ss:$32 sm:$0x1]  ;;  %v6192_v8 = vpack.c.bf16 %v5309_v16, %v5307_v63  ;;  %v5426_v63 = vld [vmem:[#allocation5 + $0x4b0] sm:$0xff] }
 0x683   :  { %v5268_v24 = vor.u32 %v5267_v38, %v5266_v33  ;;  %v5429_v16 = vld [vmem:[#allocation5 + $0x4c8] sm:$0xff]  ;;  %v5431_v38 = vld [vmem:[#allocation5 + $0x4d8] sm:$0xff]  ;;  %v6222_v33 = vpack.c.bf16 %v5426_v63, %v5424_v15 }
 0x685   :  { %6163 = vmatpush1.bf16.msra.mxu0 %v6162_v34  ;;  %v5271_v34 = vld [vmem:[#allocation2 + $0xc] ss:$32 sm:$0x8]  ;;  %v5270_v56 = vor.u32 %v5269_v31, %v5268_v24  ;;  %v5388_v31 = vld [vmem:[#allocation2 + $0x10] ss:$32 sm:$0x1] }
 0x686   :  { %6165 = vmatprep.subr.bf16.mxu0 %v6164_v21  ;;  %v6194_v21 = vpack.c.bf16 %v5308_v46, %v5306_v62  ;;  %v6224_v62 = vpack.c.bf16 %v5431_v38, %v5429_v16  ;;  %v5428_v46 = vld [vmem:[#allocation5 + $0x4c0] sm:$0xff]  ;;  %v5430_v24 = vld [vmem:[#allocation5 + $0x4d0] sm:$0xff] }
 0x687   :  { %v5272_v43 = vor.u32 %v5271_v34, %v5270_v56  ;;  %v5435_v34 = vld [vmem:[#allocation5 + $0x4f8] sm:$0xff]  ;;  %v5393_v56 = vld [vmem:[#allocation2 + $0x10] ss:$32 sm:$0x8] }
 0x688   :  { %v6228_v9 = vpack.c.bf16 %v5435_v34, %v5433_v50 }
 0x689   :  { %6167 = vmatpush1.bf16.msra.mxu0 %v6166_v0  ;;  %v5407_v0 = vld [vmem:[#allocation5 + $0x418] sm:$0xff]  ;;  %v5274_v29 = vor.u32 %v5273_v7, %v5272_v43  ;;  %v6226_v7 = vpack.c.bf16 %v5430_v24, %v5428_v46  ;;  %v5434_v43 = vld [vmem:[#allocation5 + $0x4f0] sm:$0xff] }
 0x68a   :  { %6169 = vmatprep.subr.bf16.mxu0 %v6168_v37  ;;  %v5277_v37 = vld [vmem:[#allocation2 + $0xc] ss:$32 sm:$0x40]  ;;  %v6200_v30 = vpack.c.bf16 %v5407_v0, %v5405_v18  ;;  %v5397_v18 = vld [vmem:[#allocation2 + $0x10] ss:$32 sm:$0x20] }
 0x68b   :  { %v5276_v52 = vor.u32 %v5275_v58, %v5274_v29  ;;  %v6230_v29 = vpack.c.bf16 %v5434_v43, %v5432_v40 }
 0x68c   :  { %5257 = vmatmul.mubr.f32.vlgmr.msra.gmra.mrb[64].mxu0 %v5158_v5 }
 0x68d   :  { %6171 = vmatpush1.bf16.msra.mxu0 %v6170_v51  ;;  %5378 = vmatprep.mubr.f32.mxu0 %v8764_v26  ;;  %v5411_v51 = vld [vmem:[#allocation5 + $0x438] sm:$0xff]  ;;  %v5278_v5 = vor.u32 %v5277_v37, %v5276_v52  ;;  %v5401_v52 = vld [vmem:[#allocation2 + $0x10] ss:$32 sm:$0x80] }
 0x68e   :  { %6173 = vmatprep.subr.bf16.mxu0 %v6172_v25  ;;  %v6202_v25 = vpack.c.bf16 %v5406_v47, %v5404_v12  ;;  %v6204_v44 = vpack.c.bf16 %v5411_v51, %v5409_v13  ;;  %v5509_v47 = vld [vmem:[%s8732_s6] sm:$0x3] }
 0x68f   :  { %v5280_v20 = vor.u32 %v5279_v23, %v5278_v5  ;;  %v5514_v23 = vrot.slane %v5509_v47, %v8779_v48  ;;  %v5518_v13 = vrot.slane %v5509_v47, %v8780_v60 }
 0x691   :  { %6175 = vmatpush1.bf16.msra.mxu0 %v6174_v22  ;;  %v5413_v22 = vld [vmem:[#allocation5 + $0x448] sm:$0xff] }
 0x692   :  { %6177 = vmatprep.subr.bf16.mxu0 %v6176_v49  ;;  %v5415_v49 = vld [vmem:[#allocation5 + $0x458] sm:$0xff] }
 0x693   :  { %v6208_v4 = vpack.c.bf16 %v5415_v49, %v5413_v22  ;;  %v5836_v22 = vld [vmem:[%s8734_s8] ss:$0 sm:$0xff] }
 0x695   :  { %6179 = vmatpush1.bf16.msra.mxu0 %v6178_v6  ;;  %v5417_v6 = vld [vmem:[#allocation5 + $0x468] sm:$0xff] }
 0x696   :  { %6181 = vmatprep.subr.bf16.mxu0 %v6180_v36  ;;  %v5419_v36 = vld [vmem:[#allocation5 + $0x478] sm:$0xff] }
 0x697   :  { %v6212_v3 = vpack.c.bf16 %v5419_v36, %v5417_v6 }
 0x699   :  { %6183 = vmatpush1.bf16.msra.mxu0 %v6182_v27  ;;  %v5421_v27 = vld [vmem:[#allocation5 + $0x488] sm:$0xff] }
 0x69a   :  { %6185 = vmatprep.subr.bf16.mxu0 %v6184_v32  ;;  %v5423_v32 = vld [vmem:[#allocation5 + $0x498] sm:$0xff] }
 0x69b   :  { %v6216_v45 = vpack.c.bf16 %v5423_v32, %v5421_v27 }
 0x69d   :  { %6187 = vmatpush1.bf16.msra.mxu0 %v6186_v19  ;;  %v5427_v19 = vld [vmem:[#allocation5 + $0x4b8] sm:$0xff] }
 0x69e   :  { %6189 = vmatprep.subr.bf16.mxu0 %v6188_v2  ;;  %v6220_v41 = vpack.c.bf16 %v5427_v19, %v5425_v35 }
 0x6a1   :  { %6191 = vmatpush1.bf16.msra.mxu0 %v6190_v14  ;;  %v5389_v14 = vld [vmem:[#allocation2 + $0x10] ss:$32 sm:$0x2] }
 0x6a2   :  { %6193 = vmatprep.subr.bf16.mxu0 %v6192_v8  ;;  %v5391_v8 = vld [vmem:[#allocation2 + $0x10] ss:$32 sm:$0x4]  ;;  %v5390_v28 = vor.u32 %v5389_v14, %v5388_v31 }
 0x6a5   :  { %6195 = vmatpush1.bf16.msra.mxu0 %v6194_v21  ;;  %v5392_v21 = vor.u32 %v5391_v8, %v5390_v28 }
 0x6a6   :  { %6197 = vmatprep.subr.bf16.mxu0 %v6196_v42  ;;  %v5395_v42 = vld [vmem:[#allocation2 + $0x10] ss:$32 sm:$0x10] }
 0x6a7   :  { %v5394_v58 = vor.u32 %v5393_v56, %v5392_v21 }
 0x6a9   :  { %6199 = vmatpush1.bf16.msra.mxu0 %v6198_v54  ;;  %v5396_v0 = vor.u32 %v5395_v42, %v5394_v58  ;;  %v5399_v54 = vld [vmem:[#allocation2 + $0x10] ss:$32 sm:$0x40] }
 0x6aa   :  { %6201 = vmatprep.subr.bf16.mxu0 %v6200_v30 }
 0x6ab   :  { %v5398_v37 = vor.u32 %v5397_v18, %v5396_v0 }
 0x6ac   :  { %5379 = vmatmul.mubr.f32.vlgmr.msra.gmra.mrb[64].mxu0 %v5280_v20 }
 0x6ad   :  { %6203 = vmatpush1.bf16.msra.mxu0 %v6202_v25  ;;  %5500 = vmatprep.mubr.f32.mxu0 %v8764_v26  ;;  %v5422_v26 = vld [vmem:[#allocation5 + $0x490] sm:$0xff]  ;;  %v5400_v30 = vor.u32 %v5399_v54, %v5398_v37 }
 0x6ae   :  { %6205 = vmatprep.subr.bf16.mxu0 %v6204_v44  ;;  %v6218_v2 = vpack.c.bf16 %v5422_v26, %v5420_v11 }
 0x6af   :  { %v5402_v12 = vor.u32 %v5401_v52, %v5400_v30 }
 0x6b1   :  { %6207 = vmatpush1.bf16.msra.mxu0 %v6206_v17 }
 0x6b2   :  { %6209 = vmatprep.subr.bf16.mxu0 %v6208_v4 }
 0x6b5   :  { %6211 = vmatpush1.bf16.msra.mxu0 %v6210_v61 }
 0x6b6   :  { %6213 = vmatprep.subr.bf16.mxu0 %v6212_v3 }
 0x6b9   :  { %6215 = vmatpush1.bf16.msra.mxu0 %v6214_v1 }
 0x6ba   :  { %6217 = vmatprep.subr.bf16.mxu0 %v6216_v45 }
 0x6bd   :  { %6219 = vmatpush1.bf16.msra.mxu0 %v6218_v2 }
 0x6be   :  { %6221 = vmatprep.subr.bf16.mxu0 %v6220_v41 }
 0x6c1   :  { %6223 = vmatpush1.bf16.msra.mxu0 %v6222_v33 }
 0x6c2   :  { %6225 = vmatprep.subr.bf16.mxu0 %v6224_v62 }
 0x6c5   :  { %6227 = vmatpush1.bf16.msra.mxu0 %v6226_v7 }
 0x6c6   :  { %6229 = vmatprep.subr.bf16.mxu0 %v6228_v9 }
 0x6c9   :  { %6231 = vmatpush1.bf16.msra.mxu0 %v6230_v29 }
 0x6cc   :  { %5501 = vmatmul.mubr.f32.vlgmr.msra.gmra.mrb[64].mxu0 %v5402_v12 }
 0x79f   :  { %v5502_v51 = vpop.f32.mrb[64].mxu0 }
 0x7a0   :  { %v5521_v5 = vadd.f32 %v5514_v23, %v5502_v51  ;;  %v5504_v25 = vpop.f32.mrb[65].mxu0 }
 0x7a1   :  { %v5522_v20 = vadd.f32 %v5518_v13, %v5504_v25 }
 0x7a2   :  { %v5523_v53 = vmax.f32 %v5521_v5, 0.0 }
 0x7a3   :  { %v5524_v44 = vmax.f32 %v5522_v20, 0.0 }
 0x7a5   :  { %5628 = vmatprep.mubr.f32.mxu1 %v5524_v44 }
 0x7a6   :  { %5629 = vmatmul.mubr.f32.vlgmr.msra.gmra.mrb[96].mxu1 %v5523_v53 }
 0x879   :  { %v5869_v59 = vpop.f32.mrb[96].mxu1 }
 0x87a   :  { %v5870_v49 = vpop.f32.mrb[97].mxu1 }
 0x87b   :  { %v5871_v17 = vadd.f32 %v5870_v49, %v5869_v59 }
 0x87d   :  { %v5631_v4 = vadd.f32 %v5871_v17, %v5836_v22 }
 0x87f   :  { %5634 = vst [vmem:[%s8735_s9] sm:$0xff] %v5631_v4 }
 0x880   :  { %5639 = vsyncpa [#allocation4], 1 }
 0x881   :  { %5640 = vsyncpa [#allocation6], 1 }

</bundles_post_ra>
